<compile_context>
chip_gen: v6e
topology: v6e:2x2x1
jax: 0.10.0
libtpu: 0.0.40
codegen_flags: <defaults>
</compile_context>

<pallas_src>
import math
import functools

import jax
import jax.numpy as jnp
from jax import lax
from jax.experimental import pallas as pl
from jax.experimental.pallas import tpu as pltpu


def _tpu_generation():
    """Best-effort TPU generation detection (perf knobs only; correctness-neutral)."""
    try:
        kind = jax.devices()[0].device_kind.lower()
    except Exception:
        return 6
    for tag, gen in (("v7", 7), ("v6", 6), ("v5", 5), ("v4", 4), ("v3", 3), ("v2", 2)):
        if tag in kind:
            return gen
    return 6


_GEN = _tpu_generation()
# v7x has 64 MiB physical VMEM -> leave headroom; v5e/v6e have 128 MiB.
_VMEM_LIMIT_BYTES = (48 if _GEN >= 7 else 96) * 1024 * 1024
# bf16 EUP exists on v6e/v7x; keep the all-f32 softmax path on v5e and older.
_USE_BF16_EXP = _GEN >= 6


def _round_up(x, m):
    return ((x + m - 1) // m) * m


def _pick_tile(dim, preferred, align):
    """Largest multiple of `align` that divides `dim` and is <= `preferred`; else full dim."""
    if dim <= preferred:
        return dim
    t = (preferred // align) * align
    while t >= align:
        if dim % t == 0:
            return t
        t -= align
    return dim


# --------------------------- tiled linear (matmul) --------------------------- #

def _matmul_kernel(x_ref, w_ref, o_ref, acc_ref):
    @pl.when(pl.program_id(2) == 0)
    def _init():
        acc_ref[...] = jnp.zeros(acc_ref.shape, jnp.float32)

    acc_ref[...] += jnp.dot(x_ref[...], w_ref[...], preferred_element_type=jnp.float32)

    @pl.when(pl.program_id(2) == pl.num_programs(2) - 1)
    def _finalize():
        o_ref[...] = acc_ref[...].astype(o_ref.dtype)


def _matmul_bias_kernel(x_ref, w_ref, b_ref, o_ref, acc_ref):
    @pl.when(pl.program_id(2) == 0)
    def _init():
        acc_ref[...] = jnp.zeros(acc_ref.shape, jnp.float32)

    acc_ref[...] += jnp.dot(x_ref[...], w_ref[...], preferred_element_type=jnp.float32)

    @pl.when(pl.program_id(2) == pl.num_programs(2) - 1)
    def _finalize():
        o_ref[...] = (acc_ref[...] + b_ref[...]).astype(o_ref.dtype)


def pallas_linear(x, w, b=None, *, out_dtype=None, tm=512, tn=512, tk=512):
    """y = x @ w (+ b). Tiled, pipelined matmul with an f32 VMEM accumulator."""
    M, K = x.shape
    Kw, N = w.shape
    assert K == Kw
    out_dtype = out_dtype if out_dtype is not None else x.dtype

    tm = _pick_tile(M, tm, 16)     # bf16 sublane pack is 16
    tn = _pick_tile(N, tn, 128)
    tk = _pick_tile(K, tk, 128)
    grid = (M // tm, N // tn, K // tk)

    in_specs = [
        pl.BlockSpec((tm, tk), lambda i, j, k: (i, k)),
        pl.BlockSpec((tk, tn), lambda i, j, k: (k, j)),
    ]
    operands = [x, w]
    kernel = _matmul_kernel
    if b is not None:
        in_specs.append(pl.BlockSpec((1, tn), lambda i, j, k: (0, j)))
        operands.append(b.reshape(1, N).astype(jnp.float32))
        kernel = _matmul_bias_kernel

    return pl.pallas_call(
        kernel,
        out_shape=jax.ShapeDtypeStruct((M, N), out_dtype),
        grid=grid,
        in_specs=in_specs,
        out_specs=pl.BlockSpec((tm, tn), lambda i, j, k: (i, j)),
        scratch_shapes=[pltpu.VMEM((tm, tn), jnp.float32)],
        compiler_params=pltpu.CompilerParams(
            dimension_semantics=("parallel", "parallel", "arbitrary"),
            vmem_limit_bytes=_VMEM_LIMIT_BYTES,
        ),
    )(*operands)


# ------------------------ flash GQA attention + alibi ------------------------ #

def _flash_gqa_kernel(slopes_ref, q_ref, k_ref, v_ref, o_ref,
                      m_ref, l_ref, acc_ref, rel_ref, *,
                      n_kv_heads, group, block_q, block_k, kv_len,
                      mask_kv, use_bf16_exp):
    kvh = pl.program_id(1)
    qi = pl.program_id(2)
    ki = pl.program_id(3)

    @pl.when(ki == 0)
    def _init():
        m_ref[...] = jnp.full(m_ref.shape, -jnp.inf, jnp.float32)
        l_ref[...] = jnp.zeros(l_ref.shape, jnp.float32)
        acc_ref[...] = jnp.zeros(acc_ref.shape, jnp.float32)
        # Grid-invariant (j - i) tile cached once per q block: the inner kv loop does
        # no iota / int->f32 work.
        rel_ref[...] = (
            lax.broadcasted_iota(jnp.int32, (block_q, block_k), 1)
            - lax.broadcasted_iota(jnp.int32, (block_q, block_k), 0)
        ).astype(jnp.float32)

    k = k_ref[0, 0]          # (D, bk) bf16 -- K pre-transposed, no in-kernel transpose
    v = v_ref[0, 0]          # (bk, D) bf16

    # alibi bias = min(slope * (j_global - i_global), 0); slope > 0 so the min replaces
    # the compare+select of an explicit lower-triangle test.
    offset = (ki * block_k - qi * block_q).astype(jnp.float32)
    rel = jnp.minimum(rel_ref[...] + offset, 0.0)            # (bq, bk), shared by the group
    if mask_kv:
        jpos = ki * block_k + lax.broadcasted_iota(jnp.int32, (block_q, block_k), 1)
        rel = jnp.where(jpos < kv_len, rel, -1e30)            # padded kv columns -> p == 0

    last_ki = ki == pl.num_programs(3) - 1

    # Static loop over the query heads sharing this kv head: the K/V tile stays resident
    # in VMEM and serves all `group` heads (group x less KV HBM traffic).
    for g in range(group):
        slope = slopes_ref[g * n_kv_heads + kvh]              # f32 scalar from SMEM
        q = q_ref[0, 0, g]                                    # (bq, D) bf16, 1/sqrt(D) folded
        s = jnp.dot(q, k, preferred_element_type=jnp.float32)  # (bq, bk) f32
        s = s + rel * slope

        m_prev = m_ref[g]
        m_new = jnp.maximum(m_prev, jnp.max(s, axis=-1, keepdims=True))
        alpha = jnp.exp(m_prev - m_new)
        if use_bf16_exp:
            p = jnp.exp((s - m_new).astype(jnp.bfloat16))     # bf16 exp on the EUP
            p_sum = jnp.sum(p.astype(jnp.float32), axis=-1, keepdims=True)
        else:
            p32 = jnp.exp(s - m_new)
            p_sum = jnp.sum(p32, axis=-1, keepdims=True)
            p = p32.astype(v.dtype)
        l_ref[g] = alpha * l_ref[g] + p_sum
        acc_ref[g] = alpha * acc_ref[g] + jnp.dot(p, v, preferred_element_type=jnp.float32)
        m_ref[g] = m_new

    @pl.when(last_ki)
    def _finalize():
        for g in range(group):
            inv_l = pl.reciprocal(l_ref[g], approx=True)
            o_ref[0, 0, g] = (acc_ref[g] * inv_l).astype(o_ref.dtype)


def pallas_gqa_flash_attention(q, k, v, slopes_scaled, n_kv_heads,
                               *, block_q=256, block_k=512):
    """GQA attention with in-kernel alibi bias.

    q: (B, Hkv, group, T, D) bf16 (query heads sharing a kv head packed together),
    k: (B, Hkv, D, T) bf16 (pre-transposed), v: (B, Hkv, T, D) bf16,
    slopes_scaled: (H,) f32 = slope * D^-0.5 indexed by head h = g*n_kv_heads + kvh.
    """
    B, Hkv, group, T, D = q.shape
    assert Hkv == n_kv_heads
    assert k.shape == (B, Hkv, D, T) and v.shape == (B, Hkv, T, D)

    # Pad T so the tuned tile sizes always apply (don't collapse the kv loop into one
    # giant block when T isn't a multiple of the tile size).
    if T <= block_q and T <= block_k and T % 8 == 0:
        t_pad = T
    else:
        t_pad = _round_up(T, 128)
    if t_pad != T:
        pad = t_pad - T
        q = jnp.pad(q, ((0, 0), (0, 0), (0, 0), (0, pad), (0, 0)))
        k = jnp.pad(k, ((0, 0), (0, 0), (0, 0), (0, pad)))
        v = jnp.pad(v, ((0, 0), (0, 0), (0, pad), (0, 0)))
    mask_kv = t_pad != T

    bq = _pick_tile(t_pad, block_q, 16)      # bf16 sublane pack = 16
    bk = _pick_tile(t_pad, block_k, 128)     # lane granularity (K's minor dim)
    grid = (B, n_kv_heads, t_pad // bq, t_pad // bk)

    kernel = functools.partial(
        _flash_gqa_kernel, n_kv_heads=n_kv_heads, group=group,
        block_q=bq, block_k=bk, kv_len=T, mask_kv=mask_kv,
        use_bf16_exp=_USE_BF16_EXP)

    def qo_map(b, kvh, qi, ki, slopes):
        return (b, kvh, 0, qi, 0)

    def k_map(b, kvh, qi, ki, slopes):
        return (b, kvh, 0, ki)

    def v_map(b, kvh, qi, ki, slopes):
        return (b, kvh, ki, 0)

    grid_spec = pltpu.PrefetchScalarGridSpec(
        num_scalar_prefetch=1,
        grid=grid,
        in_specs=[
            pl.BlockSpec((1, 1, group, bq, D), qo_map),
            pl.BlockSpec((1, 1, D, bk), k_map),
            pl.BlockSpec((1, 1, bk, D), v_map),
        ],
        out_specs=pl.BlockSpec((1, 1, group, bq, D), qo_map),
        scratch_shapes=[
            pltpu.VMEM((group, bq, 1), jnp.float32),   # m
            pltpu.VMEM((group, bq, 1), jnp.float32),   # l
            pltpu.VMEM((group, bq, D), jnp.float32),   # acc
            pltpu.VMEM((bq, bk), jnp.float32),         # cached (j - i)
        ],
    )

    out = pl.pallas_call(
        kernel,
        out_shape=jax.ShapeDtypeStruct((B, n_kv_heads, group, t_pad, D), q.dtype),
        grid_spec=grid_spec,
        compiler_params=pltpu.CompilerParams(
            dimension_semantics=("parallel", "parallel", "parallel", "arbitrary"),
            vmem_limit_bytes=_VMEM_LIMIT_BYTES,
        ),
    )(slopes_scaled, q, k, v)

    if t_pad != T:
        out = out[:, :, :, :T]
    return out


# ------------------------------ module-level glue ---------------------------- #

def get_slopes_power_of_2(n_head):
    assert n_head % 2 == 0
    start = 2 ** (-(2 ** (-(math.log2(n_head) - 3))))
    ratio = start
    return [start * ratio ** i for i in range(n_head)]


def init_params(key, n_embd, n_head, n_kv_heads):
    head_dim = n_embd // n_head
    k1, k2, k3, k4 = jax.random.split(key, 4)

    def _uniform(k, shape, fan_in):
        bound = 1.0 / math.sqrt(fan_in)
        return jax.random.uniform(k, shape, jnp.float32, -bound, bound)

    # Stored as (in_features, out_features) so forward is x @ W (+ b).
    return {
        "wq": _uniform(k1, (n_embd, n_embd), n_embd),
        "wkv": _uniform(k2, (n_embd, head_dim * n_kv_heads * 2), n_embd),
        "wp": _uniform(k3, (n_embd, n_embd), n_embd),
        "bp": _uniform(k4, (n_embd,), n_embd),
    }


def decoder_gqa_alibi_forward(x, params, n_head, n_kv_heads,
                              block_q=None, block_k=None):
    B, T, C = x.shape
    D = C // n_head
    group = n_head // n_kv_heads
    assert group * n_kv_heads == n_head
    kvd = n_kv_heads * D
    scale = float(D) ** -0.5

    if block_q is None:
        block_q = 256
    if block_k is None:
        block_k = 1024 if _GEN < 7 else 512   # 128 MiB VMEM parts take bigger kv tiles

    xf = x.reshape(B * T, C).astype(jnp.bfloat16)
    # Fused q/kv projection (x streamed from HBM once); 1/sqrt(D) folded into Wq in f32
    # BEFORE the bf16 cast so the attention kernel does no per-step q scaling.
    w_qkv = jnp.concatenate([params["wq"] * scale, params["wkv"]], axis=1).astype(jnp.bfloat16)
    qkv = pallas_linear(xf, w_qkv, out_dtype=jnp.bfloat16)        # (B*T, C + 2*kvd)

    q = qkv[:, :C]
    k = qkv[:, C:C + kvd]
    v = qkv[:, C + kvd:]

    # Query heads that share a kv head (h = g*n_kv_heads + kvh, torch `.repeat` tiling)
    # are packed together: (B, Hkv, group, T, D).
    q = q.reshape(B, T, group, n_kv_heads, D).transpose(0, 3, 2, 1, 4)
    # K pre-transposed to (B, Hkv, D, T) so QK^T contracts K's leading dim on the MXU.
    k = k.reshape(B, T, n_kv_heads, D).transpose(0, 2, 3, 1)
    v = v.reshape(B, T, n_kv_heads, D).transpose(0, 2, 1, 3)

    # Per-head slope, pre-scaled by D^-0.5 (tiny (H,) array -> SMEM scalar prefetch).
    slopes = jnp.array(get_slopes_power_of_2(n_head), jnp.float32) * scale

    o = pallas_gqa_flash_attention(q, k, v, slopes, n_kv_heads,
                                   block_q=block_q, block_k=block_k)  # (B,Hkv,group,T,D)
    o = o.transpose(0, 3, 2, 1, 4).reshape(B * T, C)

    out = pallas_linear(o, params["wp"].astype(jnp.bfloat16),
                        b=params["bp"], out_dtype=jnp.float32)
    # attn_dropout / projection_dropout: identity in eval mode.
    return out.reshape(B, T, C)


# --------------------------- pure-JAX f32 reference --------------------------- #

def reference_forward(x, params, n_head, n_kv_heads):
    B, T, C = x.shape
    D = C // n_head
    hp = "highest"

    q = jnp.einsum("btc,cn->btn", x, params["wq"], precision=hp)
    kv = jnp.einsum("btc,cn->btn", x, params["wkv"], precision=hp)
    k, v = jnp.split(kv, 2, axis=-1)
    q = q.reshape(B, T, n_head, D).transpose(0, 2, 1, 3)
    k = k.reshape(B, T, n_kv_heads, D).transpose(0, 2, 1, 3)
    v = v.reshape(B, T, n_kv_heads, D).transpose(0, 2, 1, 3)
    rep = n_head // n_kv_heads
    k = jnp.tile(k, (1, rep, 1, 1))    # torch .repeat(1, rep, 1, 1)
    v = jnp.tile(v, (1, rep, 1, 1))

    # Registered buffer: tril(masked_fill(alibi, upper, -inf)) -> upper triangle = 0.
    ar = jnp.arange(T, dtype=jnp.float32)
    rel = ar[None, :] - ar[:, None]                                # j - i
    slopes = jnp.array(get_slopes_power_of_2(n_head), jnp.float32)
    alibi = rel[None] * slopes[:, None, None]                      # (H, T, T)
    lower = jnp.tril(jnp.ones((T, T), jnp.float32))[None]
    bias = jnp.where(lower == 0, 0.0, alibi) * (D ** -0.5)

    s = jnp.einsum("bhqd,bhkd->bhqk", q, k, precision=hp) * (D ** -0.5) + bias[None]
    p = jax.nn.softmax(s, axis=-1)
    o = jnp.einsum("bhqk,bhkd->bhqd", p, v, precision=hp)
    o = o.transpose(0, 2, 1, 3).reshape(B, T, C)
    return jnp.einsum("btc,cn->btn", o, params["wp"], precision=hp) + params["bp"]


# ------------------------------------ main ------------------------------------ #

if __name__ == "__main__":
    # Small but non-degenerate: 2 q blocks x 2 kv blocks, group=2 (GQA fusion exercised).
    B, T = 2, 256
    n_embd, n_head, n_kv_heads = 128, 8, 4

    key = jax.random.PRNGKey(0)
    kx, kp = jax.random.split(key)

    x = jax.random.normal(kx, (B, T, n_embd), dtype=jnp.float32)
    params = init_params(kp, n_embd, n_head, n_kv_heads)

    fwd = jax.jit(functools.partial(decoder_gqa_alibi_forward,
                                    n_head=n_head, n_kv_heads=n_kv_heads,
                                    block_q=128, block_k=128))
    out = fwd(x, params)
    jax.block_until_ready(out)

    ref = reference_forward(x, params, n_head, n_kv_heads)

    assert out.shape == (B, T, n_embd)
    assert bool(jnp.all(jnp.isfinite(out)))
    max_err = float(jnp.max(jnp.abs(out - ref)))
    assert max_err < 0.15, f"max abs error {max_err} vs f32 reference"
    print("KERNEL_OK")
</pallas_src>

<mosaic_0001>
module attributes {stable_mosaic.version = 11 : i64} {
  func.func @_matmul_kernel(%arg0: i32, %arg1: i32, %arg2: i32, %arg3: memref<512x128xbf16, #tpu.memory_space<vmem>>, %arg4: memref<128x256xbf16, #tpu.memory_space<vmem>>, %arg5: memref<512x256xbf16, #tpu.memory_space<vmem>>, %arg6: memref<512x256xf32, #tpu.memory_space<vmem>>) attributes {dimension_semantics = [#tpu.dimension_semantics<parallel>, #tpu.dimension_semantics<parallel>, #tpu.dimension_semantics<arbitrary>], iteration_bounds = array<i64: 1, 1, 1>, scalar_prefetch = 0 : i64, scratch_operands = 1 : i64, tpu.core_type = #tpu.core_type<tc>, window_params = [{transform_indices = @transform_0, window_bounds = array<i64: 512, 128>}, {transform_indices = @transform_1, window_bounds = array<i64: 128, 256>}, {transform_indices = @transform_2, window_bounds = array<i64: 512, 256>}]} {
    %c0_i32 = arith.constant 0 : i32
    %0 = arith.cmpi eq, %arg2, %c0_i32 : i32
    %1 = arith.extui %0 : i1 to i32
    %c0_i32_0 = arith.constant 0 : i32
    %2 = arith.cmpi ne, %1, %c0_i32_0 : i32
    scf.if %2 {
      %cst_10 = arith.constant 0.000000e+00 : f32
      %12 = vector.broadcast %cst_10 : f32 to vector<512x256xf32>
      %c0_11 = arith.constant 0 : index
      %c0_12 = arith.constant 0 : index
      %13 = vector.load %arg6[%c0_11, %c0_12] : memref<512x256xf32, #tpu.memory_space<vmem>>, vector<512x256xf32>
      tpu.vector_store %arg6[%c0_11, %c0_12], %12 {strides = array<i32>} : memref<512x256xf32, #tpu.memory_space<vmem>>, vector<512x256xf32>,
    } else {
    }
    %c0 = arith.constant 0 : index
    %c0_1 = arith.constant 0 : index
    %3 = vector.load %arg6[%c0, %c0_1] : memref<512x256xf32, #tpu.memory_space<vmem>>, vector<512x256xf32>
    %c0_2 = arith.constant 0 : index
    %c0_3 = arith.constant 0 : index
    %4 = vector.load %arg3[%c0_2, %c0_3] : memref<512x128xbf16, #tpu.memory_space<vmem>>, vector<512x128xbf16>
    %c0_4 = arith.constant 0 : index
    %c0_5 = arith.constant 0 : index
    %5 = vector.load %arg4[%c0_4, %c0_5] : memref<128x256xbf16, #tpu.memory_space<vmem>>, vector<128x256xbf16>
    %cst = arith.constant dense<0.000000e+00> : vector<512x256xf32>
    %6 = tpu.matmul %4, %5, %cst {dimension_numbers = #tpu.dot_dimension_numbers<[1], [0], [0], [1], [0, 0, 1, 1], [], []>} : vector<512x128xbf16>, vector<128x256xbf16>, vector<512x256xf32> -> vector<512x256xf32>
    %7 = arith.addf %3, %6 : vector<512x256xf32>
    %c0_6 = arith.constant 0 : index
    %c0_7 = arith.constant 0 : index
    %8 = vector.load %arg6[%c0_6, %c0_7] : memref<512x256xf32, #tpu.memory_space<vmem>>, vector<512x256xf32>
    tpu.vector_store %arg6[%c0_6, %c0_7], %7 {strides = array<i32>} : memref<512x256xf32, #tpu.memory_space<vmem>>, vector<512x256xf32>,
    %c0_i32_8 = arith.constant 0 : i32
    %9 = arith.cmpi eq, %arg2, %c0_i32_8 : i32
    %10 = arith.extui %9 : i1 to i32
    %c0_i32_9 = arith.constant 0 : i32
    %11 = arith.cmpi ne, %10, %c0_i32_9 : i32
    scf.if %11 {
      %c0_10 = arith.constant 0 : index
      %c0_11 = arith.constant 0 : index
      %12 = vector.load %arg6[%c0_10, %c0_11] : memref<512x256xf32, #tpu.memory_space<vmem>>, vector<512x256xf32>
      %13 = arith.truncf %12 : vector<512x256xf32> to vector<512x256xbf16>
      %c0_12 = arith.constant 0 : index
      %c0_13 = arith.constant 0 : index
      %14 = vector.load %arg5[%c0_12, %c0_13] : memref<512x256xbf16, #tpu.memory_space<vmem>>, vector<512x256xbf16>
      tpu.vector_store %arg5[%c0_12, %c0_13], %13 {strides = array<i32>} : memref<512x256xbf16, #tpu.memory_space<vmem>>, vector<512x256xbf16>,
    } else {
    }
    return
  }
  func.func @transform_0(%arg0: i32, %arg1: i32, %arg2: i32) -> (i32, i32) {
    %c0_i32 = arith.constant 0 : i32
    return %arg0, %arg2 : i32, i32
  }
  func.func @transform_1(%arg0: i32, %arg1: i32, %arg2: i32) -> (i32, i32) {
    %c0_i32 = arith.constant 0 : i32
    return %arg2, %arg1 : i32, i32
  }
  func.func @transform_2(%arg0: i32, %arg1: i32, %arg2: i32) -> (i32, i32) {
    %c0_i32 = arith.constant 0 : i32
    return %arg0, %arg1 : i32, i32
  }
}

module attributes {stable_mosaic.version = 11 : i64} {
  func.func @_flash_gqa_kernel(%arg0: i32, %arg1: i32, %arg2: i32, %arg3: i32, %arg4: memref<8xf32, #tpu.memory_space<smem>>, %arg5: memref<1x1x2x128x16xbf16, #tpu.memory_space<vmem>>, %arg6: memref<1x1x16x128xbf16, #tpu.memory_space<vmem>>, %arg7: memref<1x1x128x16xbf16, #tpu.memory_space<vmem>>, %arg8: memref<1x1x2x128x16xbf16, #tpu.memory_space<vmem>>, %arg9: memref<2x128x1xf32, #tpu.memory_space<vmem>>, %arg10: memref<2x128x1xf32, #tpu.memory_space<vmem>>, %arg11: memref<2x128x16xf32, #tpu.memory_space<vmem>>, %arg12: memref<128x128xf32, #tpu.memory_space<vmem>>) attributes {dimension_semantics = [#tpu.dimension_semantics<parallel>, #tpu.dimension_semantics<parallel>, #tpu.dimension_semantics<parallel>, #tpu.dimension_semantics<arbitrary>], iteration_bounds = array<i64: 2, 4, 2, 2>, scalar_prefetch = 1 : i64, scratch_operands = 4 : i64, tpu.core_type = #tpu.core_type<tc>, window_params = [{transform_indices = @transform_0, window_bounds = array<i64: 1, 1, 2, 128, 16>}, {transform_indices = @transform_1, window_bounds = array<i64: 1, 1, 16, 128>}, {transform_indices = @transform_2, window_bounds = array<i64: 1, 1, 128, 16>}, {transform_indices = @transform_3, window_bounds = array<i64: 1, 1, 2, 128, 16>}]} {
    %c0_i32 = arith.constant 0 : i32
    %0 = arith.cmpi eq, %arg3, %c0_i32 : i32
    %1 = arith.extui %0 : i1 to i32
    %c0_i32_0 = arith.constant 0 : i32
    %2 = arith.cmpi ne, %1, %c0_i32_0 : i32
    scf.if %2 {
      %cst_66 = arith.constant 0xFF800000 : f32
      %103 = vector.broadcast %cst_66 : f32 to vector<2x128x1xf32>
      %c0_67 = arith.constant 0 : index
      %c0_68 = arith.constant 0 : index
      %c0_69 = arith.constant 0 : index
      %104 = vector.load %arg9[%c0_67, %c0_68, %c0_69] : memref<2x128x1xf32, #tpu.memory_space<vmem>>, vector<2x128x1xf32>
      tpu.vector_store %arg9[%c0_67, %c0_68, %c0_69], %103 {strides = array<i32>} : memref<2x128x1xf32, #tpu.memory_space<vmem>>, vector<2x128x1xf32>,
      %cst_70 = arith.constant 0.000000e+00 : f32
      %105 = vector.broadcast %cst_70 : f32 to vector<2x128x1xf32>
      %c0_71 = arith.constant 0 : index
      %c0_72 = arith.constant 0 : index
      %c0_73 = arith.constant 0 : index
      %106 = vector.load %arg10[%c0_71, %c0_72, %c0_73] : memref<2x128x1xf32, #tpu.memory_space<vmem>>, vector<2x128x1xf32>
      tpu.vector_store %arg10[%c0_71, %c0_72, %c0_73], %105 {strides = array<i32>} : memref<2x128x1xf32, #tpu.memory_space<vmem>>, vector<2x128x1xf32>,
      %cst_74 = arith.constant 0.000000e+00 : f32
      %107 = vector.broadcast %cst_74 : f32 to vector<2x128x16xf32>
      %c0_75 = arith.constant 0 : index
      %c0_76 = arith.constant 0 : index
      %c0_77 = arith.constant 0 : index
      %108 = vector.load %arg11[%c0_75, %c0_76, %c0_77] : memref<2x128x16xf32, #tpu.memory_space<vmem>>, vector<2x128x16xf32>
      tpu.vector_store %arg11[%c0_75, %c0_76, %c0_77], %107 {strides = array<i32>} : memref<2x128x16xf32, #tpu.memory_space<vmem>>, vector<2x128x16xf32>,
      %109 = tpu.iota {dimensions = array<i32: 1>} : vector<128x128xi32>
      %110 = tpu.iota {dimensions = array<i32: 0>} : vector<128x128xi32>
      %111 = arith.subi %109, %110 : vector<128x128xi32>
      %112 = arith.sitofp %111 : vector<128x128xi32> to vector<128x128xf32>
      %c0_78 = arith.constant 0 : index
      %c0_79 = arith.constant 0 : index
      %113 = vector.load %arg12[%c0_78, %c0_79] : memref<128x128xf32, #tpu.memory_space<vmem>>, vector<128x128xf32>
      tpu.vector_store %arg12[%c0_78, %c0_79], %112 {strides = array<i32>} : memref<128x128xf32, #tpu.memory_space<vmem>>, vector<128x128xf32>,
    } else {
    }
    %c0 = arith.constant 0 : index
    %c0_1 = arith.constant 0 : index
    %c0_2 = arith.constant 0 : index
    %c0_3 = arith.constant 0 : index
    %3 = vector.load %arg6[%c0, %c0_1, %c0_2, %c0_3] : memref<1x1x16x128xbf16, #tpu.memory_space<vmem>>, vector<1x1x16x128xbf16>
    %4 = vector.shape_cast %3 : vector<1x1x16x128xbf16> to vector<16x128xbf16>
    %c0_4 = arith.constant 0 : index
    %c0_5 = arith.constant 0 : index
    %c0_6 = arith.constant 0 : index
    %c0_7 = arith.constant 0 : index
    %5 = vector.load %arg7[%c0_4, %c0_5, %c0_6, %c0_7] : memref<1x1x128x16xbf16, #tpu.memory_space<vmem>>, vector<1x1x128x16xbf16>
    %6 = vector.shape_cast %5 : vector<1x1x128x16xbf16> to vector<128x16xbf16>
    %c128_i32 = arith.constant 128 : i32
    %7 = arith.muli %arg3, %c128_i32 : i32
    %c128_i32_8 = arith.constant 128 : i32
    %8 = arith.muli %arg2, %c128_i32_8 : i32
    %9 = arith.subi %7, %8 : i32
    %10 = arith.sitofp %9 : i32 to f32
    %c0_9 = arith.constant 0 : index
    %c0_10 = arith.constant 0 : index
    %11 = vector.load %arg12[%c0_9, %c0_10] : memref<128x128xf32, #tpu.memory_space<vmem>>, vector<128x128xf32>
    %12 = vector.broadcast %10 : f32 to vector<128x128xf32>
    %13 = arith.addf %11, %12 : vector<128x128xf32>
    %cst = arith.constant 0.000000e+00 : f32
    %14 = vector.broadcast %cst : f32 to vector<128x128xf32>
    %15 = arith.minimumf %13, %14 : vector<128x128xf32>
    %c1_i32 = arith.constant 1 : i32
    %16 = arith.cmpi eq, %arg3, %c1_i32 : i32
    %c0_i32_11 = arith.constant 0 : i32
    %17 = arith.addi %c0_i32_11, %arg1 : i32
    %18 = arith.index_cast %17 : i32 to index
    %19 = memref.load %arg4[%18] : memref<8xf32, #tpu.memory_space<smem>>
    %c0_12 = arith.constant 0 : index
    %c0_13 = arith.constant 0 : index
    %c0_14 = arith.constant 0 : index
    %c0_15 = arith.constant 0 : index
    %c0_16 = arith.constant 0 : index
    %20 = vector.load %arg5[%c0_12, %c0_13, %c0_14, %c0_15, %c0_16] : memref<1x1x2x128x16xbf16, #tpu.memory_space<vmem>>, vector<1x1x1x128x16xbf16>
    %21 = vector.shape_cast %20 : vector<1x1x1x128x16xbf16> to vector<128x16xbf16>
    %cst_17 = arith.constant dense<0.000000e+00> : vector<128x128xf32>
    %22 = tpu.matmul %21, %4, %cst_17 {dimension_numbers = #tpu.dot_dimension_numbers<[1], [0], [0], [1], [0, 0, 1, 1], [], []>} : vector<128x16xbf16>, vector<16x128xbf16>, vector<128x128xf32> -> vector<128x128xf32>
    %23 = vector.broadcast %19 : f32 to vector<128x128xf32>
    %24 = arith.mulf %15, %23 : vector<128x128xf32>
    %25 = arith.addf %22, %24 : vector<128x128xf32>
    %c0_18 = arith.constant 0 : index
    %c0_19 = arith.constant 0 : index
    %c0_20 = arith.constant 0 : index
    %26 = vector.load %arg9[%c0_18, %c0_19, %c0_20] : memref<2x128x1xf32, #tpu.memory_space<vmem>>, vector<1x128x1xf32>
    %27 = vector.shape_cast %26 : vector<1x128x1xf32> to vector<128x1xf32>
    %cst_21 = arith.constant dense<0xFF800000> : vector<128xf32>
    %28 = vector.multi_reduction <maximumf>, %25, %cst_21 [1] : vector<128x128xf32> to vector<128xf32>
    %29 = vector.shape_cast %28 : vector<128xf32> to vector<128x1xf32>
    %30 = arith.maximumf %27, %29 : vector<128x1xf32>
    %31 = arith.subf %27, %30 : vector<128x1xf32>
    %32 = math.exp %31 : vector<128x1xf32>
    %33 = vector.broadcast %30 : vector<128x1xf32> to vector<128x128xf32>
    %34 = arith.subf %25, %33 : vector<128x128xf32>
    %35 = arith.truncf %34 : vector<128x128xf32> to vector<128x128xbf16>
    %36 = math.exp %35 : vector<128x128xbf16>
    %37 = arith.extf %36 : vector<128x128xbf16> to vector<128x128xf32>
    %cst_22 = arith.constant dense<0.000000e+00> : vector<128xf32>
    %38 = vector.multi_reduction <add>, %37, %cst_22 [1] : vector<128x128xf32> to vector<128xf32>
    %39 = vector.shape_cast %38 : vector<128xf32> to vector<128x1xf32>
    %c0_23 = arith.constant 0 : index
    %c0_24 = arith.constant 0 : index
    %c0_25 = arith.constant 0 : index
    %40 = vector.load %arg10[%c0_23, %c0_24, %c0_25] : memref<2x128x1xf32, #tpu.memory_space<vmem>>, vector<1x128x1xf32>
    %41 = vector.shape_cast %40 : vector<1x128x1xf32> to vector<128x1xf32>
    %42 = arith.mulf %32, %41 : vector<128x1xf32>
    %43 = arith.addf %42, %39 : vector<128x1xf32>
    %c0_26 = arith.constant 0 : index
    %c0_27 = arith.constant 0 : index
    %c0_28 = arith.constant 0 : index
    %44 = vector.load %arg10[%c0_26, %c0_27, %c0_28] : memref<2x128x1xf32, #tpu.memory_space<vmem>>, vector<1x128x1xf32>
    %45 = vector.shape_cast %44 : vector<1x128x1xf32> to vector<128x1xf32>
    %46 = vector.shape_cast %43 : vector<128x1xf32> to vector<1x128x1xf32>
    tpu.vector_store %arg10[%c0_26, %c0_27, %c0_28], %46 {strides = array<i32>} : memref<2x128x1xf32, #tpu.memory_space<vmem>>, vector<1x128x1xf32>,
    %c0_29 = arith.constant 0 : index
    %c0_30 = arith.constant 0 : index
    %c0_31 = arith.constant 0 : index
    %47 = vector.load %arg11[%c0_29, %c0_30, %c0_31] : memref<2x128x16xf32, #tpu.memory_space<vmem>>, vector<1x128x16xf32>
    %48 = vector.shape_cast %47 : vector<1x128x16xf32> to vector<128x16xf32>
    %49 = vector.broadcast %32 : vector<128x1xf32> to vector<128x16xf32>
    %50 = arith.mulf %49, %48 : vector<128x16xf32>
    %cst_32 = arith.constant dense<0.000000e+00> : vector<128x16xf32>
    %51 = tpu.matmul %36, %6, %cst_32 {dimension_numbers = #tpu.dot_dimension_numbers<[1], [0], [0], [1], [0, 0, 1, 1], [], []>} : vector<128x128xbf16>, vector<128x16xbf16>, vector<128x16xf32> -> vector<128x16xf32>
    %52 = arith.addf %50, %51 : vector<128x16xf32>
    %c0_33 = arith.constant 0 : index
    %c0_34 = arith.constant 0 : index
    %c0_35 = arith.constant 0 : index
    %53 = vector.load %arg11[%c0_33, %c0_34, %c0_35] : memref<2x128x16xf32, #tpu.memory_space<vmem>>, vector<1x128x16xf32>
    %54 = vector.shape_cast %53 : vector<1x128x16xf32> to vector<128x16xf32>
    %55 = vector.shape_cast %52 : vector<128x16xf32> to vector<1x128x16xf32>
    tpu.vector_store %arg11[%c0_33, %c0_34, %c0_35], %55 {strides = array<i32>} : memref<2x128x16xf32, #tpu.memory_space<vmem>>, vector<1x128x16xf32>,
    %c0_36 = arith.constant 0 : index
    %c0_37 = arith.constant 0 : index
    %c0_38 = arith.constant 0 : index
    %56 = vector.load %arg9[%c0_36, %c0_37, %c0_38] : memref<2x128x1xf32, #tpu.memory_space<vmem>>, vector<1x128x1xf32>
    %57 = vector.shape_cast %56 : vector<1x128x1xf32> to vector<128x1xf32>
    %58 = vector.shape_cast %30 : vector<128x1xf32> to vector<1x128x1xf32>
    tpu.vector_store %arg9[%c0_36, %c0_37, %c0_38], %58 {strides = array<i32>} : memref<2x128x1xf32, #tpu.memory_space<vmem>>, vector<1x128x1xf32>,
    %c4_i32 = arith.constant 4 : i32
    %59 = arith.addi %c4_i32, %arg1 : i32
    %60 = arith.index_cast %59 : i32 to index
    %61 = memref.load %arg4[%60] : memref<8xf32, #tpu.memory_space<smem>>
    %c0_39 = arith.constant 0 : index
    %c0_40 = arith.constant 0 : index
    %c1 = arith.constant 1 : index
    %c0_41 = arith.constant 0 : index
    %c0_42 = arith.constant 0 : index
    %62 = vector.load %arg5[%c0_39, %c0_40, %c1, %c0_41, %c0_42] : memref<1x1x2x128x16xbf16, #tpu.memory_space<vmem>>, vector<1x1x1x128x16xbf16>
    %63 = vector.shape_cast %62 : vector<1x1x1x128x16xbf16> to vector<128x16xbf16>
    %cst_43 = arith.constant dense<0.000000e+00> : vector<128x128xf32>
    %64 = tpu.matmul %63, %4, %cst_43 {dimension_numbers = #tpu.dot_dimension_numbers<[1], [0], [0], [1], [0, 0, 1, 1], [], []>} : vector<128x16xbf16>, vector<16x128xbf16>, vector<128x128xf32> -> vector<128x128xf32>
    %65 = vector.broadcast %61 : f32 to vector<128x128xf32>
    %66 = arith.mulf %15, %65 : vector<128x128xf32>
    %67 = arith.addf %64, %66 : vector<128x128xf32>
    %c1_44 = arith.constant 1 : index
    %c0_45 = arith.constant 0 : index
    %c0_46 = arith.constant 0 : index
    %68 = vector.load %arg9[%c1_44, %c0_45, %c0_46] : memref<2x128x1xf32, #tpu.memory_space<vmem>>, vector<1x128x1xf32>
    %69 = vector.shape_cast %68 : vector<1x128x1xf32> to vector<128x1xf32>
    %cst_47 = arith.constant dense<0xFF800000> : vector<128xf32>
    %70 = vector.multi_reduction <maximumf>, %67, %cst_47 [1] : vector<128x128xf32> to vector<128xf32>
    %71 = vector.shape_cast %70 : vector<128xf32> to vector<128x1xf32>
    %72 = arith.maximumf %69, %71 : vector<128x1xf32>
    %73 = arith.subf %69, %72 : vector<128x1xf32>
    %74 = math.exp %73 : vector<128x1xf32>
    %75 = vector.broadcast %72 : vector<128x1xf32> to vector<128x128xf32>
    %76 = arith.subf %67, %75 : vector<128x128xf32>
    %77 = arith.truncf %76 : vector<128x128xf32> to vector<128x128xbf16>
    %78 = math.exp %77 : vector<128x128xbf16>
    %79 = arith.extf %78 : vector<128x128xbf16> to vector<128x128xf32>
    %cst_48 = arith.constant dense<0.000000e+00> : vector<128xf32>
    %80 = vector.multi_reduction <add>, %79, %cst_48 [1] : vector<128x128xf32> to vector<128xf32>
    %81 = vector.shape_cast %80 : vector<128xf32> to vector<128x1xf32>
    %c1_49 = arith.constant 1 : index
    %c0_50 = arith.constant 0 : index
    %c0_51 = arith.constant 0 : index
    %82 = vector.load %arg10[%c1_49, %c0_50, %c0_51] : memref<2x128x1xf32, #tpu.memory_space<vmem>>, vector<1x128x1xf32>
    %83 = vector.shape_cast %82 : vector<1x128x1xf32> to vector<128x1xf32>
    %84 = arith.mulf %74, %83 : vector<128x1xf32>
    %85 = arith.addf %84, %81 : vector<128x1xf32>
    %c1_52 = arith.constant 1 : index
    %c0_53 = arith.constant 0 : index
    %c0_54 = arith.constant 0 : index
    %86 = vector.load %arg10[%c1_52, %c0_53, %c0_54] : memref<2x128x1xf32, #tpu.memory_space<vmem>>, vector<1x128x1xf32>
    %87 = vector.shape_cast %86 : vector<1x128x1xf32> to vector<128x1xf32>
    %88 = vector.shape_cast %85 : vector<128x1xf32> to vector<1x128x1xf32>
    tpu.vector_store %arg10[%c1_52, %c0_53, %c0_54], %88 {strides = array<i32>} : memref<2x128x1xf32, #tpu.memory_space<vmem>>, vector<1x128x1xf32>,
    %c1_55 = arith.constant 1 : index
    %c0_56 = arith.constant 0 : index
    %c0_57 = arith.constant 0 : index
    %89 = vector.load %arg11[%c1_55, %c0_56, %c0_57] : memref<2x128x16xf32, #tpu.memory_space<vmem>>, vector<1x128x16xf32>
    %90 = vector.shape_cast %89 : vector<1x128x16xf32> to vector<128x16xf32>
    %91 = vector.broadcast %74 : vector<128x1xf32> to vector<128x16xf32>
    %92 = arith.mulf %91, %90 : vector<128x16xf32>
    %cst_58 = arith.constant dense<0.000000e+00> : vector<128x16xf32>
    %93 = tpu.matmul %78, %6, %cst_58 {dimension_numbers = #tpu.dot_dimension_numbers<[1], [0], [0], [1], [0, 0, 1, 1], [], []>} : vector<128x128xbf16>, vector<128x16xbf16>, vector<128x16xf32> -> vector<128x16xf32>
    %94 = arith.addf %92, %93 : vector<128x16xf32>
    %c1_59 = arith.constant 1 : index
    %c0_60 = arith.constant 0 : index
    %c0_61 = arith.constant 0 : index
    %95 = vector.load %arg11[%c1_59, %c0_60, %c0_61] : memref<2x128x16xf32, #tpu.memory_space<vmem>>, vector<1x128x16xf32>
    %96 = vector.shape_cast %95 : vector<1x128x16xf32> to vector<128x16xf32>
    %97 = vector.shape_cast %94 : vector<128x16xf32> to vector<1x128x16xf32>
    tpu.vector_store %arg11[%c1_59, %c0_60, %c0_61], %97 {strides = array<i32>} : memref<2x128x16xf32, #tpu.memory_space<vmem>>, vector<1x128x16xf32>,
    %c1_62 = arith.constant 1 : index
    %c0_63 = arith.constant 0 : index
    %c0_64 = arith.constant 0 : index
    %98 = vector.load %arg9[%c1_62, %c0_63, %c0_64] : memref<2x128x1xf32, #tpu.memory_space<vmem>>, vector<1x128x1xf32>
    %99 = vector.shape_cast %98 : vector<1x128x1xf32> to vector<128x1xf32>
    %100 = vector.shape_cast %72 : vector<128x1xf32> to vector<1x128x1xf32>
    tpu.vector_store %arg9[%c1_62, %c0_63, %c0_64], %100 {strides = array<i32>} : memref<2x128x1xf32, #tpu.memory_space<vmem>>, vector<1x128x1xf32>,
    %101 = arith.extui %16 : i1 to i32
    %c0_i32_65 = arith.constant 0 : i32
    %102 = arith.cmpi ne, %101, %c0_i32_65 : i32
    scf.if %102 {
      %c0_66 = arith.constant 0 : index
      %c0_67 = arith.constant 0 : index
      %c0_68 = arith.constant 0 : index
      %103 = vector.load %arg10[%c0_66, %c0_67, %c0_68] : memref<2x128x1xf32, #tpu.memory_space<vmem>>, vector<1x128x1xf32>
      %104 = vector.shape_cast %103 : vector<1x128x1xf32> to vector<128x1xf32>
      %105 = tpu.reciprocal %104 {approx = true} : vector<128x1xf32> -> vector<128x1xf32>
      %c0_69 = arith.constant 0 : index
      %c0_70 = arith.constant 0 : index
      %c0_71 = arith.constant 0 : index
      %106 = vector.load %arg11[%c0_69, %c0_70, %c0_71] : memref<2x128x16xf32, #tpu.memory_space<vmem>>, vector<1x128x16xf32>
      %107 = vector.shape_cast %106 : vector<1x128x16xf32> to vector<128x16xf32>
      %108 = vector.broadcast %105 : vector<128x1xf32> to vector<128x16xf32>
      %109 = arith.mulf %107, %108 : vector<128x16xf32>
      %110 = arith.truncf %109 : vector<128x16xf32> to vector<128x16xbf16>
      %c0_72 = arith.constant 0 : index
      %c0_73 = arith.constant 0 : index
      %c0_74 = arith.constant 0 : index
      %c0_75 = arith.constant 0 : index
      %c0_76 = arith.constant 0 : index
      %111 = vector.load %arg8[%c0_72, %c0_73, %c0_74, %c0_75, %c0_76] : memref<1x1x2x128x16xbf16, #tpu.memory_space<vmem>>, vector<1x1x1x128x16xbf16>
      %112 = vector.shape_cast %111 : vector<1x1x1x128x16xbf16> to vector<128x16xbf16>
      %113 = vector.shape_cast %110 : vector<128x16xbf16> to vector<1x1x1x128x16xbf16>
      tpu.vector_store %arg8[%c0_72, %c0_73, %c0_74, %c0_75, %c0_76], %113 {strides = array<i32>} : memref<1x1x2x128x16xbf16, #tpu.memory_space<vmem>>, vector<1x1x1x128x16xbf16>,
      %c1_77 = arith.constant 1 : index
      %c0_78 = arith.constant 0 : index
      %c0_79 = arith.constant 0 : index
      %114 = vector.load %arg10[%c1_77, %c0_78, %c0_79] : memref<2x128x1xf32, #tpu.memory_space<vmem>>, vector<1x128x1xf32>
      %115 = vector.shape_cast %114 : vector<1x128x1xf32> to vector<128x1xf32>
      %116 = tpu.reciprocal %115 {approx = true} : vector<128x1xf32> -> vector<128x1xf32>
      %c1_80 = arith.constant 1 : index
      %c0_81 = arith.constant 0 : index
      %c0_82 = arith.constant 0 : index
      %117 = vector.load %arg11[%c1_80, %c0_81, %c0_82] : memref<2x128x16xf32, #tpu.memory_space<vmem>>, vector<1x128x16xf32>
      %118 = vector.shape_cast %117 : vector<1x128x16xf32> to vector<128x16xf32>
      %119 = vector.broadcast %116 : vector<128x1xf32> to vector<128x16xf32>
      %120 = arith.mulf %118, %119 : vector<128x16xf32>
      %121 = arith.truncf %120 : vector<128x16xf32> to vector<128x16xbf16>
      %c0_83 = arith.constant 0 : index
      %c0_84 = arith.constant 0 : index
      %c1_85 = arith.constant 1 : index
      %c0_86 = arith.constant 0 : index
      %c0_87 = arith.constant 0 : index
      %122 = vector.load %arg8[%c0_83, %c0_84, %c1_85, %c0_86, %c0_87] : memref<1x1x2x128x16xbf16, #tpu.memory_space<vmem>>, vector<1x1x1x128x16xbf16>
      %123 = vector.shape_cast %122 : vector<1x1x1x128x16xbf16> to vector<128x16xbf16>
      %124 = vector.shape_cast %121 : vector<128x16xbf16> to vector<1x1x1x128x16xbf16>
      tpu.vector_store %arg8[%c0_83, %c0_84, %c1_85, %c0_86, %c0_87], %124 {strides = array<i32>} : memref<1x1x2x128x16xbf16, #tpu.memory_space<vmem>>, vector<1x1x1x128x16xbf16>,
    } else {
    }
    return
  }
  func.func @transform_0(%arg0: i32, %arg1: i32, %arg2: i32, %arg3: i32, %arg4: memref<8xf32, #tpu.memory_space<smem>>) -> (i32, i32, i32, i32, i32) {
    %c0_i32 = arith.constant 0 : i32
    %c0_i32_0 = arith.constant 0 : i32
    %c0_i32_1 = arith.constant 0 : i32
    return %arg0, %arg1, %c0_i32, %arg2, %c0_i32_0 : i32, i32, i32, i32, i32
  }
  func.func @transform_1(%arg0: i32, %arg1: i32, %arg2: i32, %arg3: i32, %arg4: memref<8xf32, #tpu.memory_space<smem>>) -> (i32, i32, i32, i32) {
    %c0_i32 = arith.constant 0 : i32
    %c0_i32_0 = arith.constant 0 : i32
    return %arg0, %arg1, %c0_i32, %arg3 : i32, i32, i32, i32
  }
  func.func @transform_2(%arg0: i32, %arg1: i32, %arg2: i32, %arg3: i32, %arg4: memref<8xf32, #tpu.memory_space<smem>>) -> (i32, i32, i32, i32) {
    %c0_i32 = arith.constant 0 : i32
    %c0_i32_0 = arith.constant 0 : i32
    return %arg0, %arg1, %arg3, %c0_i32 : i32, i32, i32, i32
  }
  func.func @transform_3(%arg0: i32, %arg1: i32, %arg2: i32, %arg3: i32, %arg4: memref<8xf32, #tpu.memory_space<smem>>) -> (i32, i32, i32, i32, i32) {
    %c0_i32 = arith.constant 0 : i32
    %c0_i32_0 = arith.constant 0 : i32
    %c0_i32_1 = arith.constant 0 : i32
    return %arg0, %arg1, %c0_i32, %arg2, %c0_i32_0 : i32, i32, i32, i32, i32
  }
}

module attributes {stable_mosaic.version = 11 : i64} {
  func.func @_matmul_bias_kernel(%arg0: i32, %arg1: i32, %arg2: i32, %arg3: memref<512x128xbf16, #tpu.memory_space<vmem>>, %arg4: memref<128x128xbf16, #tpu.memory_space<vmem>>, %arg5: memref<1x128xf32, #tpu.memory_space<vmem>>, %arg6: memref<512x128xf32, #tpu.memory_space<vmem>>, %arg7: memref<512x128xf32, #tpu.memory_space<vmem>>) attributes {dimension_semantics = [#tpu.dimension_semantics<parallel>, #tpu.dimension_semantics<parallel>, #tpu.dimension_semantics<arbitrary>], iteration_bounds = array<i64: 1, 1, 1>, scalar_prefetch = 0 : i64, scratch_operands = 1 : i64, tpu.core_type = #tpu.core_type<tc>, window_params = [{transform_indices = @transform_0, window_bounds = array<i64: 512, 128>}, {transform_indices = @transform_1, window_bounds = array<i64: 128, 128>}, {transform_indices = @transform_2, window_bounds = array<i64: 1, 128>}, {transform_indices = @transform_3, window_bounds = array<i64: 512, 128>}]} {
    %c0_i32 = arith.constant 0 : i32
    %0 = arith.cmpi eq, %arg2, %c0_i32 : i32
    %1 = arith.extui %0 : i1 to i32
    %c0_i32_0 = arith.constant 0 : i32
    %2 = arith.cmpi ne, %1, %c0_i32_0 : i32
    scf.if %2 {
      %cst_10 = arith.constant 0.000000e+00 : f32
      %12 = vector.broadcast %cst_10 : f32 to vector<512x128xf32>
      %c0_11 = arith.constant 0 : index
      %c0_12 = arith.constant 0 : index
      %13 = vector.load %arg7[%c0_11, %c0_12] : memref<512x128xf32, #tpu.memory_space<vmem>>, vector<512x128xf32>
      tpu.vector_store %arg7[%c0_11, %c0_12], %12 {strides = array<i32>} : memref<512x128xf32, #tpu.memory_space<vmem>>, vector<512x128xf32>,
    } else {
    }
    %c0 = arith.constant 0 : index
    %c0_1 = arith.constant 0 : index
    %3 = vector.load %arg7[%c0, %c0_1] : memref<512x128xf32, #tpu.memory_space<vmem>>, vector<512x128xf32>
    %c0_2 = arith.constant 0 : index
    %c0_3 = arith.constant 0 : index
    %4 = vector.load %arg3[%c0_2, %c0_3] : memref<512x128xbf16, #tpu.memory_space<vmem>>, vector<512x128xbf16>
    %c0_4 = arith.constant 0 : index
    %c0_5 = arith.constant 0 : index
    %5 = vector.load %arg4[%c0_4, %c0_5] : memref<128x128xbf16, #tpu.memory_space<vmem>>, vector<128x128xbf16>
    %cst = arith.constant dense<0.000000e+00> : vector<512x128xf32>
    %6 = tpu.matmul %4, %5, %cst {dimension_numbers = #tpu.dot_dimension_numbers<[1], [0], [0], [1], [0, 0, 1, 1], [], []>} : vector<512x128xbf16>, vector<128x128xbf16>, vector<512x128xf32> -> vector<512x128xf32>
    %7 = arith.addf %3, %6 : vector<512x128xf32>
    %c0_6 = arith.constant 0 : index
    %c0_7 = arith.constant 0 : index
    %8 = vector.load %arg7[%c0_6, %c0_7] : memref<512x128xf32, #tpu.memory_space<vmem>>, vector<512x128xf32>
    tpu.vector_store %arg7[%c0_6, %c0_7], %7 {strides = array<i32>} : memref<512x128xf32, #tpu.memory_space<vmem>>, vector<512x128xf32>,
    %c0_i32_8 = arith.constant 0 : i32
    %9 = arith.cmpi eq, %arg2, %c0_i32_8 : i32
    %10 = arith.extui %9 : i1 to i32
    %c0_i32_9 = arith.constant 0 : i32
    %11 = arith.cmpi ne, %10, %c0_i32_9 : i32
    scf.if %11 {
      %c0_10 = arith.constant 0 : index
      %c0_11 = arith.constant 0 : index
      %12 = vector.load %arg7[%c0_10, %c0_11] : memref<512x128xf32, #tpu.memory_space<vmem>>, vector<512x128xf32>
      %c0_12 = arith.constant 0 : index
      %c0_13 = arith.constant 0 : index
      %13 = vector.load %arg5[%c0_12, %c0_13] : memref<1x128xf32, #tpu.memory_space<vmem>>, vector<1x128xf32>
      %14 = vector.broadcast %13 : vector<1x128xf32> to vector<512x128xf32>
      %15 = arith.addf %12, %14 : vector<512x128xf32>
      %c0_14 = arith.constant 0 : index
      %c0_15 = arith.constant 0 : index
      %16 = vector.load %arg6[%c0_14, %c0_15] : memref<512x128xf32, #tpu.memory_space<vmem>>, vector<512x128xf32>
      tpu.vector_store %arg6[%c0_14, %c0_15], %15 {strides = array<i32>} : memref<512x128xf32, #tpu.memory_space<vmem>>, vector<512x128xf32>,
    } else {
    }
    return
  }
  func.func @transform_0(%arg0: i32, %arg1: i32, %arg2: i32) -> (i32, i32) {
    %c0_i32 = arith.constant 0 : i32
    return %arg0, %arg2 : i32, i32
  }
  func.func @transform_1(%arg0: i32, %arg1: i32, %arg2: i32) -> (i32, i32) {
    %c0_i32 = arith.constant 0 : i32
    return %arg2, %arg1 : i32, i32
  }
  func.func @transform_2(%arg0: i32, %arg1: i32, %arg2: i32) -> (i32, i32) {
    %c0_i32 = arith.constant 0 : i32
    %c0_i32_0 = arith.constant 0 : i32
    return %c0_i32, %arg1 : i32, i32
  }
  func.func @transform_3(%arg0: i32, %arg1: i32, %arg2: i32) -> (i32, i32) {
    %c0_i32 = arith.constant 0 : i32
    return %arg0, %arg1 : i32, i32
  }
}

</mosaic_0001>

<bundles_post_ra>
// kernel: decoder_gqa_alibi_forward.3
= control target key start
LH: loop header
LB: loop body
LE: loop exit
PB: predicated region body
PF: predicated region fallthrough
CT: control target
= control target key end

     0   :  { %v2065_v1 = vmov 0   ;;  %s2449_s1 = inlined_call_operand.vmem [shape: bf16[128,256], index: 1, kind: input, shape index: {}]   ;;  %s2450_s0 = inlined_call_operand.vmem [shape: bf16[512,128], index: 0, kind: input, shape index: {}]   ;;  %s2451_s2 = inlined_call_operand.vmem [shape: bf16[512,256], index: 2, kind: output, shape index: {}]  }
   0x1   :  { %v2009_v0 = vld [vmem:[%s2449_s1 + $0x74] ss:$8 sps:$4 sm:$0xff]   ;;  %656 = vmatprep.mubr.bf16.mxu0 %v2065_v1  ;;  %816 = vmatprep.mubr.bf16.mxu1 %v2065_v1  ;;  %v2011_v2 = vld [vmem:[%s2449_s1 + $0x70] ss:$8 sps:$4 sm:$0xff]   ;;  %v2012_v3 = vld [vmem:[%s2449_s1 + $0x64] ss:$8 sps:$4 sm:$0xff]  }
   0x2   :  { %624 = vmatprep.subr.bf16.mxu0 %v2009_v0  ;;  %1992 = vmatprep.subr.bf16.mxu1 %v2009_v0  ;;  %v2014_v4 = vld [vmem:[%s2449_s1 + $0x60] ss:$8 sps:$4 sm:$0xff]   ;;  %v2015_v5 = vld [vmem:[%s2449_s1 + $0x54] ss:$8 sps:$4 sm:$0xff]   ;;  %v2017_v6 = vld [vmem:[%s2449_s1 + $0x50] ss:$8 sps:$4 sm:$0xff]  }
   0x3   :  { %625 = vmatpush1.bf16.msra.mxu0 %v2011_v2  ;;  %2000 = vmatpush1.bf16.msra.mxu1 %v2011_v2  ;;  %v2018_v7 = vld [vmem:[%s2449_s1 + $0x44] ss:$8 sps:$4 sm:$0xff]   ;;  %v2020_v8 = vld [vmem:[%s2449_s1 + $0x40] ss:$8 sps:$4 sm:$0xff]   ;;  %v2021_v9 = vld [vmem:[%s2449_s1 + $0x34] ss:$8 sps:$4 sm:$0xff]  }
   0x4   :  { %626 = vmatprep.subr.bf16.mxu0 %v2012_v3  ;;  %1993 = vmatprep.subr.bf16.mxu1 %v2012_v3  ;;  %v2023_v10 = vld [vmem:[%s2449_s1 + $0x30] ss:$8 sps:$4 sm:$0xff]   ;;  %v2024_v11 = vld [vmem:[%s2449_s1 + $0x24] ss:$8 sps:$4 sm:$0xff]   ;;  %v2026_v12 = vld [vmem:[%s2449_s1 + $0x20] ss:$8 sps:$4 sm:$0xff]  }
   0x5   :  { %v2027_v13 = vld [vmem:[%s2449_s1 + $0x14] ss:$8 sps:$4 sm:$0xff]   ;;  %v2029_v14 = vld [vmem:[%s2449_s1 + $0x10] ss:$8 sps:$4 sm:$0xff]   ;;  %v2030_v15 = vld [vmem:[%s2449_s1 + $0x4] ss:$8 sps:$4 sm:$0xff]  }
   0x6   :  { %v2032_v16 = vld [vmem:[%s2449_s1] ss:$8 sps:$4 sm:$0xff]   ;;  %v2037_v21 = vld [vmem:[%s2450_s0 + $0x10] sm:$0xff]   ;;  %v2039_v23 = vld [vmem:[%s2450_s0 + $0x18] sm:$0xff]  }
   0x7   :  { %627 = vmatpush1.bf16.msra.mxu0 %v2014_v4  ;;  %2001 = vmatpush1.bf16.msra.mxu1 %v2014_v4  ;;  %v2033_v17 = vld [vmem:[%s2450_s0] sm:$0xff]   ;;  %v2035_v19 = vld [vmem:[%s2450_s0 + $0x8] sm:$0xff]   ;;  %v2038_v22 = vld [vmem:[%s2450_s0 + $0x90] sm:$0xff]  }
   0x8   :  { %628 = vmatprep.subr.bf16.mxu0 %v2015_v5  ;;  %1994 = vmatprep.subr.bf16.mxu1 %v2015_v5  ;;  %v2034_v18 = vld [vmem:[%s2450_s0 + $0x80] sm:$0xff]   ;;  %v2036_v20 = vld [vmem:[%s2450_s0 + $0x88] sm:$0xff]   ;;  %v2040_v24 = vld [vmem:[%s2450_s0 + $0x98] sm:$0xff]  }
   0x9   :  { %v2041_v25 = vld [vmem:[%s2450_s0 + $0x20] sm:$0xff]   ;;  %v2043_v27 = vld [vmem:[%s2450_s0 + $0x28] sm:$0xff]   ;;  %v2045_v29 = vld [vmem:[%s2450_s0 + $0x30] sm:$0xff]  }
   0xa   :  { %v2042_v26 = vld [vmem:[%s2450_s0 + $0xa0] sm:$0xff]   ;;  %v2044_v28 = vld [vmem:[%s2450_s0 + $0xa8] sm:$0xff]   ;;  %v2046_v30 = vld [vmem:[%s2450_s0 + $0xb0] sm:$0xff]  }
   0xb   :  { %629 = vmatpush1.bf16.msra.mxu0 %v2017_v6  ;;  %2002 = vmatpush1.bf16.msra.mxu1 %v2017_v6  ;;  %v2047_v31 = vld [vmem:[%s2450_s0 + $0x38] sm:$0xff]   ;;  %v2049_v33 = vld [vmem:[%s2450_s0 + $0x40] sm:$0xff]   ;;  %v2051_v35 = vld [vmem:[%s2450_s0 + $0x48] sm:$0xff]  }
   0xc   :  { %630 = vmatprep.subr.bf16.mxu0 %v2018_v7  ;;  %1995 = vmatprep.subr.bf16.mxu1 %v2018_v7  ;;  %v2048_v32 = vld [vmem:[%s2450_s0 + $0xb8] sm:$0xff]   ;;  %v2050_v34 = vld [vmem:[%s2450_s0 + $0xc0] sm:$0xff]   ;;  %v2052_v36 = vld [vmem:[%s2450_s0 + $0xc8] sm:$0xff]  }
   0xd   :  { %v2053_v37 = vld [vmem:[%s2450_s0 + $0x50] sm:$0xff]   ;;  %v2055_v39 = vld [vmem:[%s2450_s0 + $0x58] sm:$0xff]   ;;  %v2057_v41 = vld [vmem:[%s2450_s0 + $0x60] sm:$0xff]  }
   0xe   :  { %v2054_v38 = vld [vmem:[%s2450_s0 + $0xd0] sm:$0xff]   ;;  %v2056_v40 = vld [vmem:[%s2450_s0 + $0xd8] sm:$0xff]   ;;  %v2058_v42 = vld [vmem:[%s2450_s0 + $0xe0] sm:$0xff]  }
   0xf   :  { %631 = vmatpush1.bf16.msra.mxu0 %v2020_v8  ;;  %2003 = vmatpush1.bf16.msra.mxu1 %v2020_v8  ;;  %v2059_v43 = vld [vmem:[%s2450_s0 + $0x68] sm:$0xff]   ;;  %v2061_v45 = vld [vmem:[%s2450_s0 + $0x70] sm:$0xff]   ;;  %v2063_v47 = vld [vmem:[%s2450_s0 + $0x78] sm:$0xff]  }
  0x10   :  { %632 = vmatprep.subr.bf16.mxu0 %v2021_v9  ;;  %1996 = vmatprep.subr.bf16.mxu1 %v2021_v9  ;;  %v2060_v44 = vld [vmem:[%s2450_s0 + $0xe8] sm:$0xff]   ;;  %v2062_v46 = vld [vmem:[%s2450_s0 + $0xf0] sm:$0xff]   ;;  %v2064_v48 = vld [vmem:[%s2450_s0 + $0xf8] sm:$0xff]  }
  0x13   :  { %633 = vmatpush1.bf16.msra.mxu0 %v2023_v10  ;;  %2004 = vmatpush1.bf16.msra.mxu1 %v2023_v10 }
  0x14   :  { %634 = vmatprep.subr.bf16.mxu0 %v2024_v11  ;;  %1997 = vmatprep.subr.bf16.mxu1 %v2024_v11 }
  0x17   :  { %635 = vmatpush1.bf16.msra.mxu0 %v2026_v12  ;;  %2005 = vmatpush1.bf16.msra.mxu1 %v2026_v12 }
  0x18   :  { %636 = vmatprep.subr.bf16.mxu0 %v2027_v13  ;;  %1998 = vmatprep.subr.bf16.mxu1 %v2027_v13 }
  0x1b   :  { %637 = vmatpush1.bf16.msra.mxu0 %v2029_v14  ;;  %2006 = vmatpush1.bf16.msra.mxu1 %v2029_v14 }
  0x1c   :  { %638 = vmatprep.subr.bf16.mxu0 %v2030_v15  ;;  %1999 = vmatprep.subr.bf16.mxu1 %v2030_v15 }
  0x1f   :  { %639 = vmatpush1.bf16.msra.mxu0 %v2032_v16  ;;  %2007 = vmatpush1.bf16.msra.mxu1 %v2032_v16 }
  0x22   :  { %657 = vmatmul.mubr.bf16.vlgmr.msra.gmra.mxu0 %v2033_v17  ;;  %817 = vmatmul.mubr.bf16.vlgmr.msra.gmra.mxu1 %v2034_v18 }
  0x23   :  { %666 = vmatprep.mubr.bf16.mxu0 %v2065_v1  ;;  %826 = vmatprep.mubr.bf16.mxu1 %v2065_v1 }
  0x2a   :  { %667 = vmatmul.mubr.bf16.gmra.mxu0 %v2035_v19  ;;  %827 = vmatmul.mubr.bf16.gmra.mxu1 %v2036_v20 }
  0x2b   :  { %676 = vmatprep.mubr.bf16.mxu0 %v2065_v1  ;;  %836 = vmatprep.mubr.bf16.mxu1 %v2065_v1 }
  0x32   :  { %677 = vmatmul.mubr.bf16.gmra.mxu0 %v2037_v21  ;;  %837 = vmatmul.mubr.bf16.gmra.mxu1 %v2038_v22 }
  0x33   :  { %686 = vmatprep.mubr.bf16.mxu0 %v2065_v1  ;;  %846 = vmatprep.mubr.bf16.mxu1 %v2065_v1 }
  0x3a   :  { %687 = vmatmul.mubr.bf16.gmra.mxu0 %v2039_v23  ;;  %847 = vmatmul.mubr.bf16.gmra.mxu1 %v2040_v24 }
  0x3b   :  { %696 = vmatprep.mubr.bf16.mxu0 %v2065_v1  ;;  %856 = vmatprep.mubr.bf16.mxu1 %v2065_v1 }
  0x42   :  { %697 = vmatmul.mubr.bf16.gmra.mxu0 %v2041_v25  ;;  %857 = vmatmul.mubr.bf16.gmra.mxu1 %v2042_v26 }
  0x43   :  { %706 = vmatprep.mubr.bf16.mxu0 %v2065_v1  ;;  %866 = vmatprep.mubr.bf16.mxu1 %v2065_v1 }
  0x4a   :  { %707 = vmatmul.mubr.bf16.gmra.mxu0 %v2043_v27  ;;  %867 = vmatmul.mubr.bf16.gmra.mxu1 %v2044_v28 }
  0x4b   :  { %716 = vmatprep.mubr.bf16.mxu0 %v2065_v1  ;;  %876 = vmatprep.mubr.bf16.mxu1 %v2065_v1 }
  0x52   :  { %717 = vmatmul.mubr.bf16.gmra.mxu0 %v2045_v29  ;;  %877 = vmatmul.mubr.bf16.gmra.mxu1 %v2046_v30 }
  0x53   :  { %726 = vmatprep.mubr.bf16.mxu0 %v2065_v1  ;;  %886 = vmatprep.mubr.bf16.mxu1 %v2065_v1 }
  0x5a   :  { %727 = vmatmul.mubr.bf16.gmra.mxu0 %v2047_v31  ;;  %887 = vmatmul.mubr.bf16.gmra.mxu1 %v2048_v32 }
  0x5b   :  { %736 = vmatprep.mubr.bf16.mxu0 %v2065_v1  ;;  %896 = vmatprep.mubr.bf16.mxu1 %v2065_v1 }
  0x62   :  { %737 = vmatmul.mubr.bf16.gmra.mxu0 %v2049_v33  ;;  %897 = vmatmul.mubr.bf16.gmra.mxu1 %v2050_v34 }
  0x63   :  { %746 = vmatprep.mubr.bf16.mxu0 %v2065_v1  ;;  %906 = vmatprep.mubr.bf16.mxu1 %v2065_v1 }
  0x6a   :  { %747 = vmatmul.mubr.bf16.gmra.mxu0 %v2051_v35  ;;  %907 = vmatmul.mubr.bf16.gmra.mxu1 %v2052_v36 }
  0x6b   :  { %756 = vmatprep.mubr.bf16.mxu0 %v2065_v1  ;;  %916 = vmatprep.mubr.bf16.mxu1 %v2065_v1 }
  0x72   :  { %757 = vmatmul.mubr.bf16.gmra.mxu0 %v2053_v37  ;;  %917 = vmatmul.mubr.bf16.gmra.mxu1 %v2054_v38 }
  0x73   :  { %766 = vmatprep.mubr.bf16.mxu0 %v2065_v1  ;;  %926 = vmatprep.mubr.bf16.mxu1 %v2065_v1 }
  0x7a   :  { %767 = vmatmul.mubr.bf16.gmra.mxu0 %v2055_v39  ;;  %927 = vmatmul.mubr.bf16.gmra.mxu1 %v2056_v40 }
  0x7b   :  { %776 = vmatprep.mubr.bf16.mxu0 %v2065_v1  ;;  %936 = vmatprep.mubr.bf16.mxu1 %v2065_v1 }
  0x82   :  { %777 = vmatmul.mubr.bf16.gmra.mxu0 %v2057_v41  ;;  %937 = vmatmul.mubr.bf16.gmra.mxu1 %v2058_v42 }
  0x83   :  { %786 = vmatprep.mubr.bf16.mxu0 %v2065_v1  ;;  %946 = vmatprep.mubr.bf16.mxu1 %v2065_v1 }
  0x8a   :  { %787 = vmatmul.mubr.bf16.gmra.mxu0 %v2059_v43  ;;  %947 = vmatmul.mubr.bf16.gmra.mxu1 %v2060_v44 }
  0x8b   :  { %796 = vmatprep.mubr.bf16.mxu0 %v2065_v1  ;;  %956 = vmatprep.mubr.bf16.mxu1 %v2065_v1 }
  0x92   :  { %797 = vmatmul.mubr.bf16.gmra.mxu0 %v2061_v45  ;;  %957 = vmatmul.mubr.bf16.gmra.mxu1 %v2062_v46 }
  0x93   :  { %806 = vmatprep.mubr.bf16.mxu0 %v2065_v1  ;;  %966 = vmatprep.mubr.bf16.mxu1 %v2065_v1 }
  0x9a   :  { %807 = vmatmul.mubr.bf16.gmra.mxu0 %v2063_v47  ;;  %967 = vmatmul.mubr.bf16.gmra.mxu1 %v2064_v48 }
  0xe2   :  { %v658_v49 = vpop.f32.mrf.mxu0  ;;  %v818_v50 = vpop.f32.mrf.mxu1 }
  0xe4   :  { %v660_v51 = vpop.f32.mrf.mxu0  ;;  %v820_v52 = vpop.f32.mrf.mxu1 }
  0xe5   :  { %v1928_v53 = vpack.c.bf16 %v660_v51, %v658_v49  ;;  %v1960_v54 = vpack.c.bf16 %v820_v52, %v818_v50 }
  0xe6   :  { %v662_v55 = vpop.f32.mrf.mxu0  ;;  %v822_v56 = vpop.f32.mrf.mxu1 }
  0xe7   :  { %1748 = vst [vmem:[%s2451_s2] sm:$0xff] %v1928_v53  ;;  %1780 = vst [vmem:[%s2451_s2 + $0x100] sm:$0xff] %v1960_v54 }
  0xe8   :  { %v664_v57 = vpop.f32.mrf.mxu0  ;;  %v824_v58 = vpop.f32.mrf.mxu1 }
  0xe9   :  { %v1929_v59 = vpack.c.bf16 %v664_v57, %v662_v55  ;;  %v1961_v60 = vpack.c.bf16 %v824_v58, %v822_v56 }
  0xea   :  { %v668_v61 = vpop.f32.mrf.mxu0  ;;  %v828_v62 = vpop.f32.mrf.mxu1 }
  0xeb   :  { %1749 = vst [vmem:[%s2451_s2 + $0x8] sm:$0xff] %v1929_v59  ;;  %1781 = vst [vmem:[%s2451_s2 + $0x108] sm:$0xff] %v1961_v60 }
  0xec   :  { %v670_v63 = vpop.f32.mrf.mxu0  ;;  %v830_v0 = vpop.f32.mrf.mxu1 }
  0xed   :  { %v1930_v1 = vpack.c.bf16 %v670_v63, %v668_v61  ;;  %v1962_v2 = vpack.c.bf16 %v830_v0, %v828_v62 }
  0xee   :  { %v672_v3 = vpop.f32.mrf.mxu0  ;;  %v832_v4 = vpop.f32.mrf.mxu1 }
  0xef   :  { %1750 = vst [vmem:[%s2451_s2 + $0x10] sm:$0xff] %v1930_v1  ;;  %1782 = vst [vmem:[%s2451_s2 + $0x110] sm:$0xff] %v1962_v2 }
  0xf0   :  { %v674_v5 = vpop.f32.mrf.mxu0  ;;  %v834_v6 = vpop.f32.mrf.mxu1 }
  0xf1   :  { %v1931_v7 = vpack.c.bf16 %v674_v5, %v672_v3  ;;  %v1963_v8 = vpack.c.bf16 %v834_v6, %v832_v4 }
  0xf2   :  { %v678_v9 = vpop.f32.mrf.mxu0  ;;  %v838_v10 = vpop.f32.mrf.mxu1 }
  0xf3   :  { %1751 = vst [vmem:[%s2451_s2 + $0x18] sm:$0xff] %v1931_v7  ;;  %1783 = vst [vmem:[%s2451_s2 + $0x118] sm:$0xff] %v1963_v8 }
  0xf4   :  { %v680_v11 = vpop.f32.mrf.mxu0  ;;  %v840_v12 = vpop.f32.mrf.mxu1 }
  0xf5   :  { %v1932_v13 = vpack.c.bf16 %v680_v11, %v678_v9  ;;  %v1964_v14 = vpack.c.bf16 %v840_v12, %v838_v10 }
  0xf6   :  { %v682_v15 = vpop.f32.mrf.mxu0  ;;  %v842_v16 = vpop.f32.mrf.mxu1 }
  0xf7   :  { %1752 = vst [vmem:[%s2451_s2 + $0x20] sm:$0xff] %v1932_v13  ;;  %1784 = vst [vmem:[%s2451_s2 + $0x120] sm:$0xff] %v1964_v14 }
  0xf8   :  { %v684_v17 = vpop.f32.mrf.mxu0  ;;  %v844_v18 = vpop.f32.mrf.mxu1 }
  0xf9   :  { %v1933_v19 = vpack.c.bf16 %v684_v17, %v682_v15  ;;  %v1965_v20 = vpack.c.bf16 %v844_v18, %v842_v16 }
  0xfa   :  { %v688_v21 = vpop.f32.mrf.mxu0  ;;  %v848_v22 = vpop.f32.mrf.mxu1 }
  0xfb   :  { %1753 = vst [vmem:[%s2451_s2 + $0x28] sm:$0xff] %v1933_v19  ;;  %1785 = vst [vmem:[%s2451_s2 + $0x128] sm:$0xff] %v1965_v20 }
  0xfc   :  { %v690_v23 = vpop.f32.mrf.mxu0  ;;  %v850_v24 = vpop.f32.mrf.mxu1 }
  0xfd   :  { %v1934_v25 = vpack.c.bf16 %v690_v23, %v688_v21  ;;  %v1966_v26 = vpack.c.bf16 %v850_v24, %v848_v22 }
  0xfe   :  { %v692_v27 = vpop.f32.mrf.mxu0  ;;  %v852_v28 = vpop.f32.mrf.mxu1 }
  0xff   :  { %1754 = vst [vmem:[%s2451_s2 + $0x30] sm:$0xff] %v1934_v25  ;;  %1786 = vst [vmem:[%s2451_s2 + $0x130] sm:$0xff] %v1966_v26 }
 0x100   :  { %v694_v29 = vpop.f32.mrf.mxu0  ;;  %v854_v30 = vpop.f32.mrf.mxu1 }
 0x101   :  { %v1935_v31 = vpack.c.bf16 %v694_v29, %v692_v27  ;;  %v1967_v32 = vpack.c.bf16 %v854_v30, %v852_v28 }
 0x102   :  { %v698_v33 = vpop.f32.mrf.mxu0  ;;  %v858_v34 = vpop.f32.mrf.mxu1 }
 0x103   :  { %1755 = vst [vmem:[%s2451_s2 + $0x38] sm:$0xff] %v1935_v31  ;;  %1787 = vst [vmem:[%s2451_s2 + $0x138] sm:$0xff] %v1967_v32 }
 0x104   :  { %v700_v35 = vpop.f32.mrf.mxu0  ;;  %v860_v36 = vpop.f32.mrf.mxu1 }
 0x105   :  { %v1936_v37 = vpack.c.bf16 %v700_v35, %v698_v33  ;;  %v1968_v38 = vpack.c.bf16 %v860_v36, %v858_v34 }
 0x106   :  { %v702_v39 = vpop.f32.mrf.mxu0  ;;  %v862_v40 = vpop.f32.mrf.mxu1 }
 0x107   :  { %1756 = vst [vmem:[%s2451_s2 + $0x40] sm:$0xff] %v1936_v37  ;;  %1788 = vst [vmem:[%s2451_s2 + $0x140] sm:$0xff] %v1968_v38 }
 0x108   :  { %v704_v41 = vpop.f32.mrf.mxu0  ;;  %v864_v42 = vpop.f32.mrf.mxu1 }
 0x109   :  { %v1937_v43 = vpack.c.bf16 %v704_v41, %v702_v39  ;;  %v1969_v44 = vpack.c.bf16 %v864_v42, %v862_v40 }
 0x10a   :  { %v708_v45 = vpop.f32.mrf.mxu0  ;;  %v868_v46 = vpop.f32.mrf.mxu1 }
 0x10b   :  { %1757 = vst [vmem:[%s2451_s2 + $0x48] sm:$0xff] %v1937_v43  ;;  %1789 = vst [vmem:[%s2451_s2 + $0x148] sm:$0xff] %v1969_v44 }
 0x10c   :  { %v710_v47 = vpop.f32.mrf.mxu0  ;;  %v870_v48 = vpop.f32.mrf.mxu1 }
 0x10d   :  { %v1938_v49 = vpack.c.bf16 %v710_v47, %v708_v45  ;;  %v1970_v50 = vpack.c.bf16 %v870_v48, %v868_v46 }
 0x10e   :  { %v712_v51 = vpop.f32.mrf.mxu0  ;;  %v872_v52 = vpop.f32.mrf.mxu1 }
 0x10f   :  { %1758 = vst [vmem:[%s2451_s2 + $0x50] sm:$0xff] %v1938_v49  ;;  %1790 = vst [vmem:[%s2451_s2 + $0x150] sm:$0xff] %v1970_v50 }
 0x110   :  { %v714_v53 = vpop.f32.mrf.mxu0  ;;  %v874_v54 = vpop.f32.mrf.mxu1 }
 0x111   :  { %v1939_v55 = vpack.c.bf16 %v714_v53, %v712_v51  ;;  %v1971_v56 = vpack.c.bf16 %v874_v54, %v872_v52 }
 0x112   :  { %v718_v57 = vpop.f32.mrf.mxu0  ;;  %v878_v58 = vpop.f32.mrf.mxu1 }
 0x113   :  { %1759 = vst [vmem:[%s2451_s2 + $0x58] sm:$0xff] %v1939_v55  ;;  %1791 = vst [vmem:[%s2451_s2 + $0x158] sm:$0xff] %v1971_v56 }
 0x114   :  { %v720_v59 = vpop.f32.mrf.mxu0  ;;  %v880_v60 = vpop.f32.mrf.mxu1 }
 0x115   :  { %v1940_v61 = vpack.c.bf16 %v720_v59, %v718_v57  ;;  %v1972_v62 = vpack.c.bf16 %v880_v60, %v878_v58 }
 0x116   :  { %v722_v63 = vpop.f32.mrf.mxu0  ;;  %v882_v0 = vpop.f32.mrf.mxu1 }
 0x117   :  { %1760 = vst [vmem:[%s2451_s2 + $0x60] sm:$0xff] %v1940_v61  ;;  %1792 = vst [vmem:[%s2451_s2 + $0x160] sm:$0xff] %v1972_v62 }
 0x118   :  { %v724_v1 = vpop.f32.mrf.mxu0  ;;  %v884_v2 = vpop.f32.mrf.mxu1 }
 0x119   :  { %v1941_v3 = vpack.c.bf16 %v724_v1, %v722_v63  ;;  %v1973_v4 = vpack.c.bf16 %v884_v2, %v882_v0 }
 0x11a   :  { %v728_v5 = vpop.f32.mrf.mxu0  ;;  %v888_v6 = vpop.f32.mrf.mxu1 }
 0x11b   :  { %1761 = vst [vmem:[%s2451_s2 + $0x68] sm:$0xff] %v1941_v3  ;;  %1793 = vst [vmem:[%s2451_s2 + $0x168] sm:$0xff] %v1973_v4 }
 0x11c   :  { %v730_v7 = vpop.f32.mrf.mxu0  ;;  %v890_v8 = vpop.f32.mrf.mxu1 }
 0x11d   :  { %v1942_v9 = vpack.c.bf16 %v730_v7, %v728_v5  ;;  %v1974_v10 = vpack.c.bf16 %v890_v8, %v888_v6 }
 0x11e   :  { %v732_v11 = vpop.f32.mrf.mxu0  ;;  %v892_v12 = vpop.f32.mrf.mxu1 }
 0x11f   :  { %1762 = vst [vmem:[%s2451_s2 + $0x70] sm:$0xff] %v1942_v9  ;;  %1794 = vst [vmem:[%s2451_s2 + $0x170] sm:$0xff] %v1974_v10 }
 0x120   :  { %v734_v13 = vpop.f32.mrf.mxu0  ;;  %v894_v14 = vpop.f32.mrf.mxu1 }
 0x121   :  { %v1943_v15 = vpack.c.bf16 %v734_v13, %v732_v11  ;;  %v1975_v16 = vpack.c.bf16 %v894_v14, %v892_v12 }
 0x122   :  { %v738_v17 = vpop.f32.mrf.mxu0  ;;  %v898_v18 = vpop.f32.mrf.mxu1 }
 0x123   :  { %1763 = vst [vmem:[%s2451_s2 + $0x78] sm:$0xff] %v1943_v15  ;;  %1795 = vst [vmem:[%s2451_s2 + $0x178] sm:$0xff] %v1975_v16 }
 0x124   :  { %v740_v19 = vpop.f32.mrf.mxu0  ;;  %v900_v20 = vpop.f32.mrf.mxu1 }
 0x125   :  { %v1944_v21 = vpack.c.bf16 %v740_v19, %v738_v17  ;;  %v1976_v22 = vpack.c.bf16 %v900_v20, %v898_v18 }
 0x126   :  { %v742_v23 = vpop.f32.mrf.mxu0  ;;  %v902_v24 = vpop.f32.mrf.mxu1 }
 0x127   :  { %1764 = vst [vmem:[%s2451_s2 + $0x80] sm:$0xff] %v1944_v21  ;;  %1796 = vst [vmem:[%s2451_s2 + $0x180] sm:$0xff] %v1976_v22 }
 0x128   :  { %v744_v25 = vpop.f32.mrf.mxu0  ;;  %v904_v26 = vpop.f32.mrf.mxu1 }
 0x129   :  { %v1945_v27 = vpack.c.bf16 %v744_v25, %v742_v23  ;;  %v1977_v28 = vpack.c.bf16 %v904_v26, %v902_v24 }
 0x12a   :  { %v748_v29 = vpop.f32.mrf.mxu0  ;;  %v908_v30 = vpop.f32.mrf.mxu1 }
 0x12b   :  { %1765 = vst [vmem:[%s2451_s2 + $0x88] sm:$0xff] %v1945_v27  ;;  %1797 = vst [vmem:[%s2451_s2 + $0x188] sm:$0xff] %v1977_v28 }
 0x12c   :  { %v750_v31 = vpop.f32.mrf.mxu0  ;;  %v910_v32 = vpop.f32.mrf.mxu1 }
 0x12d   :  { %v1946_v33 = vpack.c.bf16 %v750_v31, %v748_v29  ;;  %v1978_v34 = vpack.c.bf16 %v910_v32, %v908_v30 }
 0x12e   :  { %v752_v35 = vpop.f32.mrf.mxu0  ;;  %v912_v36 = vpop.f32.mrf.mxu1 }
 0x12f   :  { %1766 = vst [vmem:[%s2451_s2 + $0x90] sm:$0xff] %v1946_v33  ;;  %1798 = vst [vmem:[%s2451_s2 + $0x190] sm:$0xff] %v1978_v34 }
 0x130   :  { %v754_v37 = vpop.f32.mrf.mxu0  ;;  %v914_v38 = vpop.f32.mrf.mxu1 }
 0x131   :  { %v1947_v39 = vpack.c.bf16 %v754_v37, %v752_v35  ;;  %v1979_v40 = vpack.c.bf16 %v914_v38, %v912_v36 }
 0x132   :  { %v758_v41 = vpop.f32.mrf.mxu0  ;;  %v918_v42 = vpop.f32.mrf.mxu1 }
 0x133   :  { %1767 = vst [vmem:[%s2451_s2 + $0x98] sm:$0xff] %v1947_v39  ;;  %1799 = vst [vmem:[%s2451_s2 + $0x198] sm:$0xff] %v1979_v40 }
 0x134   :  { %v760_v43 = vpop.f32.mrf.mxu0  ;;  %v920_v44 = vpop.f32.mrf.mxu1 }
 0x135   :  { %v1948_v45 = vpack.c.bf16 %v760_v43, %v758_v41  ;;  %v1980_v46 = vpack.c.bf16 %v920_v44, %v918_v42 }
 0x136   :  { %v762_v47 = vpop.f32.mrf.mxu0  ;;  %v922_v48 = vpop.f32.mrf.mxu1 }
 0x137   :  { %1768 = vst [vmem:[%s2451_s2 + $0xa0] sm:$0xff] %v1948_v45  ;;  %1800 = vst [vmem:[%s2451_s2 + $0x1a0] sm:$0xff] %v1980_v46 }
 0x138   :  { %v764_v49 = vpop.f32.mrf.mxu0  ;;  %v924_v50 = vpop.f32.mrf.mxu1 }
 0x139   :  { %v1949_v51 = vpack.c.bf16 %v764_v49, %v762_v47  ;;  %v1981_v52 = vpack.c.bf16 %v924_v50, %v922_v48 }
 0x13a   :  { %v768_v53 = vpop.f32.mrf.mxu0  ;;  %v928_v54 = vpop.f32.mrf.mxu1 }
 0x13b   :  { %1769 = vst [vmem:[%s2451_s2 + $0xa8] sm:$0xff] %v1949_v51  ;;  %1801 = vst [vmem:[%s2451_s2 + $0x1a8] sm:$0xff] %v1981_v52 }
 0x13c   :  { %v770_v55 = vpop.f32.mrf.mxu0  ;;  %v930_v56 = vpop.f32.mrf.mxu1 }
 0x13d   :  { %v1950_v57 = vpack.c.bf16 %v770_v55, %v768_v53  ;;  %v1982_v58 = vpack.c.bf16 %v930_v56, %v928_v54 }
 0x13e   :  { %v772_v59 = vpop.f32.mrf.mxu0  ;;  %v932_v60 = vpop.f32.mrf.mxu1 }
 0x13f   :  { %1770 = vst [vmem:[%s2451_s2 + $0xb0] sm:$0xff] %v1950_v57  ;;  %1802 = vst [vmem:[%s2451_s2 + $0x1b0] sm:$0xff] %v1982_v58 }
 0x140   :  { %v774_v61 = vpop.f32.mrf.mxu0  ;;  %v934_v62 = vpop.f32.mrf.mxu1 }
 0x141   :  { %v1951_v63 = vpack.c.bf16 %v774_v61, %v772_v59  ;;  %v1983_v0 = vpack.c.bf16 %v934_v62, %v932_v60 }
 0x142   :  { %v778_v1 = vpop.f32.mrf.mxu0  ;;  %v938_v2 = vpop.f32.mrf.mxu1 }
 0x143   :  { %1771 = vst [vmem:[%s2451_s2 + $0xb8] sm:$0xff] %v1951_v63  ;;  %1803 = vst [vmem:[%s2451_s2 + $0x1b8] sm:$0xff] %v1983_v0 }
 0x144   :  { %v780_v3 = vpop.f32.mrf.mxu0  ;;  %v940_v4 = vpop.f32.mrf.mxu1 }
 0x145   :  { %v1952_v5 = vpack.c.bf16 %v780_v3, %v778_v1  ;;  %v1984_v6 = vpack.c.bf16 %v940_v4, %v938_v2 }
 0x146   :  { %v782_v7 = vpop.f32.mrf.mxu0  ;;  %v942_v8 = vpop.f32.mrf.mxu1 }
 0x147   :  { %1772 = vst [vmem:[%s2451_s2 + $0xc0] sm:$0xff] %v1952_v5  ;;  %1804 = vst [vmem:[%s2451_s2 + $0x1c0] sm:$0xff] %v1984_v6 }
 0x148   :  { %v784_v9 = vpop.f32.mrf.mxu0  ;;  %v944_v10 = vpop.f32.mrf.mxu1 }
 0x149   :  { %v1953_v11 = vpack.c.bf16 %v784_v9, %v782_v7  ;;  %v1985_v12 = vpack.c.bf16 %v944_v10, %v942_v8 }
 0x14a   :  { %v788_v13 = vpop.f32.mrf.mxu0  ;;  %v948_v14 = vpop.f32.mrf.mxu1 }
 0x14b   :  { %1773 = vst [vmem:[%s2451_s2 + $0xc8] sm:$0xff] %v1953_v11  ;;  %1805 = vst [vmem:[%s2451_s2 + $0x1c8] sm:$0xff] %v1985_v12 }
 0x14c   :  { %v790_v15 = vpop.f32.mrf.mxu0  ;;  %v950_v16 = vpop.f32.mrf.mxu1 }
 0x14d   :  { %v1954_v17 = vpack.c.bf16 %v790_v15, %v788_v13  ;;  %v1986_v18 = vpack.c.bf16 %v950_v16, %v948_v14 }
 0x14e   :  { %v792_v19 = vpop.f32.mrf.mxu0  ;;  %v952_v20 = vpop.f32.mrf.mxu1 }
 0x14f   :  { %1774 = vst [vmem:[%s2451_s2 + $0xd0] sm:$0xff] %v1954_v17  ;;  %1806 = vst [vmem:[%s2451_s2 + $0x1d0] sm:$0xff] %v1986_v18 }
 0x150   :  { %v794_v21 = vpop.f32.mrf.mxu0  ;;  %v954_v22 = vpop.f32.mrf.mxu1 }
 0x151   :  { %v1955_v23 = vpack.c.bf16 %v794_v21, %v792_v19  ;;  %v1987_v24 = vpack.c.bf16 %v954_v22, %v952_v20 }
 0x152   :  { %v798_v25 = vpop.f32.mrf.mxu0  ;;  %v958_v26 = vpop.f32.mrf.mxu1 }
 0x153   :  { %1775 = vst [vmem:[%s2451_s2 + $0xd8] sm:$0xff] %v1955_v23  ;;  %1807 = vst [vmem:[%s2451_s2 + $0x1d8] sm:$0xff] %v1987_v24 }
 0x154   :  { %v800_v27 = vpop.f32.mrf.mxu0  ;;  %v960_v28 = vpop.f32.mrf.mxu1 }
 0x155   :  { %v1956_v29 = vpack.c.bf16 %v800_v27, %v798_v25  ;;  %v1988_v30 = vpack.c.bf16 %v960_v28, %v958_v26 }
 0x156   :  { %v802_v31 = vpop.f32.mrf.mxu0  ;;  %v962_v32 = vpop.f32.mrf.mxu1 }
 0x157   :  { %1776 = vst [vmem:[%s2451_s2 + $0xe0] sm:$0xff] %v1956_v29  ;;  %1808 = vst [vmem:[%s2451_s2 + $0x1e0] sm:$0xff] %v1988_v30 }
 0x158   :  { %v804_v33 = vpop.f32.mrf.mxu0  ;;  %v964_v34 = vpop.f32.mrf.mxu1 }
 0x159   :  { %v1957_v35 = vpack.c.bf16 %v804_v33, %v802_v31  ;;  %v1989_v36 = vpack.c.bf16 %v964_v34, %v962_v32 }
 0x15a   :  { %v808_v37 = vpop.f32.mrf.mxu0  ;;  %v968_v38 = vpop.f32.mrf.mxu1 }
 0x15b   :  { %1777 = vst [vmem:[%s2451_s2 + $0xe8] sm:$0xff] %v1957_v35  ;;  %1809 = vst [vmem:[%s2451_s2 + $0x1e8] sm:$0xff] %v1989_v36 }
 0x15c   :  { %v810_v39 = vpop.f32.mrf.mxu0  ;;  %v970_v40 = vpop.f32.mrf.mxu1 }
 0x15d   :  { %v1958_v41 = vpack.c.bf16 %v810_v39, %v808_v37  ;;  %v1990_v42 = vpack.c.bf16 %v970_v40, %v968_v38 }
 0x15e   :  { %v812_v43 = vpop.f32.mrf.mxu0  ;;  %v972_v44 = vpop.f32.mrf.mxu1 }
 0x15f   :  { %1778 = vst [vmem:[%s2451_s2 + $0xf0] sm:$0xff] %v1958_v41  ;;  %1810 = vst [vmem:[%s2451_s2 + $0x1f0] sm:$0xff] %v1990_v42 }
 0x160   :  { %v814_v45 = vpop.f32.mrf.mxu0  ;;  %v974_v46 = vpop.f32.mrf.mxu1 }
 0x161   :  { %v1959_v47 = vpack.c.bf16 %v814_v45, %v812_v43  ;;  %v1991_v48 = vpack.c.bf16 %v974_v46, %v972_v44 }
 0x163   :  { %1779 = vst [vmem:[%s2451_s2 + $0xf8] sm:$0xff] %v1959_v47  ;;  %1811 = vst [vmem:[%s2451_s2 + $0x1f8] sm:$0xff] %v1991_v48 }

// kernel: decoder_gqa_alibi_forward.5
= control target key start
LH: loop header
LB: loop body
LE: loop exit
PB: predicated region body
PF: predicated region fallthrough
CT: control target
= control target key end

     0   :  { %s1560_s0 = inlined_call_operand.vmem [shape: bf16[512,128], index: 0, kind: input, shape index: {}]   ;;  %s1561_s1 = inlined_call_operand.vmem [shape: bf16[128,128], index: 1, kind: input, shape index: {}]   ;;  %s1562_s2 = inlined_call_operand.vmem [shape: f32[1,128], index: 2, kind: input, shape index: {}]   ;;  %s1563_s3 = inlined_call_operand.hbm [shape: f32[512,128], index: 3, kind: output, shape index: {}]  }
   0x1   :  { %v1283_v0 = vld [vmem:[%s1561_s1 + $0x38] sm:$0xff]   ;;  %v1284_v1 = vld [vmem:[%s1561_s1 + $0x30] sm:$0xff]   ;;  %v1285_v2 = vld [vmem:[%s1561_s1 + $0x28] sm:$0xff]  }
   0x2   :  { %1184 = vmatprep.subr.bf16.mxu0 %v1283_v0  ;;  %1264 = vmatprep.subr.bf16.mxu1 %v1283_v0  ;;  %v1286_v3 = vld [vmem:[%s1561_s1 + $0x20] sm:$0xff]   ;;  %v1287_v6 = vld [vmem:[%s1561_s1 + $0x18] sm:$0xff]   ;;  %v1288_v7 = vld [vmem:[%s1561_s1 + $0x10] sm:$0xff]  }
   0x3   :  { %1185 = vmatpush3.bf16.msra.mxu0 %v1283_v0  ;;  %1272 = vmatpush3.bf16.msra.mxu1 %v1283_v0  ;;  %v1291_v4 = vld [vmem:[%s1560_s0] sm:$0xff]   ;;  %v1289_v8 = vld [vmem:[%s1561_s1 + $0x8] sm:$0xff]   ;;  %v1295_v12 = vld [vmem:[%s1560_s0 + $0x10] sm:$0xff]  }
   0x4   :  { %1186 = vmatprep.subr.bf16.mxu0 %v1284_v1  ;;  %1265 = vmatprep.subr.bf16.mxu1 %v1284_v1  ;;  %v1292_v5 = vld [vmem:[%s1560_s0 + $0x80] sm:$0xff]   ;;  %v1293_v10 = vld [vmem:[%s1560_s0 + $0x8] sm:$0xff]   ;;  %v1296_v13 = vld [vmem:[%s1560_s0 + $0x90] sm:$0xff]  }
   0x5   :  { %1200 = vmatprep.mubr.bf16.mxu0 %v1291_v4  ;;  %1232 = vmatprep.mubr.bf16.mxu1 %v1292_v5  ;;  %v1290_v9 = vld [vmem:[%s1561_s1] sm:$0xff]   ;;  %v1294_v11 = vld [vmem:[%s1560_s0 + $0x88] sm:$0xff]   ;;  %v1297_v14 = vld [vmem:[%s1560_s0 + $0x18] sm:$0xff]  }
   0x6   :  { %v1298_v15 = vld [vmem:[%s1560_s0 + $0x98] sm:$0xff]   ;;  %v1299_v16 = vld [vmem:[%s1560_s0 + $0x20] sm:$0xff]  }
   0x7   :  { %1187 = vmatpush3.bf16.msra.mxu0 %v1284_v1  ;;  %1273 = vmatpush3.bf16.msra.mxu1 %v1284_v1  ;;  %v1300_v17 = vld [vmem:[%s1560_s0 + $0xa0] sm:$0xff]  }
   0x8   :  { %1188 = vmatprep.subr.bf16.mxu0 %v1285_v2  ;;  %1266 = vmatprep.subr.bf16.mxu1 %v1285_v2 }
   0xb   :  { %1189 = vmatpush3.bf16.msra.mxu0 %v1285_v2  ;;  %1274 = vmatpush3.bf16.msra.mxu1 %v1285_v2 }
   0xc   :  { %1190 = vmatprep.subr.bf16.mxu0 %v1286_v3  ;;  %1267 = vmatprep.subr.bf16.mxu1 %v1286_v3 }
   0xf   :  { %1191 = vmatpush3.bf16.msra.mxu0 %v1286_v3  ;;  %1275 = vmatpush3.bf16.msra.mxu1 %v1286_v3 }
  0x10   :  { %1192 = vmatprep.subr.bf16.mxu0 %v1287_v6  ;;  %1268 = vmatprep.subr.bf16.mxu1 %v1287_v6 }
  0x13   :  { %1193 = vmatpush3.bf16.msra.mxu0 %v1287_v6  ;;  %1276 = vmatpush3.bf16.msra.mxu1 %v1287_v6 }
  0x14   :  { %1194 = vmatprep.subr.bf16.mxu0 %v1288_v7  ;;  %1269 = vmatprep.subr.bf16.mxu1 %v1288_v7 }
  0x17   :  { %1195 = vmatpush3.bf16.msra.mxu0 %v1288_v7  ;;  %1277 = vmatpush3.bf16.msra.mxu1 %v1288_v7 }
  0x18   :  { %1196 = vmatprep.subr.bf16.mxu0 %v1289_v8  ;;  %1270 = vmatprep.subr.bf16.mxu1 %v1289_v8 }
  0x1b   :  { %1197 = vmatpush3.bf16.msra.mxu0 %v1289_v8  ;;  %1278 = vmatpush3.bf16.msra.mxu1 %v1289_v8 }
  0x1c   :  { %1198 = vmatprep.subr.bf16.mxu0 %v1290_v9  ;;  %1271 = vmatprep.subr.bf16.mxu1 %v1290_v9 }
  0x1f   :  { %1199 = vmatpush3.bf16.msra.mxu0 %v1290_v9  ;;  %1279 = vmatpush3.bf16.msra.mxu1 %v1290_v9 }
  0x22   :  { %1201 = vmatmul.mubr.bf16.vlgmr.msra.gmra.mxu0 %v1293_v10  ;;  %1233 = vmatmul.mubr.bf16.vlgmr.msra.gmra.mxu1 %v1294_v11 }
  0x23   :  { %1204 = vmatprep.mubr.bf16.mxu0 %v1295_v12  ;;  %1236 = vmatprep.mubr.bf16.mxu1 %v1296_v13 }
  0x24   :  { %8 = vsyncpa [#allocation4], 0  ;;  %v1301_v18 = vld [vmem:[%s1560_s0 + $0x28] sm:$0xff]   ;;  %v1303_v20 = vld [vmem:[%s1560_s0 + $0x30] sm:$0xff]  }
  0x25   :  { %v1302_v19 = vld [vmem:[%s1560_s0 + $0xa8] sm:$0xff]   ;;  %v1304_v21 = vld [vmem:[%s1560_s0 + $0xb0] sm:$0xff]   ;;  %v1305_v22 = vld [vmem:[%s1560_s0 + $0x38] sm:$0xff]  }
  0x26   :  { %v1306_v23 = vld [vmem:[%s1560_s0 + $0xb8] sm:$0xff]   ;;  %v1307_v24 = vld [vmem:[%s1560_s0 + $0x40] sm:$0xff]   ;;  %v1309_v26 = vld [vmem:[%s1560_s0 + $0x48] sm:$0xff]  }
  0x27   :  { %v1308_v25 = vld [vmem:[%s1560_s0 + $0xc0] sm:$0xff]   ;;  %v1310_v27 = vld [vmem:[%s1560_s0 + $0xc8] sm:$0xff]   ;;  %v1311_v28 = vld [vmem:[%s1560_s0 + $0x50] sm:$0xff]  }
  0x28   :  { %v1312_v29 = vld [vmem:[%s1560_s0 + $0xd0] sm:$0xff]   ;;  %v1313_v30 = vld [vmem:[%s1560_s0 + $0x58] sm:$0xff]   ;;  %v1315_v32 = vld [vmem:[%s1560_s0 + $0x60] sm:$0xff]  }
  0x29   :  { %v1314_v31 = vld [vmem:[%s1560_s0 + $0xd8] sm:$0xff]   ;;  %v1316_v33 = vld [vmem:[%s1560_s0 + $0xe0] sm:$0xff]   ;;  %v1317_v34 = vld [vmem:[%s1560_s0 + $0x68] sm:$0xff]  }
  0x2a   :  { %1205 = vmatmul.mubr.bf16.gmra.mxu0 %v1297_v14  ;;  %1237 = vmatmul.mubr.bf16.gmra.mxu1 %v1298_v15  ;;  %v1318_v35 = vld [vmem:[%s1560_s0 + $0xe8] sm:$0xff]   ;;  %v1319_v36 = vld [vmem:[%s1560_s0 + $0x70] sm:$0xff]   ;;  %v1321_v38 = vld [vmem:[%s1560_s0 + $0x78] sm:$0xff]  }
  0x2b   :  { %1208 = vmatprep.mubr.bf16.mxu0 %v1299_v16  ;;  %1240 = vmatprep.mubr.bf16.mxu1 %v1300_v17  ;;  %v1320_v37 = vld [vmem:[%s1560_s0 + $0xf0] sm:$0xff]   ;;  %v1322_v39 = vld [vmem:[%s1560_s0 + $0xf8] sm:$0xff]   ;;  %v1491_v40 = vld [vmem:[%s1562_s2] ss:$0 sm:$0xff]  ;;  %s1345_s0 = smov [#allocation3]  }
  0x2c   :  { %s1092_s2 = sshll.u32 %s1345_s0, 4  ;;  %s1093_s2 = int_to_ptr.vmem [resolvable:$true] %s1092_s2 }
  0x2d   :  { %s1323_s11 = scalar_lea.vmem %s1093_s2, 8192  ;;  %p1328_p1 = scmp.lt.s32.totalorder %s1093_s2, %s1093_s2 }
  0x2e   :  { %p1324_p0 = scmp.ne.s32.totalorder %s1093_s2, %s1323_s11  ;;  %p1329_p2 = scmp.lt.s32.totalorder %s1323_s11, %s1323_s11 }
  0x30   :  { %p1330_p3 = por %p1329_p2, %p1328_p1 }
  0x32   :  { %1209 = vmatmul.mubr.bf16.gmra.mxu0 %v1301_v18  ;;  %1241 = vmatmul.mubr.bf16.gmra.mxu1 %v1302_v19  ;;  %p1331_p4 = pnand %p1330_p3, %p1324_p0 }
  0x33   :  { %1212 = vmatprep.mubr.bf16.mxu0 %v1303_v20  ;;  %1244 = vmatprep.mubr.bf16.mxu1 %v1304_v21 }
  0x3a   :  { %1213 = vmatmul.mubr.bf16.gmra.mxu0 %v1305_v22  ;;  %1245 = vmatmul.mubr.bf16.gmra.mxu1 %v1306_v23 }
  0x3b   :  { %1216 = vmatprep.mubr.bf16.mxu0 %v1307_v24  ;;  %1248 = vmatprep.mubr.bf16.mxu1 %v1308_v25 }
  0x42   :  { %1217 = vmatmul.mubr.bf16.gmra.mxu0 %v1309_v26  ;;  %1249 = vmatmul.mubr.bf16.gmra.mxu1 %v1310_v27 }
  0x43   :  { %1220 = vmatprep.mubr.bf16.mxu0 %v1311_v28  ;;  %1252 = vmatprep.mubr.bf16.mxu1 %v1312_v29 }
  0x4a   :  { %1221 = vmatmul.mubr.bf16.gmra.mxu0 %v1313_v30  ;;  %1253 = vmatmul.mubr.bf16.gmra.mxu1 %v1314_v31 }
  0x4b   :  { %1224 = vmatprep.mubr.bf16.mxu0 %v1315_v32  ;;  %1256 = vmatprep.mubr.bf16.mxu1 %v1316_v33 }
  0x52   :  { %1225 = vmatmul.mubr.bf16.gmra.mxu0 %v1317_v34  ;;  %1257 = vmatmul.mubr.bf16.gmra.mxu1 %v1318_v35 }
  0x53   :  { %1228 = vmatprep.mubr.bf16.mxu0 %v1319_v36  ;;  %1260 = vmatprep.mubr.bf16.mxu1 %v1320_v37 }
  0x5a   :  { %1229 = vmatmul.mubr.bf16.gmra.mxu0 %v1321_v38  ;;  %1261 = vmatmul.mubr.bf16.gmra.mxu1 %v1322_v39 }
  0xe2   :  { %v1202_v41 = vpop.f32.mrf.mxu0  ;;  %v1234_v42 = vpop.f32.mrf.mxu1 }
  0xe3   :  { %v961_v43 = vadd.f32 %v1202_v41, %v1491_v40  ;;  %v993_v44 = vadd.f32 %v1234_v42, %v1491_v40 }
  0xe4   :  { %v502_v45 = vpop.f32.mrf.mxu0  ;;  %v630_v46 = vpop.f32.mrf.mxu1 }
  0xe5   :  { %1025 = vst [vmem:[#allocation3 + $0x10] sm:$0xff] %v961_v43  ;;  %1057 = vst [vmem:[#allocation3 + $0x110] sm:$0xff] %v993_v44  ;;  %v959_v47 = vadd.f32 %v1491_v40, %v502_v45  ;;  %v991_v48 = vadd.f32 %v1491_v40, %v630_v46 }
  0xe6   :  { %v1203_v49 = vpop.f32.mrf.mxu0  ;;  %v1235_v50 = vpop.f32.mrf.mxu1 }
  0xe7   :  { %1023 = vst [vmem:[#allocation3] sm:$0xff] %v959_v47  ;;  %1055 = vst [vmem:[#allocation3 + $0x100] sm:$0xff] %v991_v48  ;;  %v962_v51 = vadd.f32 %v1203_v49, %v1491_v40  ;;  %v994_v52 = vadd.f32 %v1235_v50, %v1491_v40 }
  0xe8   :  { %v505_v53 = vpop.f32.mrf.mxu0  ;;  %v633_v54 = vpop.f32.mrf.mxu1 }
  0xe9   :  { %1026 = vst [vmem:[#allocation3 + $0x18] sm:$0xff] %v962_v51  ;;  %1058 = vst [vmem:[#allocation3 + $0x118] sm:$0xff] %v994_v52  ;;  %v960_v55 = vadd.f32 %v1491_v40, %v505_v53  ;;  %v992_v56 = vadd.f32 %v1491_v40, %v633_v54 }
  0xea   :  { %v1206_v57 = vpop.f32.mrf.mxu0  ;;  %v1238_v58 = vpop.f32.mrf.mxu1 }
  0xeb   :  { %1024 = vst [vmem:[#allocation3 + $0x8] sm:$0xff] %v960_v55  ;;  %1056 = vst [vmem:[#allocation3 + $0x108] sm:$0xff] %v992_v56  ;;  %v965_v59 = vadd.f32 %v1206_v57, %v1491_v40  ;;  %v997_v60 = vadd.f32 %v1238_v58, %v1491_v40 }
  0xec   :  { %v518_v61 = vpop.f32.mrf.mxu0  ;;  %v646_v62 = vpop.f32.mrf.mxu1 }
  0xed   :  { %1029 = vst [vmem:[#allocation3 + $0x30] sm:$0xff] %v965_v59  ;;  %1061 = vst [vmem:[#allocation3 + $0x130] sm:$0xff] %v997_v60  ;;  %v963_v63 = vadd.f32 %v1491_v40, %v518_v61  ;;  %v995_v0 = vadd.f32 %v1491_v40, %v646_v62 }
  0xee   :  { %v1207_v1 = vpop.f32.mrf.mxu0  ;;  %v1239_v2 = vpop.f32.mrf.mxu1 }
  0xef   :  { %1027 = vst [vmem:[#allocation3 + $0x20] sm:$0xff] %v963_v63  ;;  %1059 = vst [vmem:[#allocation3 + $0x120] sm:$0xff] %v995_v0  ;;  %v966_v3 = vadd.f32 %v1207_v1, %v1491_v40  ;;  %v998_v4 = vadd.f32 %v1239_v2, %v1491_v40 }
  0xf0   :  { %v521_v5 = vpop.f32.mrf.mxu0  ;;  %v649_v6 = vpop.f32.mrf.mxu1 }
  0xf1   :  { %1030 = vst [vmem:[#allocation3 + $0x38] sm:$0xff] %v966_v3  ;;  %1062 = vst [vmem:[#allocation3 + $0x138] sm:$0xff] %v998_v4  ;;  %v964_v7 = vadd.f32 %v1491_v40, %v521_v5  ;;  %v996_v8 = vadd.f32 %v1491_v40, %v649_v6 }
  0xf2   :  { %v1210_v9 = vpop.f32.mrf.mxu0  ;;  %v1242_v10 = vpop.f32.mrf.mxu1 }
  0xf3   :  { %1028 = vst [vmem:[#allocation3 + $0x28] sm:$0xff] %v964_v7  ;;  %1060 = vst [vmem:[#allocation3 + $0x128] sm:$0xff] %v996_v8  ;;  %v969_v11 = vadd.f32 %v1210_v9, %v1491_v40  ;;  %v1001_v12 = vadd.f32 %v1242_v10, %v1491_v40 }
  0xf4   :  { %v534_v13 = vpop.f32.mrf.mxu0  ;;  %v662_v14 = vpop.f32.mrf.mxu1 }
  0xf5   :  { %1033 = vst [vmem:[#allocation3 + $0x50] sm:$0xff] %v969_v11  ;;  %1065 = vst [vmem:[#allocation3 + $0x150] sm:$0xff] %v1001_v12  ;;  %v967_v15 = vadd.f32 %v1491_v40, %v534_v13  ;;  %v999_v16 = vadd.f32 %v1491_v40, %v662_v14 }
  0xf6   :  { %v1211_v17 = vpop.f32.mrf.mxu0  ;;  %v1243_v18 = vpop.f32.mrf.mxu1 }
  0xf7   :  { %1031 = vst [vmem:[#allocation3 + $0x40] sm:$0xff] %v967_v15  ;;  %1063 = vst [vmem:[#allocation3 + $0x140] sm:$0xff] %v999_v16  ;;  %v970_v19 = vadd.f32 %v1211_v17, %v1491_v40  ;;  %v1002_v20 = vadd.f32 %v1243_v18, %v1491_v40 }
  0xf8   :  { %v537_v21 = vpop.f32.mrf.mxu0  ;;  %v665_v22 = vpop.f32.mrf.mxu1 }
  0xf9   :  { %1034 = vst [vmem:[#allocation3 + $0x58] sm:$0xff] %v970_v19  ;;  %1066 = vst [vmem:[#allocation3 + $0x158] sm:$0xff] %v1002_v20  ;;  %v968_v23 = vadd.f32 %v1491_v40, %v537_v21  ;;  %v1000_v24 = vadd.f32 %v1491_v40, %v665_v22 }
  0xfa   :  { %v1214_v25 = vpop.f32.mrf.mxu0  ;;  %v1246_v26 = vpop.f32.mrf.mxu1 }
  0xfb   :  { %1032 = vst [vmem:[#allocation3 + $0x48] sm:$0xff] %v968_v23  ;;  %1064 = vst [vmem:[#allocation3 + $0x148] sm:$0xff] %v1000_v24  ;;  %v973_v27 = vadd.f32 %v1214_v25, %v1491_v40  ;;  %v1005_v28 = vadd.f32 %v1246_v26, %v1491_v40 }
  0xfc   :  { %v550_v29 = vpop.f32.mrf.mxu0  ;;  %v678_v30 = vpop.f32.mrf.mxu1 }
  0xfd   :  { %1037 = vst [vmem:[#allocation3 + $0x70] sm:$0xff] %v973_v27  ;;  %1069 = vst [vmem:[#allocation3 + $0x170] sm:$0xff] %v1005_v28  ;;  %v971_v31 = vadd.f32 %v1491_v40, %v550_v29  ;;  %v1003_v32 = vadd.f32 %v1491_v40, %v678_v30 }
  0xfe   :  { %v1215_v33 = vpop.f32.mrf.mxu0  ;;  %v1247_v34 = vpop.f32.mrf.mxu1 }
  0xff   :  { %1035 = vst [vmem:[#allocation3 + $0x60] sm:$0xff] %v971_v31  ;;  %1067 = vst [vmem:[#allocation3 + $0x160] sm:$0xff] %v1003_v32  ;;  %v974_v35 = vadd.f32 %v1215_v33, %v1491_v40  ;;  %v1006_v36 = vadd.f32 %v1247_v34, %v1491_v40 }
 0x100   :  { %v553_v37 = vpop.f32.mrf.mxu0  ;;  %v681_v38 = vpop.f32.mrf.mxu1 }
 0x101   :  { %1038 = vst [vmem:[#allocation3 + $0x78] sm:$0xff] %v974_v35  ;;  %1070 = vst [vmem:[#allocation3 + $0x178] sm:$0xff] %v1006_v36  ;;  %v972_v39 = vadd.f32 %v1491_v40, %v553_v37  ;;  %v1004_v41 = vadd.f32 %v1491_v40, %v681_v38 }
 0x102   :  { %v1218_v42 = vpop.f32.mrf.mxu0  ;;  %v1250_v43 = vpop.f32.mrf.mxu1 }
 0x103   :  { %1036 = vst [vmem:[#allocation3 + $0x68] sm:$0xff] %v972_v39  ;;  %1068 = vst [vmem:[#allocation3 + $0x168] sm:$0xff] %v1004_v41  ;;  %v977_v44 = vadd.f32 %v1218_v42, %v1491_v40  ;;  %v1009_v45 = vadd.f32 %v1250_v43, %v1491_v40 }
 0x104   :  { %v566_v46 = vpop.f32.mrf.mxu0  ;;  %v694_v47 = vpop.f32.mrf.mxu1 }
 0x105   :  { %1041 = vst [vmem:[#allocation3 + $0x90] sm:$0xff] %v977_v44  ;;  %1073 = vst [vmem:[#allocation3 + $0x190] sm:$0xff] %v1009_v45  ;;  %v975_v48 = vadd.f32 %v1491_v40, %v566_v46  ;;  %v1007_v49 = vadd.f32 %v1491_v40, %v694_v47 }
 0x106   :  { %v1219_v50 = vpop.f32.mrf.mxu0  ;;  %v1251_v51 = vpop.f32.mrf.mxu1 }
 0x107   :  { %1039 = vst [vmem:[#allocation3 + $0x80] sm:$0xff] %v975_v48  ;;  %1071 = vst [vmem:[#allocation3 + $0x180] sm:$0xff] %v1007_v49  ;;  %v978_v52 = vadd.f32 %v1219_v50, %v1491_v40  ;;  %v1010_v53 = vadd.f32 %v1251_v51, %v1491_v40 }
 0x108   :  { %v569_v54 = vpop.f32.mrf.mxu0  ;;  %v697_v55 = vpop.f32.mrf.mxu1 }
 0x109   :  { %1042 = vst [vmem:[#allocation3 + $0x98] sm:$0xff] %v978_v52  ;;  %1074 = vst [vmem:[#allocation3 + $0x198] sm:$0xff] %v1010_v53  ;;  %v976_v56 = vadd.f32 %v1491_v40, %v569_v54  ;;  %v1008_v57 = vadd.f32 %v1491_v40, %v697_v55 }
 0x10a   :  { %v1222_v58 = vpop.f32.mrf.mxu0  ;;  %v1254_v59 = vpop.f32.mrf.mxu1 }
 0x10b   :  { %1040 = vst [vmem:[#allocation3 + $0x88] sm:$0xff] %v976_v56  ;;  %1072 = vst [vmem:[#allocation3 + $0x188] sm:$0xff] %v1008_v57  ;;  %v981_v60 = vadd.f32 %v1222_v58, %v1491_v40  ;;  %v1013_v61 = vadd.f32 %v1254_v59, %v1491_v40 }
 0x10c   :  { %v582_v62 = vpop.f32.mrf.mxu0  ;;  %v710_v63 = vpop.f32.mrf.mxu1 }
 0x10d   :  { %1045 = vst [vmem:[#allocation3 + $0xb0] sm:$0xff] %v981_v60  ;;  %1077 = vst [vmem:[#allocation3 + $0x1b0] sm:$0xff] %v1013_v61  ;;  %v979_v0 = vadd.f32 %v1491_v40, %v582_v62  ;;  %v1011_v1 = vadd.f32 %v1491_v40, %v710_v63 }
 0x10e   :  { %v1223_v2 = vpop.f32.mrf.mxu0  ;;  %v1255_v3 = vpop.f32.mrf.mxu1 }
 0x10f   :  { %1043 = vst [vmem:[#allocation3 + $0xa0] sm:$0xff] %v979_v0  ;;  %1075 = vst [vmem:[#allocation3 + $0x1a0] sm:$0xff] %v1011_v1  ;;  %v982_v4 = vadd.f32 %v1223_v2, %v1491_v40  ;;  %v1014_v5 = vadd.f32 %v1255_v3, %v1491_v40 }
 0x110   :  { %v585_v6 = vpop.f32.mrf.mxu0  ;;  %v713_v7 = vpop.f32.mrf.mxu1 }
 0x111   :  { %1046 = vst [vmem:[#allocation3 + $0xb8] sm:$0xff] %v982_v4  ;;  %1078 = vst [vmem:[#allocation3 + $0x1b8] sm:$0xff] %v1014_v5  ;;  %v980_v8 = vadd.f32 %v1491_v40, %v585_v6  ;;  %v1012_v9 = vadd.f32 %v1491_v40, %v713_v7 }
 0x112   :  { %v1226_v10 = vpop.f32.mrf.mxu0  ;;  %v1258_v11 = vpop.f32.mrf.mxu1 }
 0x113   :  { %1044 = vst [vmem:[#allocation3 + $0xa8] sm:$0xff] %v980_v8  ;;  %1076 = vst [vmem:[#allocation3 + $0x1a8] sm:$0xff] %v1012_v9  ;;  %v985_v12 = vadd.f32 %v1226_v10, %v1491_v40  ;;  %v1017_v13 = vadd.f32 %v1258_v11, %v1491_v40 }
 0x114   :  { %v598_v14 = vpop.f32.mrf.mxu0  ;;  %v726_v15 = vpop.f32.mrf.mxu1 }
 0x115   :  { %1049 = vst [vmem:[#allocation3 + $0xd0] sm:$0xff] %v985_v12  ;;  %1081 = vst [vmem:[#allocation3 + $0x1d0] sm:$0xff] %v1017_v13  ;;  %v983_v16 = vadd.f32 %v1491_v40, %v598_v14  ;;  %v1015_v17 = vadd.f32 %v1491_v40, %v726_v15 }
 0x116   :  { %v1227_v18 = vpop.f32.mrf.mxu0  ;;  %v1259_v19 = vpop.f32.mrf.mxu1 }
 0x117   :  { %1047 = vst [vmem:[#allocation3 + $0xc0] sm:$0xff] %v983_v16  ;;  %1079 = vst [vmem:[#allocation3 + $0x1c0] sm:$0xff] %v1015_v17  ;;  %v986_v20 = vadd.f32 %v1227_v18, %v1491_v40  ;;  %v1018_v21 = vadd.f32 %v1259_v19, %v1491_v40 }
 0x118   :  { %v601_v22 = vpop.f32.mrf.mxu0  ;;  %v729_v23 = vpop.f32.mrf.mxu1 }
 0x119   :  { %1050 = vst [vmem:[#allocation3 + $0xd8] sm:$0xff] %v986_v20  ;;  %1082 = vst [vmem:[#allocation3 + $0x1d8] sm:$0xff] %v1018_v21  ;;  %v984_v24 = vadd.f32 %v1491_v40, %v601_v22  ;;  %v1016_v25 = vadd.f32 %v1491_v40, %v729_v23 }
 0x11a   :  { %v1230_v26 = vpop.f32.mrf.mxu0  ;;  %v1262_v27 = vpop.f32.mrf.mxu1 }
 0x11b   :  { %1048 = vst [vmem:[#allocation3 + $0xc8] sm:$0xff] %v984_v24  ;;  %1080 = vst [vmem:[#allocation3 + $0x1c8] sm:$0xff] %v1016_v25  ;;  %v989_v28 = vadd.f32 %v1230_v26, %v1491_v40  ;;  %v1021_v29 = vadd.f32 %v1262_v27, %v1491_v40 }
 0x11c   :  { %v614_v30 = vpop.f32.mrf.mxu0  ;;  %v742_v31 = vpop.f32.mrf.mxu1 }
 0x11d   :  { %1053 = vst [vmem:[#allocation3 + $0xf0] sm:$0xff] %v989_v28  ;;  %1085 = vst [vmem:[#allocation3 + $0x1f0] sm:$0xff] %v1021_v29  ;;  %v987_v32 = vadd.f32 %v1491_v40, %v614_v30  ;;  %v1019_v33 = vadd.f32 %v1491_v40, %v742_v31 }
 0x11e   :  { %v1231_v34 = vpop.f32.mrf.mxu0  ;;  %v1263_v35 = vpop.f32.mrf.mxu1 }
 0x11f   :  { %1051 = vst [vmem:[#allocation3 + $0xe0] sm:$0xff] %v987_v32  ;;  %1083 = vst [vmem:[#allocation3 + $0x1e0] sm:$0xff] %v1019_v33  ;;  %v990_v36 = vadd.f32 %v1231_v34, %v1491_v40  ;;  %v1022_v37 = vadd.f32 %v1263_v35, %v1491_v40 }
 0x120   :  { %v617_v38 = vpop.f32.mrf.mxu0  ;;  %v745_v39 = vpop.f32.mrf.mxu1 }
 0x121   :  { %1054 = vst [vmem:[#allocation3 + $0xf8] sm:$0xff] %v990_v36  ;;  %1086 = vst [vmem:[#allocation3 + $0x1f8] sm:$0xff] %v1022_v37  ;;  %v988_v41 = vadd.f32 %v1491_v40, %v617_v38  ;;  %v1020_v42 = vadd.f32 %v1491_v40, %v745_v39 }
 0x123   :  { %1052 = vst [vmem:[#allocation3 + $0xe8] sm:$0xff] %v988_v41  ;;  %1084 = vst [vmem:[#allocation3 + $0x1e8] sm:$0xff] %v1020_v42 }
 0x124   :  { %1334 = shalt.err (!%p1331_p4)
}
 0x125   :  { %s1346_s1 = smov 128   ;;  %s1347_s12 = smov 8  }
 0x126   :  { %1098 = dma.vmem_to_hbm [thread:$0]  %s1093_s2, 8192, %s1563_s3, [#allocation4], %s1346_s1, %s1346_s1, %s1347_s12  }
 0x127   :  { %1343 = dma.done.wait [#allocation4], 8192  }
 0x128   :  { %1344 = vsyncadd [#allocation4], 4294959104 }
 0x129   :  { %1102 = vsyncpa [#allocation4], 1 }

// kernel: decoder_gqa_alibi_forward.4
= control target key start
LH: loop header
LB: loop body
LE: loop exit
PB: predicated region body
PF: predicated region fallthrough
CT: control target
= control target key end

     0   :  { %s5622_s0 = inlined_call_operand.vmem [shape: f32[8], index: 0, kind: input, shape index: {}]   ;;  %s5623_s1 = inlined_call_operand.vmem [shape: bf16[2,4,2,256,16], index: 1, kind: input, shape index: {}]   ;;  %s5624_s2 = inlined_call_operand.vmem [shape: bf16[2,4,16,256], index: 2, kind: input, shape index: {}]   ;;  %s5625_s3 = inlined_call_operand.vmem [shape: bf16[2,4,256,16], index: 3, kind: input, shape index: {}]   ;;  %s5626_s4 = inlined_call_operand.vmem [shape: bf16[2,4,2,256,16], index: 4, kind: output, shape index: {}]  }
   0x1   :  { %5678 = sst [smem:[#allocation60_spill]] %s5623_s1  ;;  %s9_s17 = sshll.u32 %s5622_s0, 4  ;;  %s10_s17 = int_to_ptr.vmem [resolvable:$true] %s9_s17 }
   0x2   :  { %5679 = sst [smem:[#allocation61_spill]] %s5624_s2  ;;  %s3817_s18 = scalar_lea.vmem %s10_s17, 16 }
   0x3   :  { %5680 = sst [smem:[#allocation62_spill]] %s5625_s3  ;;  %p3818_p0 = scmp.ne.s32.totalorder %s10_s17, %s3817_s18 }
   0x4   :  { %5681 = sst [smem:[#allocation63_spill]] %s5626_s4  ;;  %p3822_p1 = scmp.lt.s32.totalorder %s10_s17, %s10_s17 }
   0x5   :  { %p3823_p2 = scmp.lt.s32.totalorder %s3817_s18, %s3817_s18 }
   0x7   :  { %p3824_p3 = por %p3823_p2, %p3822_p1 }
   0x9   :  { %p3825_p4 = pnand %p3824_p3, %p3818_p0 }
   0xb   :  { %3828 = shalt.err (!%p3825_p4)  }
   0xc   :  { %s3935_s19 = smov [#allocation7]  }
   0xd   :  { %12 = dma.vmem_to_smem %s10_s17, 16, %s3935_s19, [#allocation6] }
   0xe   :  { %3881 = dma.done.wait [#allocation6], 16 }
   0xf   :  { %3882 = vsyncadd [#allocation6], 4294967280 }
  0x10   :  { %14 = sfence }
  0x11   :  { %s3968_s20 = smov 0   ;;  %s3970_s21 = smov 0  }
  0x12   :  { %s3972_s22 = smov 0   ;;  %s3974_s0 = smov 0  }
  0x13   :  { %s3976_s23 = smov 0   ;;  %s3978_s24 = smov 0  }
  0x14   :  { %s3980_s25 = smov 0   ;;  %s3982_s26 = smov 0  }
  0x15   :  { %s3984_s27 = smov 0   ;;  %s3986_s28 = smov 0  }
  0x16   :  { %s3988_s29 = smov 0   ;;  %s3990_s30 = smov 0  }
  0x17   :  { %s3992_s5 = smov 0  }
  0x18 LB: > { %5682 = sst [smem:[#allocation12_spill]] %s3905_s24  ;;  %s35_s6 = sadd.s32 1, %s3917_s27  ;;  %s3933_s5 = sphi %s3992_s5, %s20_s5   ;;  %s3929_s30 = sphi %s3990_s30, %s5834_s30   ;;  %s3925_s29 = sphi %s3988_s29, %s5833_s29   ;;  %s3921_s28 = sphi %s3986_s28, %s5832_s28   ;;  %s3917_s27 = sphi %s3984_s27, %s5831_s27   ;;  %s3913_s26 = sphi %s3982_s26, %s5830_s26   ;;  %s3909_s25 = sphi %s3980_s25, %s5829_s25   ;;  %s3905_s24 = sphi %s3978_s24, %s5828_s24   ;;  %s3901_s23 = sphi %s3976_s23, %s5827_s23   ;;  %s3897_s0 = sphi %s3974_s0, %s5826_s0   ;;  %s3893_s22 = sphi %s3972_s22, %s5825_s22   ;;  %s3889_s21 = sphi %s3970_s21, %s5824_s21   ;;  %s3885_s20 = sphi %s3968_s20, %s5823_s20  }
  0x19   : > { %5683 = sst [smem:[#allocation13_spill]] %s3909_s25  ;;  %p36_p5 = scmp.ge.s32.totalorder %s35_s6, 2 }
  0x1a   : > { %s38_s7 = sadd.s32 1, %s3921_s28  ;;  %s3184_s8 = sadd.s32 4294967295, %s3933_s5  }
  0x1b   : > { %s5836_s7 = smov (!%p36_p5, %s38_s7), %s3921_s28  ;;  %s42_s9 = sadd.s32 1, %s3925_s29 }
  0x1c   : > { %p64_p6 = scmp.ne.s32.totalorder %s3897_s0, %s3893_s22  ;;  %p40_p7 = scmp.ge.s32.totalorder %s5836_s7, 2 }
  0x1d   : > { %p65_p8 = scmp.eq.s32.totalorder %s3933_s5, 0  ;;  %s5838_s6 = smov (%p36_p5, %s35_s6), 0 }
  0x1e   : > { %s5840_s7 = smov (%p40_p7, %s5836_s7), 0  ;;  %s5842_s9 = smov (!%p40_p7, %s42_s9), %s3925_s29 }
  0x1f   : > { %s46_s10 = sadd.s32 1, %s3929_s30  ;;  %p4050_p9 = por %p65_p8, %p64_p6 }
  0x20   : > { %p44_p10 = scmp.ge.s32.totalorder %s5842_s9, 4  ;;  %p94_p11 = scmp.ne.s32.totalorder %s3889_s21, %s3885_s20 }
  0x21   : > { %p158_p12 = scmp.eq.s32.totalorder %s3184_s8, 31  ;;  %s53_s15 = ssub.s32 %s3921_s28, %s5840_s7 }
  0x22   : > { %s5844_s9 = smov (%p44_p10, %s5842_s9), 0  ;;  %s5846_s10 = smov (!%p44_p10, %s46_s10), %s3929_s30 }
  0x23   : > { %5685 = sst [smem:[#allocation14_spill]] %s5844_s9  ;;  %p4059_p13 = por %p94_p11, %p65_p8 }
  0x24   : > { %p48_p0 = scmp.ge.s32.totalorder %s5846_s10, 2  ;;  %p4066_p1 = por %p158_p12, %p64_p6 }
  0x25   : > { %s51_s14 = ssub.s32 %s3925_s29, %s5844_s9  ;;  %s83_s16 = ssub.s32 %s3917_s27, %s5838_s6 }
  0x26   : > { %s5848_s10 = smov (%p48_p0, %s5846_s10), 0  ;;  %s57_s18 = sadd.s32 1, %s3897_s0 }
  0x27   : > { %5688 = sst [smem:[#allocation15_spill]] %s5848_s10  ;;  %s50_s17 = ssub.s32 %s3929_s30, %s5848_s10 }
  0x28   : > { %s52_s19 = sor.u32 %s51_s14, %s50_s17  ;;  %s87_s8 = sadd.s32 1, %s3889_s21 }
  0x29   : > { %s54_s4 = sor.u32 %s53_s15, %s52_s19  ;;  %s84_s24 = sor.u32 %s83_s16, %s52_s19 }
  0x2a   : > { %p55_p2 = scmp.eq.s32.totalorder %s54_s4, 0  ;;  %p85_p3 = scmp.eq.s32.totalorder %s84_s24, 0 }
  0x2b   : > { %p3187_p4 = scmp.ge.s32.totalorder %s3933_s5, 32 }
  0x2c   : > { %s4083_s3 = scalar_select %p55_p2, %s3897_s0, %s57_s18  }
  0x2d   : > { %s4086_s25 = scalar_select %p85_p3, %s3889_s21, %s87_s8  }
  0x2e   : > { %180 = sbr.rel (%p3187_p4) target bundleno = 82 (0x52), region = 16 }
  0x33   : > { %183 = sbr.rel (!%p4050_p9) target bundleno = 70 (0x46), region = 20  ;;  %s185_s14 = sand.u32 (%p4050_p9), 1, %s3897_s0  }
  0x34   : > { %s3189_s17 = sshll.u32 (%p4050_p9), %s3921_s28, 4  ;;  %s3190_s15 = sshll.u32 (%p4050_p9), %s3925_s29, 6 }
  0x35   : > { %s3188_s16 = sshll.u32 (%p4050_p9), %s185_s14, 7  ;;  %s190_s4 = sadd.s32 (%p4050_p9), %s3190_s15, %s3189_s17 }
  0x36   : > { %s3191_s24 = sshll.u32 (%p4050_p9), %s3929_s30, 8  ;;  %s5689_s1 = sld [smem:[#allocation60_spill]] (%p4050_p9) }
  0x37   : > { %s192_s18 = sadd.s32 (%p4050_p9), %s3191_s24, %s190_s4  ;;  %s187_s11 = scalar_lea.vmem (%p4050_p9), [#allocation8], %s3188_s16 }
  0x38   : > { %s3192_s19 = sshll.u32 %s192_s18, 2 }
  0x3c   : > { %s4098_s9 = scalar_lea.vmem %s5689_s1, %s3192_s19 }
  0x3d   : > { %v211_v0 = vld [vmem:[%s4098_s9] sm:$0xff]   ;;  %v215_v1 = vld [vmem:[%s4098_s9 + $0x8] sm:$0xff]   ;;  %v219_v2 = vld [vmem:[%s4098_s9 + $0x10] sm:$0xff]  }
  0x3e   : > { %212 = vst [vmem:[%s187_s11] sm:$0xff] %v211_v0   ;;  %216 = vst [vmem:[%s187_s11 + $0x8] sm:$0xff] %v215_v1   ;;  %v223_v3 = vld [vmem:[%s4098_s9 + $0x18] sm:$0xff]   ;;  %v227_v4 = vld [vmem:[%s4098_s9 + $0x20] sm:$0xff]  }
  0x3f   : > { %220 = vst [vmem:[%s187_s11 + $0x10] sm:$0xff] %v219_v2   ;;  %v231_v5 = vld [vmem:[%s4098_s9 + $0x28] sm:$0xff]   ;;  %224 = vst [vmem:[%s187_s11 + $0x18] sm:$0xff] %v223_v3   ;;  %v235_v6 = vld [vmem:[%s4098_s9 + $0x30] sm:$0xff]  }
  0x40   : > { %228 = vst [vmem:[%s187_s11 + $0x20] sm:$0xff] %v227_v4   ;;  %232 = vst [vmem:[%s187_s11 + $0x28] sm:$0xff] %v231_v5   ;;  %v239_v7 = vld [vmem:[%s4098_s9 + $0x38] sm:$0xff]   ;;  %v243_v8 = vld [vmem:[%s4098_s9 + $0x80] sm:$0xff]  }
  0x41   : > { %236 = vst [vmem:[%s187_s11 + $0x30] sm:$0xff] %v235_v6   ;;  %240 = vst [vmem:[%s187_s11 + $0x38] sm:$0xff] %v239_v7   ;;  %v247_v9 = vld [vmem:[%s4098_s9 + $0x88] sm:$0xff]   ;;  %v251_v10 = vld [vmem:[%s4098_s9 + $0x90] sm:$0xff]  }
  0x42   : > { %244 = vst [vmem:[%s187_s11 + $0x40] sm:$0xff] %v243_v8   ;;  %v255_v11 = vld [vmem:[%s4098_s9 + $0x98] sm:$0xff]   ;;  %248 = vst [vmem:[%s187_s11 + $0x48] sm:$0xff] %v247_v9   ;;  %v259_v12 = vld [vmem:[%s4098_s9 + $0xa0] sm:$0xff]  }
  0x43   : > { %252 = vst [vmem:[%s187_s11 + $0x50] sm:$0xff] %v251_v10   ;;  %256 = vst [vmem:[%s187_s11 + $0x58] sm:$0xff] %v255_v11   ;;  %v263_v13 = vld [vmem:[%s4098_s9 + $0xa8] sm:$0xff]   ;;  %v267_v14 = vld [vmem:[%s4098_s9 + $0xb0] sm:$0xff]  }
  0x44   : > { %260 = vst [vmem:[%s187_s11 + $0x60] sm:$0xff] %v259_v12   ;;  %264 = vst [vmem:[%s187_s11 + $0x68] sm:$0xff] %v263_v13   ;;  %v271_v15 = vld [vmem:[%s4098_s9 + $0xb8] sm:$0xff]  }
  0x45   : > { %268 = vst [vmem:[%s187_s11 + $0x70] sm:$0xff] %v267_v14   ;;  %272 = vst [vmem:[%s187_s11 + $0x78] sm:$0xff] %v271_v15  }
  0x46 PF: > { %362 = sbr.rel (!%p4059_p13) target bundleno = 82 (0x52), region = 61  ;;  %s364_s10 = sand.u32 (%p4059_p13), 1, %s3889_s21  }
  0x47   : > { %s3194_s14 = sshll.u32 (%p4059_p13), %s3925_s29, 2  ;;  %s3193_s17 = sshll.u32 (%p4059_p13), %s364_s10, 3 }
  0x48   : > { %s368_s15 = sadd.s32 (%p4059_p13), %s3917_s27, %s3194_s14  ;;  %s3195_s16 = sshll.u32 (%p4059_p13), %s3929_s30, 4 }
  0x49   : > { %s370_s4 = sadd.s32 (%p4059_p13), %s3195_s16, %s368_s15  ;;  %s5690_s2 = sld [smem:[#allocation61_spill]] (%p4059_p13) }
  0x4a   : > { %s3196_s24 = sshll.u32 (%p4059_p13), %s370_s4, 2  ;;  %s366_s8 = scalar_lea.vmem (%p4059_p13), [#allocation9], %s3193_s17 }
  0x4f   : > { %s372_s9 = scalar_lea.vmem %s5690_s2, %s3196_s24 }
  0x50   : > { %v389_v16 = vld [vmem:[%s372_s9] sm:$0xf]  ;;  %v391_v17 = vld [vmem:[%s372_s9 + $0x8] sm:$0xf] }
  0x51   : > { %390 = vst [vmem:[%s366_s8] sm:$0xf] %v389_v16  ;;  %392 = vst [vmem:[%s366_s8 + $0x4] sm:$0xf] %v391_v17 }
  0x52 PF: > { %p3197_p5 = scmp.ge.s32.totalorder %s3933_s5, 1  ;;  %p436_p6 = scmp.lt.s32.totalorder %s3933_s5, 33 }
  0x54   : > { %p437_p7 = pnand %p3197_p5, %p436_p6 }
  0x56   : > { %440 = sbr.rel (%p437_p7) target bundleno = 1249 (0x4e1), region = 106 }
  0x5b   : > { %s5691_s12 = sld [smem:[#allocation13_spill]]  ;;  %s443_s11 = sand.u32 1, %s3893_s22  }
  0x5c   : > { %s450_s10 = sand.u32 1, %s3885_s20   ;;  %s3198_s14 = sshll.u32 %s443_s11, 7 }
  0x5d   : > { %s4129_s17 = sshll.u32 %s450_s10, 3  ;;  %s3201_s15 = sshll.u32 %s3901_s23, 4 }
  0x5e   : > { %p491_p8 = scmp.lt.s32.totalorder %s3913_s26, 1  ;;  %p495_p10 = scmp.lt.s32.totalorder %s3201_s15, 31 }
  0x5f   : > { %s5692_s22 = sld [smem:[#allocation62_spill]]  ;;  %s4141_s11 = scalar_lea.vmem [#allocation8], %s3198_s14 }
  0x60   : > { %s492_s16 = scalar_select %p491_p8, %s3913_s26, 1 }
  0x61   : > { %p493_p9 = scmp.lt.s32.totalorder %s5691_s12, 3  ;;  %s5852_s15 = smov (!%p495_p10, %s3201_s15), 31 }
  0x62   : > { %s3203_s24 = sshll.u32 %s492_s16, 7  ;;  %s452_s10 = scalar_lea.vmem [#allocation9], %s4129_s17 }
  0x63   : > { %s5850_s12 = smov (!%p493_p9, %s5691_s12), 3  ;;  %s4144_s2 = scalar_lea.vmem [#allocation10], %s3198_s14 }
  0x64   : > { %s3202_s4 = sshll.u32 %s5850_s12, 5  ;;  %p3205_p11 = scmp.ne.s32.totalorder %s3901_s23, 0 }
  0x65   : > { %s498_s18 = sadd.s32 %s3202_s4, %s5852_s15 }
  0x66   : > { %s500_s19 = sadd.s32 %s3203_s24, %s498_s18  ;;  %509 = sbr.rel (%p3205_p11) target bundleno = 164 (0xa4), region = 118 }
  0x67   : > { %s3204_s9 = sshll.u32 %s500_s19, 2 }
  0x68   : > { %s4139_s20 = scalar_lea.vmem %s5692_s22, %s3204_s9 }
  0x6b   : > { %vm510_vm0 = vcmask 7168   ;;  %vm575_vm1 = vcmask 130048   ;;  %v3936_v18 = vmov -inf   ;;  %v3937_v19 = vmov 0.0  }
  0x6c   : > { %511 = vst.msk [vmem:[#allocation2] sm:$0xff] %vm510_vm0, %v3936_v18  ;;  %512 = vst.msk [vmem:[#allocation2 + $0x8] sm:$0xff] %vm510_vm0, %v3936_v18  ;;  %v608_v20 = vlaneseq }
  0x6d   : > { %513 = vst.msk [vmem:[#allocation2 + $0x10] sm:$0xff] %vm510_vm0, %v3936_v18  ;;  %514 = vst.msk [vmem:[#allocation2 + $0x18] sm:$0xff] %vm510_vm0, %v3936_v18 }
  0x6e   : > { %515 = vst.msk [vmem:[#allocation2 + $0x20] sm:$0xff] %vm510_vm0, %v3936_v18  ;;  %516 = vst.msk [vmem:[#allocation2 + $0x28] sm:$0xff] %vm510_vm0, %v3936_v18  ;;  %v609_v21 = vand.u32 127, %v608_v20  ;;  %v611_v22 = vshrl.u32 %v608_v20, 7 }
  0x6f   : > { %517 = vst.msk [vmem:[#allocation2 + $0x30] sm:$0xff] %vm510_vm0, %v3936_v18  ;;  %518 = vst.msk [vmem:[#allocation2 + $0x38] sm:$0xff] %vm510_vm0, %v3936_v18 }
  0x70   : > { %519 = vst.msk [vmem:[#allocation2 + $0x40] sm:$0xff] %vm510_vm0, %v3936_v18  ;;  %520 = vst.msk [vmem:[#allocation2 + $0x48] sm:$0xff] %vm510_vm0, %v3936_v18  ;;  %v627_v23 = vsub.s32 %v609_v21, %v611_v22  ;;  %v612_v24 = vadd.s32 8, %v611_v22  ;;  %v613_v25 = vadd.s32 16, %v611_v22  ;;  %v614_v26 = vadd.s32 24, %v611_v22 }
  0x71   : > { %521 = vst.msk [vmem:[#allocation2 + $0x50] sm:$0xff] %vm510_vm0, %v3936_v18  ;;  %522 = vst.msk [vmem:[#allocation2 + $0x58] sm:$0xff] %vm510_vm0, %v3936_v18  ;;  %v615_v27 = vadd.s32 32, %v611_v22  ;;  %v616_v28 = vadd.s32 40, %v611_v22  ;;  %v617_v29 = vadd.s32 48, %v611_v22  ;;  %v618_v30 = vadd.s32 56, %v611_v22 }
  0x72   : > { %523 = vst.msk [vmem:[#allocation2 + $0x60] sm:$0xff] %vm510_vm0, %v3936_v18  ;;  %524 = vst.msk [vmem:[#allocation2 + $0x68] sm:$0xff] %vm510_vm0, %v3936_v18  ;;  %v643_v31 = vcvt.s32.f32 %v627_v23  ;;  %v628_v32 = vsub.s32 %v609_v21, %v612_v24  ;;  %v629_v33 = vsub.s32 %v609_v21, %v613_v25  ;;  %v630_v34 = vsub.s32 %v609_v21, %v614_v26 }
  0x73   : > { %525 = vst.msk [vmem:[#allocation2 + $0x70] sm:$0xff] %vm510_vm0, %v3936_v18  ;;  %526 = vst.msk [vmem:[#allocation2 + $0x78] sm:$0xff] %vm510_vm0, %v3936_v18  ;;  %v631_v35 = vsub.s32 %v609_v21, %v615_v27  ;;  %v632_v36 = vsub.s32 %v609_v21, %v616_v28  ;;  %v633_v37 = vsub.s32 %v609_v21, %v617_v29  ;;  %v619_v42 = vadd.s32 64, %v611_v22 }
  0x74   : > { %527 = vst.msk [vmem:[#allocation2 + $0x80] sm:$0xff] %vm510_vm0, %v3936_v18  ;;  %528 = vst.msk [vmem:[#allocation2 + $0x88] sm:$0xff] %vm510_vm0, %v3936_v18  ;;  %v634_v38 = vsub.s32 %v609_v21, %v618_v30  ;;  %v644_v39 = vcvt.s32.f32 %v628_v32  ;;  %v645_v40 = vcvt.s32.f32 %v629_v33  ;;  %v646_v41 = vcvt.s32.f32 %v630_v34 }
  0x75   : > { %529 = vst.msk [vmem:[#allocation2 + $0x90] sm:$0xff] %vm510_vm0, %v3936_v18  ;;  %530 = vst.msk [vmem:[#allocation2 + $0x98] sm:$0xff] %vm510_vm0, %v3936_v18  ;;  %v647_v43 = vcvt.s32.f32 %v631_v35  ;;  %v648_v44 = vcvt.s32.f32 %v632_v36  ;;  %v649_v45 = vcvt.s32.f32 %v633_v37  ;;  %v635_v47 = vsub.s32 %v609_v21, %v619_v42 }
  0x76   : > { %531 = vst.msk [vmem:[#allocation2 + $0xa0] sm:$0xff] %vm510_vm0, %v3936_v18  ;;  %532 = vst.msk [vmem:[#allocation2 + $0xa8] sm:$0xff] %vm510_vm0, %v3936_v18  ;;  %v650_v46 = vcvt.s32.f32 %v634_v38  ;;  %v620_v48 = vadd.s32 72, %v611_v22  ;;  %v621_v49 = vadd.s32 80, %v611_v22  ;;  %v622_v50 = vadd.s32 88, %v611_v22 }
  0x77   : > { %533 = vst.msk [vmem:[#allocation2 + $0xb0] sm:$0xff] %vm510_vm0, %v3936_v18  ;;  %534 = vst.msk [vmem:[#allocation2 + $0xb8] sm:$0xff] %vm510_vm0, %v3936_v18  ;;  %v623_v51 = vadd.s32 96, %v611_v22  ;;  %v624_v52 = vadd.s32 104, %v611_v22  ;;  %v625_v53 = vadd.s32 112, %v611_v22  ;;  %v626_v54 = vadd.s32 120, %v611_v22 }
  0x78   : > { %535 = vst.msk [vmem:[#allocation2 + $0xc0] sm:$0xff] %vm510_vm0, %v3936_v18  ;;  %536 = vst.msk [vmem:[#allocation2 + $0xc8] sm:$0xff] %vm510_vm0, %v3936_v18  ;;  %v651_v55 = vcvt.s32.f32 %v635_v47  ;;  %v636_v56 = vsub.s32 %v609_v21, %v620_v48  ;;  %v637_v57 = vsub.s32 %v609_v21, %v621_v49  ;;  %v638_v58 = vsub.s32 %v609_v21, %v622_v50 }
  0x79   : > { %537 = vst.msk [vmem:[#allocation2 + $0xd0] sm:$0xff] %vm510_vm0, %v3936_v18  ;;  %538 = vst.msk [vmem:[#allocation2 + $0xd8] sm:$0xff] %vm510_vm0, %v3936_v18  ;;  %v639_v59 = vsub.s32 %v609_v21, %v623_v51  ;;  %v640_v60 = vsub.s32 %v609_v21, %v624_v52  ;;  %v641_v61 = vsub.s32 %v609_v21, %v625_v53 }
  0x7a   : > { %539 = vst.msk [vmem:[#allocation2 + $0xe0] sm:$0xff] %vm510_vm0, %v3936_v18  ;;  %540 = vst.msk [vmem:[#allocation2 + $0xe8] sm:$0xff] %vm510_vm0, %v3936_v18  ;;  %v642_v62 = vsub.s32 %v609_v21, %v626_v54  ;;  %v652_v63 = vcvt.s32.f32 %v636_v56  ;;  %v653_v0 = vcvt.s32.f32 %v637_v57  ;;  %v654_v1 = vcvt.s32.f32 %v638_v58 }
  0x7b   : > { %541 = vst.msk [vmem:[#allocation2 + $0xf0] sm:$0xff] %vm510_vm0, %v3936_v18  ;;  %542 = vst.msk [vmem:[#allocation2 + $0xf8] sm:$0xff] %vm510_vm0, %v3936_v18  ;;  %v655_v2 = vcvt.s32.f32 %v639_v59  ;;  %v656_v3 = vcvt.s32.f32 %v640_v60  ;;  %v657_v4 = vcvt.s32.f32 %v641_v61 }
  0x7c   : > { %543 = vst.msk [vmem:[#allocation3] sm:$0xff] %vm510_vm0, %v3937_v19  ;;  %544 = vst.msk [vmem:[#allocation3 + $0x8] sm:$0xff] %vm510_vm0, %v3937_v19  ;;  %v658_v5 = vcvt.s32.f32 %v642_v62 }
  0x7d   : > { %545 = vst.msk [vmem:[#allocation3 + $0x10] sm:$0xff] %vm510_vm0, %v3937_v19  ;;  %546 = vst.msk [vmem:[#allocation3 + $0x18] sm:$0xff] %vm510_vm0, %v3937_v19 }
  0x7e   : > { %547 = vst.msk [vmem:[#allocation3 + $0x20] sm:$0xff] %vm510_vm0, %v3937_v19  ;;  %548 = vst.msk [vmem:[#allocation3 + $0x28] sm:$0xff] %vm510_vm0, %v3937_v19 }
  0x7f   : > { %549 = vst.msk [vmem:[#allocation3 + $0x30] sm:$0xff] %vm510_vm0, %v3937_v19  ;;  %550 = vst.msk [vmem:[#allocation3 + $0x38] sm:$0xff] %vm510_vm0, %v3937_v19 }
  0x80   : > { %551 = vst.msk [vmem:[#allocation3 + $0x40] sm:$0xff] %vm510_vm0, %v3937_v19  ;;  %552 = vst.msk [vmem:[#allocation3 + $0x48] sm:$0xff] %vm510_vm0, %v3937_v19 }
  0x81   : > { %553 = vst.msk [vmem:[#allocation3 + $0x50] sm:$0xff] %vm510_vm0, %v3937_v19  ;;  %554 = vst.msk [vmem:[#allocation3 + $0x58] sm:$0xff] %vm510_vm0, %v3937_v19 }
  0x82   : > { %555 = vst.msk [vmem:[#allocation3 + $0x60] sm:$0xff] %vm510_vm0, %v3937_v19  ;;  %556 = vst.msk [vmem:[#allocation3 + $0x68] sm:$0xff] %vm510_vm0, %v3937_v19 }
  0x83   : > { %557 = vst.msk [vmem:[#allocation3 + $0x70] sm:$0xff] %vm510_vm0, %v3937_v19  ;;  %558 = vst.msk [vmem:[#allocation3 + $0x78] sm:$0xff] %vm510_vm0, %v3937_v19 }
  0x84   : > { %559 = vst.msk [vmem:[#allocation3 + $0x80] sm:$0xff] %vm510_vm0, %v3937_v19  ;;  %560 = vst.msk [vmem:[#allocation3 + $0x88] sm:$0xff] %vm510_vm0, %v3937_v19 }
  0x85   : > { %561 = vst.msk [vmem:[#allocation3 + $0x90] sm:$0xff] %vm510_vm0, %v3937_v19  ;;  %562 = vst.msk [vmem:[#allocation3 + $0x98] sm:$0xff] %vm510_vm0, %v3937_v19 }
  0x86   : > { %563 = vst.msk [vmem:[#allocation3 + $0xa0] sm:$0xff] %vm510_vm0, %v3937_v19  ;;  %564 = vst.msk [vmem:[#allocation3 + $0xa8] sm:$0xff] %vm510_vm0, %v3937_v19 }
  0x87   : > { %565 = vst.msk [vmem:[#allocation3 + $0xb0] sm:$0xff] %vm510_vm0, %v3937_v19  ;;  %566 = vst.msk [vmem:[#allocation3 + $0xb8] sm:$0xff] %vm510_vm0, %v3937_v19 }
  0x88   : > { %567 = vst.msk [vmem:[#allocation3 + $0xc0] sm:$0xff] %vm510_vm0, %v3937_v19  ;;  %568 = vst.msk [vmem:[#allocation3 + $0xc8] sm:$0xff] %vm510_vm0, %v3937_v19 }
  0x89   : > { %569 = vst.msk [vmem:[#allocation3 + $0xd0] sm:$0xff] %vm510_vm0, %v3937_v19  ;;  %570 = vst.msk [vmem:[#allocation3 + $0xd8] sm:$0xff] %vm510_vm0, %v3937_v19 }
  0x8a   : > { %571 = vst.msk [vmem:[#allocation3 + $0xe0] sm:$0xff] %vm510_vm0, %v3937_v19  ;;  %572 = vst.msk [vmem:[#allocation3 + $0xe8] sm:$0xff] %vm510_vm0, %v3937_v19 }
  0x8b   : > { %573 = vst.msk [vmem:[#allocation3 + $0xf0] sm:$0xff] %vm510_vm0, %v3937_v19  ;;  %574 = vst.msk [vmem:[#allocation3 + $0xf8] sm:$0xff] %vm510_vm0, %v3937_v19 }
  0x8c   : > { %576 = vst.msk [vmem:[#allocation4] sm:$0xff] %vm575_vm1, %v3937_v19  ;;  %577 = vst.msk [vmem:[#allocation4 + $0x8] sm:$0xff] %vm575_vm1, %v3937_v19 }
  0x8d   : > { %578 = vst.msk [vmem:[#allocation4 + $0x10] sm:$0xff] %vm575_vm1, %v3937_v19  ;;  %579 = vst.msk [vmem:[#allocation4 + $0x18] sm:$0xff] %vm575_vm1, %v3937_v19 }
  0x8e   : > { %580 = vst.msk [vmem:[#allocation4 + $0x20] sm:$0xff] %vm575_vm1, %v3937_v19  ;;  %581 = vst.msk [vmem:[#allocation4 + $0x28] sm:$0xff] %vm575_vm1, %v3937_v19 }
  0x8f   : > { %582 = vst.msk [vmem:[#allocation4 + $0x30] sm:$0xff] %vm575_vm1, %v3937_v19  ;;  %583 = vst.msk [vmem:[#allocation4 + $0x38] sm:$0xff] %vm575_vm1, %v3937_v19 }
  0x90   : > { %584 = vst.msk [vmem:[#allocation4 + $0x40] sm:$0xff] %vm575_vm1, %v3937_v19  ;;  %585 = vst.msk [vmem:[#allocation4 + $0x48] sm:$0xff] %vm575_vm1, %v3937_v19 }
  0x91   : > { %586 = vst.msk [vmem:[#allocation4 + $0x50] sm:$0xff] %vm575_vm1, %v3937_v19  ;;  %587 = vst.msk [vmem:[#allocation4 + $0x58] sm:$0xff] %vm575_vm1, %v3937_v19 }
  0x92   : > { %588 = vst.msk [vmem:[#allocation4 + $0x60] sm:$0xff] %vm575_vm1, %v3937_v19  ;;  %589 = vst.msk [vmem:[#allocation4 + $0x68] sm:$0xff] %vm575_vm1, %v3937_v19 }
  0x93   : > { %590 = vst.msk [vmem:[#allocation4 + $0x70] sm:$0xff] %vm575_vm1, %v3937_v19  ;;  %591 = vst.msk [vmem:[#allocation4 + $0x78] sm:$0xff] %vm575_vm1, %v3937_v19 }
  0x94   : > { %592 = vst.msk [vmem:[#allocation4 + $0x80] sm:$0xff] %vm575_vm1, %v3937_v19  ;;  %593 = vst.msk [vmem:[#allocation4 + $0x88] sm:$0xff] %vm575_vm1, %v3937_v19 }
  0x95   : > { %594 = vst.msk [vmem:[#allocation4 + $0x90] sm:$0xff] %vm575_vm1, %v3937_v19  ;;  %595 = vst.msk [vmem:[#allocation4 + $0x98] sm:$0xff] %vm575_vm1, %v3937_v19 }
  0x96   : > { %596 = vst.msk [vmem:[#allocation4 + $0xa0] sm:$0xff] %vm575_vm1, %v3937_v19  ;;  %597 = vst.msk [vmem:[#allocation4 + $0xa8] sm:$0xff] %vm575_vm1, %v3937_v19 }
  0x97   : > { %598 = vst.msk [vmem:[#allocation4 + $0xb0] sm:$0xff] %vm575_vm1, %v3937_v19  ;;  %599 = vst.msk [vmem:[#allocation4 + $0xb8] sm:$0xff] %vm575_vm1, %v3937_v19 }
  0x98   : > { %600 = vst.msk [vmem:[#allocation4 + $0xc0] sm:$0xff] %vm575_vm1, %v3937_v19  ;;  %601 = vst.msk [vmem:[#allocation4 + $0xc8] sm:$0xff] %vm575_vm1, %v3937_v19 }
  0x99   : > { %602 = vst.msk [vmem:[#allocation4 + $0xd0] sm:$0xff] %vm575_vm1, %v3937_v19  ;;  %603 = vst.msk [vmem:[#allocation4 + $0xd8] sm:$0xff] %vm575_vm1, %v3937_v19 }
  0x9a   : > { %604 = vst.msk [vmem:[#allocation4 + $0xe0] sm:$0xff] %vm575_vm1, %v3937_v19  ;;  %605 = vst.msk [vmem:[#allocation4 + $0xe8] sm:$0xff] %vm575_vm1, %v3937_v19 }
  0x9b   : > { %606 = vst.msk [vmem:[#allocation4 + $0xf0] sm:$0xff] %vm575_vm1, %v3937_v19  ;;  %607 = vst.msk [vmem:[#allocation4 + $0xf8] sm:$0xff] %vm575_vm1, %v3937_v19 }
  0x9c   : > { %659 = vst [vmem:[#allocation5 + $0x30] sm:$0xff] %v643_v31  ;;  %660 = vst [vmem:[#allocation5] sm:$0xff] %v644_v39 }
  0x9d   : > { %661 = vst [vmem:[#allocation5 + $0x58] sm:$0xff] %v645_v40  ;;  %662 = vst [vmem:[#allocation5 + $0x18] sm:$0xff] %v646_v41 }
  0x9e   : > { %663 = vst [vmem:[#allocation5 + $0x50] sm:$0xff] %v647_v43  ;;  %664 = vst [vmem:[#allocation5 + $0x68] sm:$0xff] %v648_v44 }
  0x9f   : > { %665 = vst [vmem:[#allocation5 + $0x8] sm:$0xff] %v649_v45  ;;  %666 = vst [vmem:[#allocation5 + $0x48] sm:$0xff] %v650_v46 }
  0xa0   : > { %667 = vst [vmem:[#allocation5 + $0x40] sm:$0xff] %v651_v55  ;;  %668 = vst [vmem:[#allocation5 + $0x20] sm:$0xff] %v652_v63 }
  0xa1   : > { %669 = vst [vmem:[#allocation5 + $0x10] sm:$0xff] %v653_v0  ;;  %670 = vst [vmem:[#allocation5 + $0x38] sm:$0xff] %v654_v1 }
  0xa2   : > { %671 = vst [vmem:[#allocation5 + $0x60] sm:$0xff] %v655_v2  ;;  %672 = vst [vmem:[#allocation5 + $0x70] sm:$0xff] %v656_v3 }
  0xa3   : > { %673 = vst [vmem:[#allocation5 + $0x78] sm:$0xff] %v657_v4  ;;  %674 = vst [vmem:[#allocation5 + $0x28] sm:$0xff] %v658_v5 }
  0xa4 PF: > { %v3630_v6 = vld [vmem:[%s452_s10] sm:$0xff]   ;;  %vm827_vm2 = vcmask 130048   ;;  %v3633_v9 = vld [vmem:[%s4141_s11 + $0x10] sm:$0xff]   ;;  %v3634_v10 = vld [vmem:[%s4141_s11 + $0x18] sm:$0xff]   ;;  %s5693_s1 = sld [smem:[#allocation12_spill]]  ;;  %s3206_s14 = sshll.u32 %s3901_s23, 7 }
  0xa5   : > { %v3631_v7 = vld [vmem:[%s4141_s11] sm:$0xff]   ;;  %3403 = vmatprep.subr.bf16.mxu0 %v3630_v6  ;;  %v3632_v8 = vld [vmem:[%s4141_s11 + $0x8] sm:$0xff]   ;;  %v3637_v13 = vld [vmem:[%s4141_s11 + $0x30] sm:$0xff]   ;;  %s5694_s12 = sld [smem:[#allocation13_spill]]  ;;  %vm1285_vm3 = vcmask 7168   ;;  %p3265_p12 = scmp.ne.s32.totalorder %s3901_s23, 1 }
  0xa6   : > { %3404 = vmatpush3.bf16.msra.mxu0 %v3630_v6  ;;  %3405 = vmatprep.mubr.msk.bf16.mxu0 %vm827_vm2, %v3631_v7  ;;  %v3635_v11 = vld [vmem:[%s4141_s11 + $0x20] sm:$0xff]   ;;  %v3636_v12 = vld [vmem:[%s4141_s11 + $0x28] sm:$0xff]   ;;  %v3638_v14 = vld [vmem:[%s4141_s11 + $0x38] sm:$0xff]  }
  0xa7   : > { %3453 = vmatprep.subr.bf16.mxu0 %v3630_v6  ;;  %v3639_v15 = vld [vmem:[%s4141_s11 + $0x40] sm:$0xff]   ;;  %v3640_v16 = vld [vmem:[%s4141_s11 + $0x48] sm:$0xff]   ;;  %v3641_v17 = vld [vmem:[%s4141_s11 + $0x50] sm:$0xff]  }
  0xa8   : > { %v3642_v18 = vld [vmem:[%s4141_s11 + $0x58] sm:$0xff]   ;;  %v3643_v19 = vld [vmem:[%s4141_s11 + $0x60] sm:$0xff]   ;;  %v3644_v20 = vld [vmem:[%s4141_s11 + $0x68] sm:$0xff]  }
  0xa9   : > { %3406 = vmatmul.mubr.msk.bf16.vlgmr.msra.gmra.mxu0 %vm827_vm2, %v3632_v8  ;;  %v3645_v21 = vld [vmem:[%s4141_s11 + $0x70] sm:$0xff]   ;;  %v3646_v22 = vld [vmem:[%s4141_s11 + $0x78] sm:$0xff]   ;;  %v698_v35 = vld [vmem:[#allocation5] sm:$0xff] }
  0xaa   : > { %3409 = vmatprep.mubr.msk.bf16.mxu0 %vm827_vm2, %v3633_v9  ;;  %3454 = vmatpush3.bf16.msra.mxu0 %v3630_v6  ;;  %s3207_s17 = sshll.u32 %s5693_s1, 7  ;;  %v712_v23 = vld [vmem:[#allocation5 + $0x28] sm:$0xff]  ;;  %v699_v29 = vld [vmem:[#allocation5 + $0x58] sm:$0xff]  ;;  %v697_v30 = vld [vmem:[#allocation5 + $0x30] sm:$0xff] }
  0xab   : > { %s695_s15 = ssub.s32 %s3206_s14, %s3207_s17  ;;  %s1607_s16 = sadd.s32 4, %s5694_s12  ;;  %v700_v32 = vld [vmem:[#allocation5 + $0x18] sm:$0xff]  ;;  %v703_v38 = vld [vmem:[#allocation5 + $0x8] sm:$0xff]  ;;  %v701_v44 = vld [vmem:[#allocation5 + $0x50] sm:$0xff] }
  0xac   : > { %s696_s4 = scvt.s32.f32 %s695_s15  ;;  %s1608_s24 = sld [smem:[#allocation7 + %s1607_s16]]  ;;  %v704_v45 = vld [vmem:[#allocation5 + $0x48] sm:$0xff]  ;;  %v707_v55 = vld [vmem:[#allocation5 + $0x10] sm:$0xff]  ;;  %v705_v2 = vld [vmem:[#allocation5 + $0x40] sm:$0xff] }
  0xad   : > { %s747_s18 = sld [smem:[#allocation7 + %s5694_s12]]  ;;  %v702_v50 = vld [vmem:[#allocation5 + $0x68] sm:$0xff]  ;;  %v708_v3 = vld [vmem:[#allocation5 + $0x38] sm:$0xff] }
  0xae   : > { %v4344_v24 = vstv %s696_s4 }
  0xaf   : > { %v4347_v25 = vadd.f32 %v4344_v24, %v712_v23  ;;  %v4359_v31 = vadd.f32 %v4344_v24, %v699_v29  ;;  %v4362_v33 = vadd.f32 %v4344_v24, %v697_v30  ;;  %v4365_v34 = vadd.f32 %v4344_v24, %v700_v32 }
  0xb0   : > { %v4372_v40 = vadd.f32 %v4344_v24, %v698_v35  ;;  %v4379_v43 = vadd.f32 %v4344_v24, %v703_v38  ;;  %v4392_v53 = vadd.f32 %v4344_v24, %v701_v44  ;;  %v4395_v54 = vadd.f32 %v4344_v24, %v704_v45  ;;  %v709_v35 = vld [vmem:[#allocation5 + $0x60] sm:$0xff] }
  0xb1   : > { %3410 = vmatmul.mubr.msk.bf16.gmra.mxu0 %vm827_vm2, %v3634_v10  ;;  %v745_v26 = vmin.f32 %v4347_v25, 0.0  ;;  %v732_v36 = vmin.f32 %v4359_v31, 0.0  ;;  %v730_v39 = vmin.f32 %v4362_v33, 0.0  ;;  %v733_v41 = vmin.f32 %v4365_v34, 0.0 }
  0xb2   : > { %3413 = vmatprep.mubr.msk.bf16.mxu0 %vm827_vm2, %v3635_v11  ;;  %v4350_v27 = vstv %s1608_s24  ;;  %v731_v47 = vmin.f32 %v4372_v40, 0.0  ;;  %v736_v52 = vmin.f32 %v4379_v43, 0.0  ;;  %v4404_v59 = vadd.f32 %v4344_v24, %v702_v50  ;;  %v706_v11 = vld [vmem:[#allocation5 + $0x20] sm:$0xff] }
  0xb3   : > { %v4355_v28 = vmul.f32 %v4350_v27, %v745_v26  ;;  %v4368_v37 = vstv %s747_s18  ;;  %v4407_v61 = vadd.f32 %v4344_v24, %v707_v55  ;;  %v734_v0 = vmin.f32 %v4392_v53, 0.0 }
  0xb4   : > { %v767_v42 = vmul.f32 %v4368_v37, %v732_v36  ;;  %v765_v46 = vmul.f32 %v4368_v37, %v730_v39  ;;  %v768_v49 = vmul.f32 %v4368_v37, %v733_v41  ;;  %v766_v58 = vmul.f32 %v4368_v37, %v731_v47 }
  0xb5   : > { %v771_v63 = vmul.f32 %v4368_v37, %v736_v52  ;;  %v737_v1 = vmin.f32 %v4395_v54, 0.0  ;;  %v735_v6 = vmin.f32 %v4404_v59, 0.0  ;;  %v740_v8 = vmin.f32 %v4407_v61, 0.0 }
  0xb6   : > { %v4423_v9 = vadd.f32 %v4344_v24, %v705_v2  ;;  %v4426_v10 = vadd.f32 %v4344_v24, %v708_v3  ;;  %v3938_v38 = vmov 0   ;;  %v1629_v25 = vmul.f32 %v4350_v27, %v732_v36 }
  0xb7   : > { %3628 = vset.pattern.permute.xlu1 %v3938_v38  ;;  %3629 = vset.pattern.permute.xlu0 %v3938_v38  ;;  %v1628_v31 = vmul.f32 %v4350_v27, %v731_v47  ;;  %v1633_v34 = vmul.f32 %v4350_v27, %v736_v52  ;;  %v1634_v52 = vmul.f32 %v4350_v27, %v737_v1 }
  0xb8   : > { %v1637_v53 = vmul.f32 %v4350_v27, %v740_v8 }
  0xb9   : > { %3414 = vmatmul.mubr.msk.bf16.gmra.mxu0 %vm827_vm2, %v3636_v12 }
  0xba   : > { %3417 = vmatprep.mubr.msk.bf16.mxu0 %vm827_vm2, %v3637_v13  ;;  %v769_v13 = vmul.f32 %v4368_v37, %v734_v0 }
  0xc1   : > { %3418 = vmatmul.mubr.msk.bf16.gmra.mxu0 %vm827_vm2, %v3638_v14  ;;  %v772_v14 = vmul.f32 %v4368_v37, %v737_v1 }
  0xc2   : > { %3455 = vmatprep.mubr.msk.bf16.mxu0 %vm827_vm2, %v3639_v15 }
  0xc9   : > { %3456 = vmatmul.mubr.msk.bf16.vlgmr.msra.gmra.mxu0 %vm827_vm2, %v3640_v16  ;;  %v711_v16 = vld [vmem:[#allocation5 + $0x78] sm:$0xff] }
  0xca   : > { %3459 = vmatprep.mubr.msk.bf16.mxu0 %vm827_vm2, %v3641_v17  ;;  %v770_v17 = vmul.f32 %v4368_v37, %v735_v6  ;;  %v4454_v30 = vadd.f32 %v4344_v24, %v711_v16 }
  0xcc   : > { %v744_v55 = vmin.f32 %v4454_v30, 0.0 }
  0xd1   : > { %3460 = vmatmul.mubr.msk.bf16.gmra.mxu0 %vm827_vm2, %v3642_v18  ;;  %v4441_v18 = vadd.f32 %v4344_v24, %v706_v11 }
  0xd2   : > { %3463 = vmatprep.mubr.msk.bf16.mxu0 %vm827_vm2, %v3643_v19 }
  0xd3   : > { %v739_v44 = vmin.f32 %v4441_v18, 0.0 }
  0xd9   : > { %3464 = vmatmul.mubr.msk.bf16.gmra.mxu0 %vm827_vm2, %v3644_v20  ;;  %v775_v20 = vmul.f32 %v4368_v37, %v740_v8 }
  0xda   : > { %3467 = vmatprep.mubr.msk.bf16.mxu0 %vm827_vm2, %v3645_v21  ;;  %v738_v21 = vmin.f32 %v4423_v9, 0.0  ;;  %v1641_v9 = vmul.f32 %v4350_v27, %v744_v55 }
  0xdc   : > { %v1635_v54 = vmul.f32 %v4350_v27, %v738_v21 }
  0xe1   : > { %3468 = vmatmul.mubr.msk.bf16.gmra.mxu0 %vm827_vm2, %v3646_v22  ;;  %v741_v22 = vmin.f32 %v4426_v10, 0.0 }
  0xe3   : > { %v776_v50 = vmul.f32 %v4368_v37, %v741_v22  ;;  %v1638_v59 = vmul.f32 %v4350_v27, %v741_v22 }
 0x169   : > { %v3407_v48 = vpop.f32.mrf.mxu0 }
 0x16a   : > { %v4388_v51 = vadd.f32 %v3407_v48, %v767_v42  ;;  %v710_v48 = vld [vmem:[#allocation5 + $0x70] sm:$0xff] }
 0x16b   : > { %v886_v56 = vpop.f32.mrf.mxu0 }
 0x16c   : > { %v4397_v57 = vadd.f32 %v886_v56, %v765_v46  ;;  %969 = vmax.xlane.f32.xlu1 %v4388_v51  ;;  %v773_v46 = vmul.f32 %v4368_v37, %v738_v21  ;;  %v4471_v56 = vadd.f32 %v4344_v24, %v709_v35 }
 0x16d   : > { %v3408_v60 = vpop.f32.mrf.mxu0 }
 0x16e   : > { %v4409_v62 = vadd.f32 %v3408_v60, %v768_v49  ;;  %965 = vmax.xlane.f32.xlu0 %v4397_v57  ;;  %v774_v60 = vmul.f32 %v4368_v37, %v739_v44  ;;  %v742_v11 = vmin.f32 %v4471_v56, 0.0 }
 0x16f   : > { %v889_v4 = vpop.f32.mrf.mxu0 }
 0x170   : > { %v4417_v5 = vadd.f32 %v889_v4, %v766_v58  ;;  %971 = vmax.xlane.f32.xlu1 %v4409_v62  ;;  %v1639_v10 = vmul.f32 %v4350_v27, %v742_v11 }
 0x171   : > { %v3411_v7 = vpop.f32.mrf.mxu0 }
 0x172   : > { %967 = vmax.xlane.f32.xlu0 %v4417_v5  ;;  %v4429_v12 = vadd.f32 %v3411_v7, %v771_v63  ;;  %v4478_v63 = vadd.f32 %v4344_v24, %v710_v48  ;;  %v779_v7 = vmul.f32 %v4368_v37, %v744_v55 }
 0x173   : > { %v902_v15 = vpop.f32.mrf.mxu0 }
 0x174   : > { %v4448_v23 = vadd.f32 %v902_v15, %v769_v13  ;;  %v743_v15 = vmin.f32 %v4478_v63, 0.0 }
 0x175   : > { %v3412_v19 = vpop.f32.mrf.mxu0 }
 0x176   : > { %977 = vmax.xlane.f32.xlu0 %v4429_v12  ;;  %v4451_v29 = vadd.f32 %v3412_v19, %v772_v14  ;;  %v780_v19 = vmul.f32 %v4368_v37, %v745_v26  ;;  %v1640_v18 = vmul.f32 %v4350_v27, %v743_v15 }
 0x177   : > { %v905_v32 = vpop.f32.mrf.mxu0 }
 0x178   : > { %v4456_v42 = vadd.f32 %v905_v32, %v770_v17  ;;  %979 = vmax.xlane.f32.xlu1 %v4451_v29  ;;  %v777_v17 = vmul.f32 %v4368_v37, %v742_v11  ;;  %v778_v32 = vmul.f32 %v4368_v37, %v743_v15  ;;  %v1630_v37 = vmul.f32 %v4350_v27, %v733_v41  ;;  %v4621_v15 = vld [vmem:[#allocation2] sm:$0xff] }
 0x179   : > { %v3415_v45 = vpop.f32.mrf.mxu0 }
 0x17a   : > { %973 = vmax.xlane.f32.xlu0 %v4448_v23  ;;  %v4464_v49 = vadd.f32 %v3415_v45, %v775_v20 }
 0x17b   : > { %v918_v58 = vpop.f32.mrf.mxu0 }
 0x17c   : > { %5695 = vst [vmem:[#allocation16_spill] sm:$0xff] %v4464_v49  ;;  %975 = vmax.xlane.f32.xlu1 %v4456_v42  ;;  %v4480_v3 = vadd.f32 %v918_v58, %v773_v46 }
 0x17d   : > { %v3416_v2 = vpop.f32.mrf.mxu0 }
 0x17e   : > { %5696 = vst [vmem:[#allocation17_spill] sm:$0xff] %v4480_v3  ;;  %v4482_v4 = vadd.f32 %v3416_v2, %v776_v50  ;;  %985 = vmax.xlane.f32.xlu0 %v4464_v49 }
 0x17f   : > { %v921_v13 = vpop.f32.mrf.mxu0 }
 0x180   : > { %5697 = vst [vmem:[#allocation18_spill] sm:$0xff] %v4482_v4  ;;  %v4489_v14 = vadd.f32 %v921_v13, %v774_v60  ;;  %987 = vmax.xlane.f32.xlu1 %v4482_v4  ;;  %v1627_v60 = vmul.f32 %v4350_v27, %v730_v39  ;;  %v1631_v39 = vmul.f32 %v4350_v27, %v734_v0 }
 0x181   : > { %v3419_v24 = vpop.f32.mrf.mxu0 }
 0x182   : > { %5698 = vst [vmem:[#allocation19_spill] sm:$0xff] %v4489_v14  ;;  %v4493_v16 = vadd.f32 %v3419_v24, %v779_v7  ;;  %981 = vmax.xlane.f32.xlu0 %v4480_v3  ;;  %v4852_v3 = vld [vmem:[#allocation2 + $0xb0] sm:$0xff] }
 0x183   : > { %v934_v20 = vpop.f32.mrf.mxu0  ;;  %5730 = vst [vmem:[#allocation51_spill] sm:$0xff] %v4852_v3 }
 0x184   : > { %5699 = vst [vmem:[#allocation20_spill] sm:$0xff] %v4493_v16  ;;  %983 = vmax.xlane.f32.xlu1 %v4489_v14  ;;  %v4506_v38 = vadd.f32 %v934_v20, %v777_v17 }
 0x185   : > { %v3420_v35 = vpop.f32.mrf.mxu0 }
 0x186   : > { %5700 = vst [vmem:[#allocation21_spill] sm:$0xff] %v4506_v38  ;;  %v4508_v45 = vadd.f32 %v3420_v35, %v780_v19  ;;  %993 = vmax.xlane.f32.xlu0 %v4493_v16  ;;  %v1632_v19 = vmul.f32 %v4350_v27, %v735_v6 }
 0x187   : > { %v937_v46 = vpop.f32.mrf.mxu0 }
 0x188   : > { %5701 = vst [vmem:[#allocation22_spill] sm:$0xff] %v4508_v45  ;;  %v4511_v48 = vadd.f32 %v937_v46, %v778_v32  ;;  %995 = vmax.xlane.f32.xlu1 %v4508_v45  ;;  %v1636_v46 = vmul.f32 %v4350_v27, %v739_v44  ;;  %v4616_v27 = vld [vmem:[#allocation2 + $0x10] sm:$0xff]  ;;  %v4831_v45 = vld [vmem:[#allocation2 + $0x80] sm:$0xff] }
 0x189   : > { %v3457_v26 = vpop.f32.mrf.mxu0 }
 0x18a   : > { %5702 = vst [vmem:[#allocation23_spill] sm:$0xff] %v4511_v48  ;;  %989 = vmax.xlane.f32.xlu0 %v4506_v38  ;;  %v4521_v58 = vadd.f32 %v3457_v26, %v1629_v25 }
 0x18b   : > { %v1741_v50 = vpop.f32.mrf.mxu0 }
 0x18c   : > { %5703 = vst [vmem:[#allocation24_spill] sm:$0xff] %v4521_v58  ;;  %991 = vmax.xlane.f32.xlu1 %v4511_v48  ;;  %v4535_v41 = vadd.f32 %v1741_v50, %v1627_v60  ;;  %v4610_v50 = vld [vmem:[%s4139_s20 + $0x38] sm:$0xff]  }
 0x18d   : > { %v3458_v36 = vpop.f32.mrf.mxu0  ;;  %3421 = vmatprep.subr.bf16.mxu1 %v4610_v50  ;;  %3471 = vmatprep.subr.bf16.mxu0 %v4610_v50 }
 0x18e   : > { %v4530_v2 = vadd.f32 %v3458_v36, %v1630_v37  ;;  %5705 = vst [vmem:[#allocation26_spill] sm:$0xff] %v4535_v41  ;;  %3422 = vmatpush3.bf16.msra.mxu1 %v4610_v50  ;;  %3472 = vmatpush3.bf16.msra.mxu0 %v4610_v50  ;;  %v4628_v36 = vld [vmem:[#allocation2 + $0x18] sm:$0xff] }
 0x18f   : > { %v1744_v7 = vpop.f32.mrf.mxu0 }
 0x190   : > { %5704 = vst [vmem:[#allocation25_spill] sm:$0xff] %v4530_v2  ;;  %1827 = vmax.xlane.f32.xlu0 %v4530_v2  ;;  %v4538_v33 = vadd.f32 %v1744_v7, %v1628_v31  ;;  %1825 = vmax.xlane.f32.xlu1 %v4521_v58  ;;  %v4737_v7 = vld [vmem:[#allocation2 + $0x40] sm:$0xff]  ;;  %v4774_v2 = vld [vmem:[#allocation2 + $0x78] sm:$0xff] }
 0x191   : > { %v3461_v40 = vpop.f32.mrf.mxu0 }
 0x192   : > { %5706 = vst [vmem:[#allocation27_spill] sm:$0xff] %v4538_v33  ;;  %v4544_v13 = vadd.f32 %v3461_v40, %v1633_v34 }
 0x193   : > { %v1757_v47 = vpop.f32.mrf.mxu0 }
 0x194   : > { %5707 = vst [vmem:[#allocation28_spill] sm:$0xff] %v4544_v13  ;;  %1823 = vmax.xlane.f32.xlu0 %v4538_v33  ;;  %v4547_v43 = vadd.f32 %v1757_v47, %v1631_v39  ;;  %1821 = vmax.xlane.f32.xlu1 %v4535_v41  ;;  %v4641_v39 = vld [vmem:[%s4139_s20 + $0x28] sm:$0xff]   ;;  %v4813_v33 = vld [vmem:[#allocation2 + $0x98] sm:$0xff] }
 0x195   : > { %v3462_v24 = vpop.f32.mrf.mxu0  ;;  %v4643_v47 = vld [vmem:[#allocation2 + $0x8] sm:$0xff] }
 0x196   : > { %5708 = vst [vmem:[#allocation29_spill] sm:$0xff] %v4547_v43  ;;  %v4557_v17 = vadd.f32 %v3462_v24, %v1634_v52 }
 0x197   : > { %v1760_v0 = vpop.f32.mrf.mxu0 }
 0x198   : > { %1829 = vmax.xlane.f32.xlu0 %v4547_v43  ;;  %5709 = vst [vmem:[#allocation30_spill] sm:$0xff] %v4557_v17  ;;  %1833 = vmax.xlane.f32.xlu1 %v4544_v13  ;;  %v4568_v8 = vadd.f32 %v1760_v0, %v1632_v19  ;;  %v4663_v19 = vld [vmem:[%s4139_s20 + $0x20] sm:$0xff]   ;;  %v4829_v43 = vld [vmem:[#allocation2 + $0x88] sm:$0xff] }
 0x199   : > { %v3465_v1 = vpop.f32.mrf.mxu0  ;;  %5727 = vst [vmem:[#allocation48_spill] sm:$0xff] %v4829_v43 }
 0x19a   : > { %v4566_v20 = vadd.f32 %v3465_v1, %v1637_v53  ;;  %5711 = vst [vmem:[#allocation32_spill] sm:$0xff] %v4568_v8  ;;  %v4748_v1 = vld [vmem:[#allocation2 + $0x48] sm:$0xff] }
 0x19b   : > { %v1773_v61 = vpop.f32.mrf.mxu0 }
 0x19c   : > { %5710 = vst [vmem:[#allocation31_spill] sm:$0xff] %v4566_v20  ;;  %1835 = vmax.xlane.f32.xlu0 %v4557_v17  ;;  %v4571_v32 = vadd.f32 %v1773_v61, %v1635_v54  ;;  %1841 = vmax.xlane.f32.xlu1 %v4566_v20  ;;  %v4666_v54 = vld [vmem:[#allocation2 + $0x30] sm:$0xff]  ;;  %v4796_v20 = vld [vmem:[#allocation2 + $0x68] sm:$0xff]  ;;  %v4850_v17 = vld [vmem:[#allocation2 + $0xa0] sm:$0xff] }
 0x19d   : > { %v3466_v6 = vpop.f32.mrf.mxu0  ;;  %5729 = vst [vmem:[#allocation50_spill] sm:$0xff] %v4850_v17 }
 0x19e   : > { %5712 = vst [vmem:[#allocation33_spill] sm:$0xff] %v4571_v32  ;;  %v4581_v35 = vadd.f32 %v3466_v6, %v1638_v59  ;;  %v4674_v59 = vld [vmem:[#allocation2 + $0x38] sm:$0xff] }
 0x19f   : > { %v1776_v21 = vpop.f32.mrf.mxu0 }
 0x1a0   : > { %1831 = vmax.xlane.f32.xlu0 %v4568_v8  ;;  %5713 = vst [vmem:[#allocation34_spill] sm:$0xff] %v4581_v35  ;;  %1837 = vmax.xlane.f32.xlu1 %v4571_v32  ;;  %v4593_v25 = vadd.f32 %v1776_v21, %v1636_v46  ;;  %v4685_v21 = vld [vmem:[#allocation2 + $0x20] sm:$0xff] }
 0x1a1   : > { %v3469_v22 = vpop.f32.mrf.mxu0 }
 0x1a2   : > { %v4590_v30 = vadd.f32 %v3469_v22, %v1641_v9  ;;  %5715 = vst [vmem:[#allocation36_spill] sm:$0xff] %v4593_v25  ;;  %v4682_v9 = vld [vmem:[%s4139_s20 + $0x18] sm:$0xff]  }
 0x1a3   : > { %v1789_v55 = vpop.f32.mrf.mxu0 }
 0x1a4   : > { %5714 = vst [vmem:[#allocation35_spill] sm:$0xff] %v4590_v30  ;;  %1843 = vmax.xlane.f32.xlu0 %v4581_v35  ;;  %v4595_v26 = vadd.f32 %v1789_v55, %v1639_v10  ;;  %1849 = vmax.xlane.f32.xlu1 %v4590_v30 }
 0x1a5   : > { %v3470_v44 = vpop.f32.mrf.mxu0 }
 0x1a6   : > { %5716 = vst [vmem:[#allocation37_spill] sm:$0xff] %v4595_v26  ;;  %v4602_v56 = vadd.f32 %v3470_v44, %v4355_v28  ;;  %v4619_v28 = vld [vmem:[%s4139_s20 + $0x30] sm:$0xff]  }
 0x1a7   : > { %v1792_v11 = vpop.f32.mrf.mxu0  ;;  %3423 = vmatprep.subr.bf16.mxu1 %v4619_v28  ;;  %3473 = vmatprep.subr.bf16.mxu0 %v4619_v28 }
 0x1a8   : > { %5717 = vst [vmem:[#allocation38_spill] sm:$0xff] %v4602_v56  ;;  %1839 = vmax.xlane.f32.xlu0 %v4593_v25  ;;  %v4605_v37 = vadd.f32 %v1792_v11, %v1640_v18  ;;  %1845 = vmax.xlane.f32.xlu1 %v4595_v26  ;;  %v4696_v18 = vld [vmem:[#allocation2 + $0x28] sm:$0xff]  ;;  %v4763_v26 = vld [vmem:[#allocation2 + $0x70] sm:$0xff] }
 0x1a9   : > { %3424 = vmatpush3.bf16.msra.mxu1 %v4619_v28  ;;  %3474 = vmatpush3.bf16.msra.mxu0 %v4619_v28  ;;  %5722 = vst [vmem:[#allocation43_spill] sm:$0xff] %v4763_v26 }
 0x1aa   : > { %5718 = vst [vmem:[#allocation39_spill] sm:$0xff] %v4605_v37  ;;  %3425 = vmatprep.subr.bf16.mxu1 %v4641_v39  ;;  %3475 = vmatprep.subr.bf16.mxu0 %v4641_v39 }
 0x1ac   : > { %1847 = vmax.xlane.f32.xlu0 %v4605_v37 }
 0x1ad   : > { %3426 = vmatpush3.bf16.msra.mxu1 %v4641_v39  ;;  %3476 = vmatpush3.bf16.msra.mxu0 %v4641_v39 }
 0x1ae   : > { %3427 = vmatprep.subr.bf16.mxu1 %v4663_v19  ;;  %3477 = vmatprep.subr.bf16.mxu0 %v4663_v19 }
 0x1b1   : > { %3428 = vmatpush3.bf16.msra.mxu1 %v4663_v19  ;;  %3478 = vmatpush3.bf16.msra.mxu0 %v4663_v19 }
 0x1b2   : > { %3429 = vmatprep.subr.bf16.mxu1 %v4682_v9  ;;  %3479 = vmatprep.subr.bf16.mxu0 %v4682_v9 }
 0x1b5   : > { %3430 = vmatpush3.bf16.msra.mxu1 %v4682_v9  ;;  %3480 = vmatpush3.bf16.msra.mxu0 %v4682_v9 }
 0x1f5   : > { %v970_v63 = vpop.xlane.xlu1 %969 }
 0x1f6   : > { %v4624_v60 = vmax.f32 %v4616_v27, %v970_v63  ;;  %v4708_v63 = vld [vmem:[%s4139_s20 + $0x10] sm:$0xff]  }
 0x1f7   : > { %v966_v31 = vpop.xlane.xlu0 %965  ;;  %3431 = vmatprep.subr.bf16.mxu1 %v4708_v63  ;;  %3481 = vmatprep.subr.bf16.mxu0 %v4708_v63 }
 0x1f8   : > { %1593 = vst.msk [vmem:[#allocation2 + $0x10] sm:$0xff] %vm1285_vm3, %v4624_v60  ;;  %v4637_v34 = vmax.f32 %v4621_v15, %v966_v31  ;;  %1073 = vperm.xlu1 %3628, %v4624_v60   ;;  %3432 = vmatpush3.bf16.msra.mxu1 %v4708_v63 }
 0x1f9   : > { %v972_v40 = vpop.xlane.xlu1 %971  ;;  %3482 = vmatpush3.bf16.msra.mxu0 %v4708_v63 }
 0x1fa   : > { %1591 = vst.msk [vmem:[#allocation2] sm:$0xff] %vm1285_vm3, %v4637_v34  ;;  %v4648_v52 = vmax.f32 %v4628_v36, %v972_v40  ;;  %1063 = vperm.xlu0 %3629, %v4637_v34   ;;  %v4711_v40 = vld [vmem:[#allocation2 + $0x50] sm:$0xff] }
 0x1fb   : > { %v968_v24 = vpop.xlane.xlu0 %967 }
 0x1fc   : > { %1594 = vst.msk [vmem:[#allocation2 + $0x18] sm:$0xff] %vm1285_vm3, %v4648_v52  ;;  %v4659_v0 = vmax.f32 %v4643_v47, %v968_v24  ;;  %1078 = vperm.xlu1 %3628, %v4648_v52   ;;  %v4734_v24 = vld [vmem:[%s4139_s20 + $0x8] sm:$0xff]  }
 0x1fd   : > { %5720 = vst [vmem:[#allocation41_spill] sm:$0xff] %v4734_v24  ;;  %3433 = vmatprep.subr.bf16.mxu1 %v4734_v24  ;;  %3483 = vmatprep.subr.bf16.mxu0 %v4734_v24 }
 0x1fe   : > { %1592 = vst.msk [vmem:[#allocation2 + $0x8] sm:$0xff] %vm1285_vm3, %v4659_v0  ;;  %3434 = vmatpush3.bf16.msra.mxu1 %v4734_v24  ;;  %3484 = vmatpush3.bf16.msra.mxu0 %v4734_v24 }
 0x1ff   : > { %v978_v61 = vpop.xlane.xlu0 %977 }
 0x200   : > { %1068 = vperm.xlu1 %3628, %v4659_v0   ;;  %v4679_v6 = vmax.f32 %v4666_v54, %v978_v61 }
 0x201   : > { %v980_v46 = vpop.xlane.xlu1 %979 }
 0x202   : > { %1597 = vst.msk [vmem:[#allocation2 + $0x30] sm:$0xff] %vm1285_vm3, %v4679_v6  ;;  %v4692_v22 = vmax.f32 %v4674_v59, %v980_v46 }
 0x203   : > { %v974_v55 = vpop.xlane.xlu0 %973 }
 0x204   : > { %1093 = vperm.xlu1 %3628, %v4679_v6   ;;  %v4701_v44 = vmax.f32 %v4685_v21, %v974_v55  ;;  %1598 = vst.msk [vmem:[#allocation2 + $0x38] sm:$0xff] %vm1285_vm3, %v4692_v22  ;;  %v4722_v55 = vld [vmem:[#allocation2 + $0x58] sm:$0xff] }
 0x205   : > { %v976_v31 = vpop.xlane.xlu1 %975 }
 0x206   : > { %1595 = vst.msk [vmem:[#allocation2 + $0x20] sm:$0xff] %vm1285_vm3, %v4701_v44  ;;  %v4718_v61 = vmax.f32 %v4696_v18, %v976_v31 }
 0x207   : > { %v986_v46 = vpop.xlane.xlu0 %985 }
 0x208   : > { %1083 = vperm.xlu1 %3628, %v4701_v44   ;;  %1596 = vst.msk [vmem:[#allocation2 + $0x28] sm:$0xff] %vm1285_vm3, %v4718_v61  ;;  %v4731_v31 = vmax.f32 %v4711_v40, %v986_v46 }
 0x209   : > { %v988_v11 = vpop.xlane.xlu1 %987 }
 0x20a   : > { %5719 = vst [vmem:[#allocation40_spill] sm:$0xff] %v4731_v31  ;;  %1601 = vst.msk [vmem:[#allocation2 + $0x50] sm:$0xff] %vm1285_vm3, %v4731_v31  ;;  %v4744_v10 = vmax.f32 %v4722_v55, %v988_v11  ;;  %v4760_v11 = vld [vmem:[%s4139_s20] sm:$0xff]  }
 0x20b   : > { %v982_v46 = vpop.xlane.xlu0 %981  ;;  %5721 = vst [vmem:[#allocation42_spill] sm:$0xff] %v4760_v11  ;;  %3435 = vmatprep.subr.bf16.mxu1 %v4760_v11  ;;  %3485 = vmatprep.subr.bf16.mxu0 %v4760_v11 }
 0x20c   : > { %1098 = vperm.xlu1 %3628, %v4692_v22   ;;  %v4753_v30 = vmax.f32 %v4737_v7, %v982_v46  ;;  %1602 = vst.msk [vmem:[#allocation2 + $0x58] sm:$0xff] %vm1285_vm3, %v4744_v10  ;;  %3436 = vmatpush3.bf16.msra.mxu1 %v4760_v11 }
 0x20d   : > { %v984_v37 = vpop.xlane.xlu1 %983  ;;  %3503 = vmatprep.subr.bf16.mxu1 %v4610_v50  ;;  %3486 = vmatpush3.bf16.msra.mxu0 %v4760_v11  ;;  %v4888_v11 = vld [vmem:[#allocation2 + $0xa8] sm:$0xff] }
 0x20e   : > { %1599 = vst.msk [vmem:[#allocation2 + $0x40] sm:$0xff] %vm1285_vm3, %v4753_v30  ;;  %v4770_v46 = vmax.f32 %v4748_v1, %v984_v37  ;;  %v4786_v37 = vld [vmem:[#allocation2 + $0x60] sm:$0xff] }
 0x20f   : > { %v994_v53 = vpop.xlane.xlu0 %993  ;;  %5724 = vst [vmem:[#allocation45_spill] sm:$0xff] %v4786_v37 }
 0x210   : > { %1088 = vperm.xlu1 %3628, %v4718_v61   ;;  %v4779_v32 = vmax.f32 %v4763_v26, %v994_v53  ;;  %1600 = vst.msk [vmem:[#allocation2 + $0x48] sm:$0xff] %vm1285_vm3, %v4770_v46  ;;  %v4869_v26 = vld [vmem:[#allocation2 + $0xb8] sm:$0xff] }
 0x211   : > { %v996_v25 = vpop.xlane.xlu1 %995 }
 0x212   : > { %5723 = vst [vmem:[#allocation44_spill] sm:$0xff] %v4779_v32  ;;  %1605 = vst.msk [vmem:[#allocation2 + $0x70] sm:$0xff] %vm1285_vm3, %v4779_v32  ;;  %v4794_v53 = vmax.f32 %v4774_v2, %v996_v25 }
 0x213   : > { %v990_v58 = vpop.xlane.xlu0 %989 }
 0x214   : > { %1113 = vperm.xlu1 %3628, %v4731_v31   ;;  %v4800_v13 = vmax.f32 %v4786_v37, %v990_v58  ;;  %1606 = vst.msk [vmem:[#allocation2 + $0x78] sm:$0xff] %vm1285_vm3, %v4794_v53  ;;  %v4815_v58 = vld [vmem:[#allocation2 + $0x90] sm:$0xff] }
 0x215   : > { %v992_v35 = vpop.xlane.xlu1 %991  ;;  %5726 = vst [vmem:[#allocation47_spill] sm:$0xff] %v4815_v58 }
 0x216   : > { %5725 = vst [vmem:[#allocation46_spill] sm:$0xff] %v4800_v13  ;;  %1603 = vst.msk [vmem:[#allocation2 + $0x60] sm:$0xff] %vm1285_vm3, %v4800_v13  ;;  %v4811_v25 = vmax.f32 %v4796_v20, %v992_v35 }
 0x218   : > { %1103 = vperm.xlu1 %3628, %v4753_v30   ;;  %1604 = vst.msk [vmem:[#allocation2 + $0x68] sm:$0xff] %vm1285_vm3, %v4811_v25 }
 0x219   : > { %1851 = vmax.xlane.f32.xlu0 %v4602_v56  ;;  %v1828_v41 = vpop.xlane.xlu0 %1827  ;;  %v1826_v48 = vpop.xlane.xlu1 %1825  ;;  %v4871_v56 = vld [vmem:[#allocation2 + $0xd0] sm:$0xff] }
 0x21a   : > { %v4824_v38 = vmax.f32 %v4813_v33, %v1828_v41  ;;  %v4827_v35 = vmax.f32 %v4815_v58, %v1826_v48  ;;  %v1013_v48 = vsub.f32 %v4621_v15, %v4637_v34  ;;  %5733 = vst [vmem:[#allocation54_spill] sm:$0xff] %v4871_v56  ;;  %v4890_v15 = vld [vmem:[#allocation2 + $0xc0] sm:$0xff] }
 0x21b   : > { %5734 = vst [vmem:[#allocation55_spill] sm:$0xff] %v4890_v15 }
 0x21c   : > { %1133 = vperm.xlu1 %3628, %v4779_v32   ;;  %2403 = vst.msk [vmem:[#allocation2 + $0x98] sm:$0xff] %vm1285_vm3, %v4824_v38  ;;  %2402 = vst.msk [vmem:[#allocation2 + $0x90] sm:$0xff] %vm1285_vm3, %v4827_v35 }
 0x21d   : > { %v1824_v41 = vpop.xlane.xlu0 %1823  ;;  %v1822_v8 = vpop.xlane.xlu1 %1821 }
 0x21e   : > { %v4845_v16 = vmax.f32 %v4829_v43, %v1824_v41  ;;  %v4848_v14 = vmax.f32 %v4831_v45, %v1822_v8  ;;  %v1029_v8 = vmul.f32 1.442695, %v1013_v48  ;;  %v4909_v48 = vld [vmem:[#allocation2 + $0xf0] sm:$0xff] }
 0x21f   : > { %5735 = vst [vmem:[#allocation56_spill] sm:$0xff] %v4909_v48 }
 0x220   : > { %5728 = vst [vmem:[#allocation49_spill] sm:$0xff] %v4845_v16  ;;  %1123 = vperm.xlu1 %3628, %v4800_v13   ;;  %2401 = vst.msk [vmem:[#allocation2 + $0x88] sm:$0xff] %vm1285_vm3, %v4845_v16  ;;  %3655 = vpow2.f32 %v1029_v8  ;;  %v4927_v8 = vld [vmem:[#allocation2 + $0xc8] sm:$0xff]  ;;  %v4929_v13 = vld [vmem:[#allocation2 + $0xe0] sm:$0xff] }
 0x221   : > { %2400 = vst.msk [vmem:[#allocation2 + $0x80] sm:$0xff] %vm1285_vm3, %v4848_v14  ;;  %v1830_v34 = vpop.xlane.xlu0 %1829  ;;  %v1834_v41 = vpop.xlane.xlu1 %1833  ;;  %5736 = vst [vmem:[#allocation57_spill] sm:$0xff] %v4929_v13 }
 0x222   : > { %v4864_v58 = vmax.f32 %v4850_v17, %v1830_v34  ;;  %v4867_v32 = vmax.f32 %v4852_v3, %v1834_v41 }
 0x224   : > { %5731 = vst [vmem:[#allocation52_spill] sm:$0xff] %v4864_v58  ;;  %5732 = vst [vmem:[#allocation53_spill] sm:$0xff] %v4867_v32  ;;  %1924 = vperm.xlu1 %3628, %v4845_v16  }
 0x225   : > { %2404 = vst.msk [vmem:[#allocation2 + $0xa0] sm:$0xff] %vm1285_vm3, %v4864_v58  ;;  %2406 = vst.msk [vmem:[#allocation2 + $0xb0] sm:$0xff] %vm1285_vm3, %v4867_v32  ;;  %v1836_v34 = vpop.xlane.xlu0 %1835  ;;  %v1842_v41 = vpop.xlane.xlu1 %1841 }
 0x226   : > { %v4883_v43 = vmax.f32 %v4869_v26, %v1836_v34  ;;  %v4886_v16 = vmax.f32 %v4871_v56, %v1842_v41  ;;  %v4949_v56 = vld [vmem:[#allocation2 + $0xe8] sm:$0xff] }
 0x228   : > { %1939 = vperm.xlu1 %3628, %v4864_v58   ;;  %2407 = vst.msk [vmem:[#allocation2 + $0xb8] sm:$0xff] %vm1285_vm3, %v4883_v43  ;;  %2410 = vst.msk [vmem:[#allocation2 + $0xd0] sm:$0xff] %vm1285_vm3, %v4886_v16  ;;  %v4907_v58 = vld [vmem:[#allocation2 + $0xd8] sm:$0xff] }
 0x229   : > { %v1832_v34 = vpop.xlane.xlu0 %1831  ;;  %v1838_v41 = vpop.xlane.xlu1 %1837 }
 0x22a   : > { %v4902_v3 = vmax.f32 %v4888_v11, %v1832_v34  ;;  %v4905_v17 = vmax.f32 %v4890_v15, %v1838_v41 }
 0x22c   : > { %1954 = vperm.xlu1 %3628, %v4883_v43   ;;  %2405 = vst.msk [vmem:[#allocation2 + $0xa8] sm:$0xff] %vm1285_vm3, %v4902_v3  ;;  %2408 = vst.msk [vmem:[#allocation2 + $0xc0] sm:$0xff] %vm1285_vm3, %v4905_v17 }
 0x22d   : > { %v1844_v34 = vpop.xlane.xlu0 %1843  ;;  %v1850_v41 = vpop.xlane.xlu1 %1849 }
 0x22e   : > { %v4921_v4 = vmax.f32 %v4907_v58, %v1844_v34  ;;  %v4924_v49 = vmax.f32 %v4909_v48, %v1850_v41  ;;  %v4940_v37 = vpop.eup %3655  ;;  %v5739_v34 = vsub.f32 %v4628_v36, %v4648_v52  ;;  %v5742_v36 = vsub.f32 %v4748_v1, %v4770_v46 }
 0x22f   : > { %1118 = vperm.xlu0 %3629, %v4744_v10   ;;  %5737 = vst [vmem:[#allocation58_spill] sm:$0xff] %v4940_v37 }
 0x230   : > { %1944 = vperm.xlu1 %3628, %v4902_v3   ;;  %2411 = vst.msk [vmem:[#allocation2 + $0xd8] sm:$0xff] %vm1285_vm3, %v4921_v4  ;;  %2414 = vst.msk [vmem:[#allocation2 + $0xf0] sm:$0xff] %vm1285_vm3, %v4924_v49  ;;  %v1047_v52 = vmul.f32 1.442695, %v5742_v36 }
 0x231   : > { %v1840_v41 = vpop.xlane.xlu0 %1839  ;;  %v1846_v15 = vpop.xlane.xlu1 %1845 }
 0x232   : > { %v4943_v24 = vmax.f32 %v4927_v8, %v1840_v41  ;;  %v4946_v31 = vmax.f32 %v4929_v13, %v1846_v15  ;;  %v5740_v13 = vsub.f32 %v4696_v18, %v4718_v61 }
 0x233   : > { %1320 = vperm.xlu0 %3629, %v4940_v37   ;;  %v1035_v37 = vmul.f32 1.442695, %v5739_v34 }
 0x234   : > { %1974 = vperm.xlu1 %3628, %v4921_v4   ;;  %2409 = vst.msk [vmem:[#allocation2 + $0xc8] sm:$0xff] %vm1285_vm3, %v4943_v24  ;;  %2412 = vst.msk [vmem:[#allocation2 + $0xe0] sm:$0xff] %vm1285_vm3, %v4946_v31 }
 0x235   : > { %v1848_v15 = vpop.xlane.xlu0 %1847 }
 0x236   : > { %v4961_v41 = vmax.f32 %v4949_v56, %v1848_v15  ;;  %v5738_v15 = vsub.f32 %v4643_v47, %v4659_v0  ;;  %v5741_v47 = vsub.f32 %v4674_v59, %v4692_v22  ;;  %v5745_v22 = vsub.f32 %v4774_v2, %v4794_v53 }
 0x237   : > { %1108 = vperm.xlu0 %3629, %v4770_v46  }
 0x238   : > { %1964 = vperm.xlu1 %3628, %v4943_v24   ;;  %2413 = vst.msk [vmem:[#allocation2 + $0xe8] sm:$0xff] %vm1285_vm3, %v4961_v41  ;;  %v1031_v48 = vmul.f32 1.442695, %v5738_v15  ;;  %v1043_v0 = vmul.f32 1.442695, %v5741_v47  ;;  %v5748_v15 = vsub.f32 %v4869_v26, %v4883_v43 }
 0x239   : > { %v1059_v46 = vmul.f32 1.442695, %v5745_v22 }
 0x23a   : > { %3657 = vpow2.f32 %v1031_v48 }
 0x23b   : > { %1138 = vperm.xlu0 %3629, %v4794_v53   ;;  %3659 = vpow2.f32 %v1035_v37 }
 0x23c   : > { %1934 = vperm.xlu1 %3628, %v4824_v38  }
 0x23f   : > { %1128 = vperm.xlu0 %3629, %v4811_v25  }
 0x240   : > { %1984 = vperm.xlu1 %3628, %v4961_v41  }
 0x243   : > { %1919 = vperm.xlu0 %3629, %v4848_v14  }
 0x247   : > { %1949 = vperm.xlu0 %3629, %v4867_v32   ;;  %v1039_v32 = vmul.f32 1.442695, %v5740_v13  ;;  %v4995_v48 = vpop.eup %3657  ;;  %v5743_v13 = vsub.f32 %v4722_v55, %v4744_v10  ;;  %v5746_v55 = vsub.f32 %v4831_v45, %v4848_v14  ;;  %v1899_v14 = vmul.f32 1.442695, %v5748_v15 }
 0x248   : > { %v5001_v61 = vpop.eup %3659 }
 0x249   : > { %3661 = vpow2.f32 %v1039_v32  ;;  %v1051_v18 = vmul.f32 1.442695, %v5743_v13  ;;  %v5744_v32 = vsub.f32 %v4796_v20, %v4811_v25  ;;  %v1885_v37 = vmul.f32 1.442695, %v5746_v55 }
 0x24a   : > { %3663 = vpow2.f32 %v1043_v0  ;;  %v5747_v25 = vsub.f32 %v4813_v33, %v4824_v38  ;;  %v5749_v38 = vsub.f32 %v4888_v11, %v4902_v3  ;;  %v5751_v55 = vsub.f32 %v4927_v8, %v4943_v24 }
 0x24b   : > { %1969 = vperm.xlu0 %3629, %v4886_v16   ;;  %3665 = vpow2.f32 %v1047_v52  ;;  %v1055_v59 = vmul.f32 1.442695, %v5744_v32 }
 0x24c   : > { %3667 = vpow2.f32 %v1051_v18  ;;  %v1891_v34 = vmul.f32 1.442695, %v5747_v25  ;;  %v1895_v33 = vmul.f32 1.442695, %v5749_v38 }
 0x24d   : > { %3669 = vpow2.f32 %v1055_v59 }
 0x24e   : > { %3671 = vpow2.f32 %v1059_v46 }
 0x24f   : > { %1959 = vperm.xlu0 %3629, %v4905_v17   ;;  %3673 = vpow2.f32 %v1885_v37 }
 0x250   : > { %3675 = vpow2.f32 %v1891_v34 }
 0x251   : > { %3677 = vpow2.f32 %v1899_v14 }
 0x252   : > { %3679 = vpow2.f32 %v1895_v33 }
 0x253   : > { %1929 = vperm.xlu0 %3629, %v4827_v35  }
 0x256   : > { %v5007_v1 = vpop.eup %3661 }
 0x257   : > { %1979 = vperm.xlu0 %3629, %v4946_v31   ;;  %v5013_v10 = vpop.eup %3663 }
 0x258   : > { %v5019_v20 = vpop.eup %3665 }
 0x259   : > { %v5025_v2 = vpop.eup %3667 }
 0x25a   : > { %v5031_v45 = vpop.eup %3669 }
 0x25b   : > { %1989 = vperm.xlu0 %3629, %v4924_v49   ;;  %v5039_v13 = vpop.eup %3671 }
 0x25c   : > { %v5047_v3 = vpop.eup %3673 }
 0x25d   : > { %v5053_v37 = vpop.eup %3675 }
 0x25e   : > { %v5059_v25 = vpop.eup %3677 }
 0x25f   : > { %1325 = vperm.xlu0 %3629, %v4995_v48  }
 0x263   : > { %1335 = vperm.xlu0 %3629, %v5001_v61  }
 0x267   : > { %1345 = vperm.xlu0 %3629, %v5007_v1  }
 0x26b   : > { %1355 = vperm.xlu0 %3629, %v5013_v10  }
 0x26f   : > { %1365 = vperm.xlu0 %3629, %v5019_v20  }
 0x273   : > { %v1074_v53 = vpop.permute.xlu1 %1073  ;;  %1375 = vperm.xlu0 %3629, %v5025_v2  }
 0x274   : > { %v1143_v36 = vsub.f32 %v4388_v51, %v1074_v53  ;;  %v5064_v53 = vpop.eup %3679 }
 0x275   : > { %v1064_v52 = vpop.permute.xlu0 %1063 }
 0x276   : > { %v1141_v26 = vsub.f32 %v4397_v57, %v1064_v52  ;;  %v1903_v57 = vmul.f32 1.442695, %v5751_v55 }
 0x277   : > { %v1079_v47 = vpop.permute.xlu1 %1078  ;;  %1385 = vperm.xlu0 %3629, %v5031_v45  }
 0x278   : > { %v1144_v0 = vsub.f32 %v4409_v62, %v1079_v47  ;;  %v5750_v62 = vsub.f32 %v4907_v58, %v4921_v4  ;;  %v5752_v4 = vsub.f32 %v4949_v56, %v4961_v41 }
 0x27a   : > { %v1158_v18 = vpack.c.bf16 %v1144_v0, %v1143_v36  ;;  %v1907_v59 = vmul.f32 1.442695, %v5750_v62  ;;  %v1911_v58 = vmul.f32 1.442695, %v5752_v4 }
 0x27b   : > { %v1069_v43 = vpop.permute.xlu1 %1068  ;;  %1395 = vperm.xlu0 %3629, %v5039_v13  }
 0x27c   : > { %v1142_v32 = vsub.f32 %v4417_v5, %v1069_v43  ;;  %v1169_v51 = vmul.bf16 1069105081, %v1158_v18  ;;  %3681 = vpow2.f32 %v1907_v59  ;;  %v5754_v18 = vsub.f32 %v4616_v27, %v4624_v60  ;;  %v5108_v59 = vld [vmem:[#allocation2 + $0xf8] sm:$0xff] }
 0x27d   : > { %v5756_v27 = vsub.f32 %v4666_v54, %v4679_v6  ;;  %v5757_v54 = vsub.f32 %v4737_v7, %v4753_v30 }
 0x27e   : > { %v1157_v11 = vpack.c.bf16 %v1142_v32, %v1141_v26  ;;  %v1033_v43 = vmul.f32 1.442695, %v5754_v18 }
 0x27f   : > { %2177 = vperm.xlu0 %3629, %v5047_v3   ;;  %v1094_v22 = vpop.permute.xlu1 %1093  ;;  %v1041_v60 = vmul.f32 1.442695, %v5756_v27 }
 0x280   : > { %v1166_v46 = vmul.bf16 1069105081, %v1157_v11  ;;  %v1147_v8 = vsub.f32 %v4429_v12, %v1094_v22  ;;  %v5809_v11 = vld [vmem:[#allocation38_spill] sm:$0xff] }
 0x282   : > { %3683 = vpow.bf16 %v1166_v46  ;;  %v5760_v46 = vld [vmem:[#allocation41_spill] sm:$0xff] }
 0x283   : > { %3685 = vpow.bf16 %v1169_v51  ;;  %v1084_v5 = vpop.permute.xlu1 %1083  ;;  %2192 = vperm.xlu0 %3629, %v5053_v37   ;;  %v5758_v51 = vld [vmem:[#allocation40_spill] sm:$0xff] }
 0x284   : > { %3687 = vpow2.f32 %v1903_v57  ;;  %v1145_v47 = vsub.f32 %v4448_v23, %v1084_v5  ;;  %v5759_v22 = vsub.f32 %v4711_v40, %v5758_v51  ;;  %v5761_v57 = vld [vmem:[#allocation45_spill] sm:$0xff]  ;;  %v5762_v5 = vld [vmem:[#allocation46_spill] sm:$0xff]  ;;  %v5774_v51 = vld [vmem:[#allocation19_spill] sm:$0xff] }
 0x285   : > { %3689 = vpow2.f32 %v1911_v58  ;;  %v5763_v4 = vsub.f32 %v5761_v57, %v5762_v5  ;;  %v5765_v40 = vld [vmem:[#allocation18_spill] sm:$0xff]  ;;  %v5775_v5 = vld [vmem:[#allocation47_spill] sm:$0xff] }
 0x286   : > { %v1049_v30 = vmul.f32 1.442695, %v5759_v22 }
 0x287   : > { %v1099_v34 = vpop.permute.xlu1 %1098  ;;  %2212 = vperm.xlu0 %3629, %v5059_v25   ;;  %v1053_v58 = vmul.f32 1.442695, %v5763_v4  ;;  %v5776_v4 = vsub.f32 %v5775_v5, %v4827_v35  ;;  %v5781_v35 = vld [vmem:[#allocation50_spill] sm:$0xff]  ;;  %v5786_v5 = vld [vmem:[#allocation51_spill] sm:$0xff] }
 0x288   : > { %v1148_v24 = vsub.f32 %v4451_v29, %v1099_v34  ;;  %v5764_v34 = vld [vmem:[#allocation16_spill] sm:$0xff] }
 0x289   : > { %v5069_v41 = vpop.eup %3681 }
 0x28a   : > { %v1160_v15 = vpack.c.bf16 %v1148_v24, %v1147_v8 }
 0x28b   : > { %v1089_v14 = vpop.permute.xlu1 %1088  ;;  %2202 = vperm.xlu0 %3629, %v5064_v53  }
 0x28c   : > { %v1146_v56 = vsub.f32 %v4456_v42, %v1089_v14  ;;  %v1175_v38 = vmul.bf16 1069105081, %v1160_v15  ;;  %v5766_v15 = vld [vmem:[#allocation42_spill] sm:$0xff] }
 0x28e   : > { %v1159_v0 = vpack.c.bf16 %v1146_v56, %v1145_v47 }
 0x28f   : > { %v1114_v33 = vpop.permute.xlu1 %1113  ;;  %2232 = vperm.xlu0 %3629, %v5069_v41  }
 0x290   : > { %v5072_v29 = vpop.eup %3683  ;;  %v1172_v12 = vmul.bf16 1069105081, %v1159_v0  ;;  %v1151_v24 = vsub.f32 %v5764_v34, %v1114_v33  ;;  %v5767_v0 = vld [vmem:[#allocation43_spill] sm:$0xff] }
 0x291   : > { %v5074_v36 = vpop.eup %3685  ;;  %3437 = vmatprep.mubr.bf16.mxu1 %v5072_v29 }
 0x292   : > { %v5077_v52 = vpop.eup %3687  ;;  %3691 = vpow.bf16 %v1172_v12  ;;  %3438 = vmatmul.mubr.bf16.vlgmr.msra.gmra.mxu1 %v5074_v36 }
 0x293   : > { %3693 = vpow.bf16 %v1175_v38  ;;  %v5080_v23 = vpop.permute.xlu1 %1103  ;;  %2222 = vperm.xlu0 %3629, %v5077_v52   ;;  %3511 = vmatpush3.bf16.msra.mxu1 %v4610_v50  ;;  %v5085_v42 = vpop.eup %3689  ;;  %v5755_v50 = vsub.f32 %v4685_v21, %v4701_v44  ;;  %v5768_v38 = vld [vmem:[#allocation44_spill] sm:$0xff] }
 0x294   : > { %3504 = vmatprep.subr.bf16.mxu1 %v4619_v28  ;;  %5753 = vst [vmem:[#allocation59_spill] sm:$0xff] %v5085_v42  ;;  %3695 = vpow2.f32 %v1033_v43  ;;  %v5769_v12 = vsub.f32 %v5767_v0, %v5768_v38 }
 0x295   : > { %v1037_v32 = vmul.f32 1.442695, %v5755_v50  ;;  %v5770_v50 = vld [vmem:[#allocation48_spill] sm:$0xff] }
 0x296   : > { %v1057_v18 = vmul.f32 1.442695, %v5769_v12 }
 0x297   : > { %v5090_v26 = vpop.permute.xlu1 %1133  ;;  %2242 = vperm.xlu0 %3629, %v5085_v42   ;;  %3512 = vmatpush3.bf16.msra.mxu1 %v4619_v28  ;;  %3697 = vpow2.f32 %v1037_v32  ;;  %v5771_v32 = vld [vmem:[#allocation49_spill] sm:$0xff] }
 0x298   : > { %3505 = vmatprep.subr.bf16.mxu1 %v4641_v39  ;;  %3699 = vpow2.f32 %v1041_v60  ;;  %v5772_v27 = vsub.f32 %v5770_v50, %v5771_v32  ;;  %v5782_v32 = vld [vmem:[#allocation52_spill] sm:$0xff] }
 0x29a   : > { %v1887_v60 = vmul.f32 1.442695, %v5772_v27  ;;  %v5783_v27 = vsub.f32 %v5781_v35, %v5782_v32  ;;  %v5791_v35 = vld [vmem:[#allocation54_spill] sm:$0xff] }
 0x29b   : > { %3513 = vmatpush3.bf16.msra.mxu1 %v4641_v39  ;;  %v5099_v62 = vpop.permute.xlu1 %1123  ;;  %v5792_v32 = vsub.f32 %v5791_v35, %v4886_v16 }
 0x29c   : > { %3506 = vmatprep.subr.bf16.mxu1 %v4663_v19 }
 0x29f   : > { %3514 = vmatpush3.bf16.msra.mxu1 %v4663_v19  ;;  %v5114_v39 = vpop.permute.xlu1 %1924  ;;  %v1045_v19 = vmul.f32 1.442695, %v5757_v54  ;;  %v5773_v54 = vld [vmem:[#allocation17_spill] sm:$0xff] }
 0x2a0   : > { %v5106_v28 = vpop.eup %3691  ;;  %3507 = vmatprep.subr.bf16.mxu1 %v4682_v9 }
 0x2a1   : > { %v5111_v21 = vpop.eup %3693  ;;  %3441 = vmatprep.mubr.bf16.mxu1 %v5106_v28  ;;  %3701 = vpow2.f32 %v1045_v19  ;;  %v1149_v19 = vsub.f32 %v5773_v54, %v5080_v23 }
 0x2a2   : > { %3442 = vmatmul.mubr.bf16.gmra.mxu1 %v5111_v21  ;;  %v1852_v44 = vpop.xlane.xlu0 %1851  ;;  %v5134_v7 = vpop.eup %3695  ;;  %3703 = vpow2.f32 %v1049_v30  ;;  %v1195_v12 = vunpack.c.l.bf16 %v5111_v21 }
 0x2a3   : > { %v5121_v6 = vmax.f32 %v5108_v59, %v1852_v44  ;;  %3515 = vmatpush3.bf16.msra.mxu1 %v4682_v9  ;;  %v1940_v9 = vpop.permute.xlu1 %1939  ;;  %3705 = vpow2.f32 %v1053_v58  ;;  %v1889_v58 = vmul.f32 1.442695, %v5776_v4  ;;  %v5787_v4 = vld [vmem:[#allocation53_spill] sm:$0xff] }
 0x2a4   : > { %3508 = vmatprep.subr.bf16.mxu1 %v4708_v63 }
 0x2a5   : > { %2415 = vst.msk [vmem:[#allocation2 + $0xf8] sm:$0xff] %vm1285_vm3, %v5121_v6  ;;  %1994 = vperm.xlu1 %3628, %v5121_v6  }
 0x2a7   : > { %3516 = vmatpush3.bf16.msra.mxu1 %v4708_v63  ;;  %v5144_v63 = vpop.eup %3697  ;;  %v5148_v47 = vpop.permute.xlu1 %1954 }
 0x2a8   : > { %3509 = vmatprep.subr.bf16.mxu1 %v5760_v46  ;;  %v5156_v43 = vpop.eup %3699 }
 0x2a9   : > { %1330 = vperm.xlu1 %3628, %v5134_v7  }
 0x2aa   : > { %v1119_v55 = vpop.permute.xlu0 %1118 }
 0x2ab   : > { %v1152_v8 = vsub.f32 %v5765_v40, %v1119_v55  ;;  %3517 = vmatpush3.bf16.msra.mxu1 %v5760_v46  ;;  %v1945_v46 = vpop.permute.xlu1 %1944  ;;  %v1191_v55 = vunpack.c.l.bf16 %v5074_v36  ;;  %v5778_v40 = vld [vmem:[#allocation32_spill] sm:$0xff] }
 0x2ac   : > { %3510 = vmatprep.subr.bf16.mxu1 %v5766_v15 }
 0x2ad   : > { %v1162_v14 = vpack.c.bf16 %v1152_v8, %v1151_v24  ;;  %1340 = vperm.xlu1 %3628, %v5144_v63   ;;  %v5777_v24 = vld [vmem:[#allocation20_spill] sm:$0xff]  ;;  %v2002_v8 = vsub.f32 %v5778_v40, %v1945_v46  ;;  %v5789_v40 = vld [vmem:[#allocation27_spill] sm:$0xff] }
 0x2ae   : > { %v5150_v56 = vpop.permute.xlu0 %1320  ;;  %v5165_v30 = vpop.eup %3701  ;;  %v1155_v23 = vsub.f32 %v5777_v24, %v5090_v26 }
 0x2af   : > { %v1181_v33 = vmul.bf16 1069105081, %v1162_v14  ;;  %3518 = vmatpush3.bf16.msra.mxu1 %v5766_v15  ;;  %v5779_v14 = vld [vmem:[#allocation22_spill] sm:$0xff]  ;;  %v5176_v38 = vpop.eup %3703  ;;  %v1975_v24 = vpop.permute.xlu1 %1974 }
 0x2b1   : > { %3707 = vpow.bf16 %v1181_v33  ;;  %1350 = vperm.xlu1 %3628, %v5156_v43  }
 0x2b2   : > { %v1109_v44 = vpop.permute.xlu0 %1108  ;;  %3709 = vpow2.f32 %v1057_v18  ;;  %v5780_v18 = vld [vmem:[#allocation29_spill] sm:$0xff] }
 0x2b3   : > { %v1150_v22 = vsub.f32 %v5774_v51, %v1109_v44  ;;  %3711 = vpow2.f32 %v1887_v60  ;;  %v2001_v33 = vsub.f32 %v5780_v18, %v1940_v9  ;;  %v1893_v60 = vmul.f32 1.442695, %v5783_v27  ;;  %v5784_v44 = vld [vmem:[#allocation21_spill] sm:$0xff] }
 0x2b4   : > { %v1153_v54 = vsub.f32 %v5784_v44, %v5099_v62  ;;  %v1193_v9 = vunpack.c.l.bf16 %v5106_v28  ;;  %v1905_v27 = vmul.f32 1.442695, %v5792_v32  ;;  %v5801_v32 = vld [vmem:[#allocation36_spill] sm:$0xff] }
 0x2b5   : > { %v1161_v57 = vpack.c.bf16 %v1150_v22, %v1149_v19  ;;  %1360 = vperm.xlu1 %3628, %v5165_v30   ;;  %v2015_v19 = vpack.c.bf16 %v2002_v8, %v2001_v33  ;;  %v5785_v22 = vld [vmem:[#allocation23_spill] sm:$0xff]  ;;  %v1998_v8 = vsub.f32 %v5789_v40, %v5114_v39  ;;  %v5798_v40 = vld [vmem:[#allocation34_spill] sm:$0xff] }
 0x2b6   : > { %1209 = vadd.xlane.f32.xlu0 %v1191_v55  ;;  %v1139_v34 = vpop.permute.xlu0 %1138  ;;  %v5187_v55 = vpop.eup %3705 }
 0x2b7   : > { %v1178_v15 = vmul.bf16 1069105081, %v1161_v57  ;;  %v1156_v0 = vsub.f32 %v5779_v14, %v1139_v34 }
 0x2b9   : > { %3713 = vpow.bf16 %v1178_v15  ;;  %v1164_v50 = vpack.c.bf16 %v1156_v0, %v1155_v23  ;;  %1370 = vperm.xlu1 %3628, %v5176_v38   ;;  %v2028_v15 = vmul.bf16 1069105081, %v2015_v19  ;;  %v5790_v0 = vld [vmem:[#allocation26_spill] sm:$0xff]  ;;  %v5794_v19 = vld [vmem:[#allocation28_spill] sm:$0xff] }
 0x2ba   : > { %3715 = vpow2.f32 %v1889_v58  ;;  %1217 = vadd.xlane.f32.xlu0 %v1195_v12  ;;  %v1129_v26 = vpop.permute.xlu0 %1128  ;;  %v5788_v58 = vsub.f32 %v5786_v5, %v5787_v4  ;;  %v5795_v5 = vld [vmem:[#allocation55_spill] sm:$0xff] }
 0x2bb   : > { %v1187_v51 = vmul.bf16 1069105081, %v1164_v50  ;;  %v1154_v46 = vsub.f32 %v5785_v22, %v1129_v26  ;;  %v5793_v26 = vld [vmem:[#allocation30_spill] sm:$0xff]  ;;  %v1965_v22 = vpop.permute.xlu1 %1964  ;;  %v5796_v4 = vsub.f32 %v5795_v5, %v4905_v17  ;;  %v5803_v5 = vld [vmem:[#allocation25_spill] sm:$0xff] }
 0x2bc   : > { %v1897_v34 = vmul.f32 1.442695, %v5788_v58  ;;  %v2004_v44 = vsub.f32 %v5793_v26, %v5148_v47 }
 0x2bd   : > { %3717 = vpow.bf16 %v1187_v51  ;;  %v1163_v57 = vpack.c.bf16 %v1154_v46, %v1153_v54  ;;  %1380 = vperm.xlu1 %3628, %v5187_v55   ;;  %v1901_v58 = vmul.f32 1.442695, %v5796_v4 }
 0x2be   : > { %3719 = vpow2.f32 %v1893_v60  ;;  %1213 = vadd.xlane.f32.xlu0 %v1193_v9  ;;  %v1920_v62 = vpop.permute.xlu0 %1919 }
 0x2bf   : > { %v5194_v23 = vpop.eup %3707  ;;  %v1184_v14 = vmul.bf16 1069105081, %v1163_v57  ;;  %v1997_v12 = vsub.f32 %v5790_v0, %v1920_v62 }
 0x2c0   : > { %v5199_v18 = vpop.eup %3709  ;;  %v1199_v33 = vunpack.c.l.bf16 %v5194_v23 }
 0x2c1   : > { %3721 = vpow.bf16 %v1184_v14  ;;  %v2013_v50 = vpack.c.bf16 %v1998_v8, %v1997_v12  ;;  %1390 = vperm.xlu1 %3628, %v5199_v18   ;;  %v5206_v39 = vpop.eup %3711  ;;  %v2008_v8 = vsub.f32 %v5798_v40, %v1975_v24  ;;  %v1935_v14 = vpop.permute.xlu1 %1934 }
 0x2c2   : > { %3723 = vpow2.f32 %v1897_v34  ;;  %1225 = vadd.xlane.f32.xlu0 %v1199_v33  ;;  %v1950_v60 = vpop.permute.xlu0 %1949  ;;  %v5797_v34 = vld [vmem:[#allocation31_spill] sm:$0xff] }
 0x2c3   : > { %3725 = vpow.bf16 %v2028_v15  ;;  %v2022_v54 = vmul.bf16 1069105081, %v2013_v50  ;;  %v2003_v51 = vsub.f32 %v5794_v19, %v1950_v60  ;;  %v5799_v50 = vld [vmem:[#allocation57_spill] sm:$0xff] }
 0x2c4   : > { %v5800_v24 = vsub.f32 %v5799_v50, %v4946_v31  ;;  %v5802_v60 = vld [vmem:[#allocation33_spill] sm:$0xff]  ;;  %v2000_v31 = vsub.f32 %v5803_v5, %v1935_v14  ;;  %v5805_v14 = vld [vmem:[#allocation39_spill] sm:$0xff] }
 0x2c5   : > { %3727 = vpow.bf16 %v2022_v54  ;;  %v2016_v46 = vpack.c.bf16 %v2004_v44, %v2003_v51  ;;  %2182 = vperm.xlu1 %3628, %v5206_v39   ;;  %v5806_v50 = vld [vmem:[#allocation37_spill] sm:$0xff] }
 0x2c6   : > { %v1970_v9 = vpop.permute.xlu0 %1969  ;;  %3729 = vpow2.f32 %v1905_v27  ;;  %v1909_v35 = vmul.f32 1.442695, %v5800_v24  ;;  %v2006_v27 = vsub.f32 %v5801_v32, %v1965_v22 }
 0x2c7   : > { %v5212_v57 = vpop.eup %3713  ;;  %v2031_v47 = vmul.bf16 1069105081, %v2016_v46  ;;  %v2007_v62 = vsub.f32 %v5797_v34, %v1970_v9 }
 0x2c8   : > { %v5214_v16 = vpop.eup %3715  ;;  %3445 = vmatprep.mubr.bf16.mxu1 %v5212_v57  ;;  %v1197_v15 = vunpack.c.l.bf16 %v5212_v57 }
 0x2c9   : > { %3731 = vpow.bf16 %v2031_v47  ;;  %2187 = vperm.xlu1 %3628, %v5214_v16   ;;  %3446 = vmatmul.mubr.bf16.gmra.mxu1 %v5194_v23  ;;  %v2018_v0 = vpack.c.bf16 %v2008_v8, %v2007_v62  ;;  %v1985_v47 = vpop.permute.xlu1 %1984 }
 0x2ca   : > { %1221 = vadd.xlane.f32.xlu0 %v1197_v15  ;;  %v1960_v12 = vpop.permute.xlu0 %1959  ;;  %3733 = vpow2.f32 %v1901_v58  ;;  %v5804_v58 = vld [vmem:[#allocation24_spill] sm:$0xff] }
 0x2cb   : > { %v5225_v17 = vpop.eup %3717  ;;  %v2005_v26 = vsub.f32 %v5802_v60, %v1960_v12  ;;  %v2037_v19 = vmul.bf16 1069105081, %v2018_v0  ;;  %3735 = vpow2.f32 %v1909_v35  ;;  %v2010_v0 = vsub.f32 %v5805_v14, %v1985_v47 }
 0x2cc   : > { %v5227_v33 = vpop.eup %3719  ;;  %v1203_v44 = vunpack.c.l.bf16 %v5225_v17 }
 0x2cd   : > { %v2017_v54 = vpack.c.bf16 %v2006_v27, %v2005_v26  ;;  %2197 = vperm.xlu1 %3628, %v5227_v33  }
 0x2ce   : > { %1233 = vadd.xlane.f32.xlu0 %v1203_v44  ;;  %v1930_v51 = vpop.permute.xlu0 %1929 }
 0x2cf   : > { %v5236_v46 = vpop.eup %3721  ;;  %v2034_v4 = vmul.bf16 1069105081, %v2017_v54  ;;  %v1999_v22 = vsub.f32 %v5804_v58, %v1930_v51 }
 0x2d0   : > { %v5238_v9 = vpop.eup %3723  ;;  %3449 = vmatprep.mubr.bf16.mxu1 %v5236_v46  ;;  %v1201_v34 = vunpack.c.l.bf16 %v5236_v46 }
 0x2d1   : > { %v5244_v62 = vpop.eup %3725  ;;  %3737 = vpow.bf16 %v2034_v4  ;;  %v2014_v40 = vpack.c.bf16 %v2000_v31, %v1999_v22  ;;  %2207 = vperm.xlu1 %3628, %v5238_v9   ;;  %3450 = vmatmul.mubr.bf16.gmra.mxu1 %v5225_v17 }
 0x2d2   : > { %3739 = vpow.bf16 %v2037_v19  ;;  %3491 = vmatprep.mubr.bf16.mxu1 %v5244_v62  ;;  %1229 = vadd.xlane.f32.xlu0 %v1201_v34  ;;  %v1980_v8 = vpop.permute.xlu0 %1979 }
 0x2d3   : > { %v5249_v15 = vpop.eup %3727  ;;  %v2025_v12 = vmul.bf16 1069105081, %v2014_v40  ;;  %v2009_v24 = vsub.f32 %v5806_v50, %v1980_v8  ;;  %v2049_v40 = vunpack.c.l.bf16 %v5244_v62 }
 0x2d4   : > { %v5253_v35 = vpop.eup %3729  ;;  %3487 = vmatprep.mubr.bf16.mxu0 %v5249_v15  ;;  %v2046_v22 = vunpack.c.h.bf16 %v5249_v15 }
 0x2d5   : > { %3741 = vpow.bf16 %v2025_v12  ;;  %v2019_v32 = vpack.c.bf16 %v2010_v0, %v2009_v24  ;;  %2227 = vperm.xlu1 %3628, %v5253_v35   ;;  %v1192_v24 = vunpack.c.h.bf16 %v5074_v36  ;;  %v1200_v36 = vunpack.c.h.bf16 %v5194_v23 }
 0x2d6   : > { %v1990_v51 = vpop.permute.xlu0 %1989 }
 0x2d7   : > { %v5257_v27 = vpop.eup %3731  ;;  %v2040_v60 = vmul.bf16 1069105081, %v2019_v32  ;;  %v1189_v32 = vunpack.c.l.bf16 %v5072_v29 }
 0x2d8   : > { %v5259_v26 = vpop.eup %3733  ;;  %v2051_v47 = vunpack.c.l.bf16 %v5257_v27 }
 0x2d9   : > { %3743 = vpow.bf16 %v2040_v60  ;;  %2217 = vperm.xlu1 %3628, %v5259_v26   ;;  %3492 = vmatmul.mubr.bf16.vlgmr.msra.gmra.mxu1 %v5257_v27  ;;  %v5263_v44 = vpop.eup %3735 }
 0x2da   : > { %5807 = vst [vmem:[#allocation40_spill] sm:$0xff] %v5263_v44  ;;  %v5274_v58 = vpop.permute.xlu0 %1325 }
 0x2dd   : > { %2237 = vperm.xlu1 %3628, %v5263_v44  }
 0x2de   : > { %v5279_v34 = vpop.permute.xlu0 %1335 }
 0x2df   : > { %v5266_v54 = vpop.eup %3737 }
 0x2e0   : > { %v5268_v19 = vpop.eup %3739  ;;  %3495 = vmatprep.mubr.bf16.mxu1 %v5266_v54  ;;  %v2053_v0 = vunpack.c.l.bf16 %v5266_v54 }
 0x2e1   : > { %3496 = vmatmul.mubr.bf16.gmra.mxu1 %v5268_v19  ;;  %v2055_v14 = vunpack.c.l.bf16 %v5268_v19 }
 0x2e2   : > { %v5282_v8 = vpop.permute.xlu0 %1345 }
 0x2e3   : > { %v3742_v5 = vpop.eup %3741 }
 0x2e4   : > { %3488 = vmatmul.mubr.bf16.vlgmr.msra.gmra.mxu0 %v3742_v5  ;;  %v2047_v31 = vunpack.c.l.bf16 %v3742_v5  ;;  %v2048_v42 = vunpack.c.h.bf16 %v3742_v5 }
 0x2e6   : > { %2065 = vadd.xlane.f32.xlu0 %v2047_v31  ;;  %v5286_v12 = vpop.permute.xlu0 %1355  ;;  %v1190_v31 = vunpack.c.h.bf16 %v5072_v29  ;;  %v1204_v29 = vunpack.c.h.bf16 %v5225_v17 }
 0x2e7   : > { %v5272_v4 = vpop.eup %3743 }
 0x2e8   : > { %3499 = vmatprep.mubr.bf16.mxu1 %v5272_v4 }
 0x2ea   : > { %2063 = vadd.xlane.f32.xlu0 %v2046_v22  ;;  %v5288_v50 = vpop.permute.xlu0 %1365 }
 0x2ee   : > { %2073 = vadd.xlane.f32.xlu0 %v2051_v47  ;;  %v5292_v60 = vpop.permute.xlu0 %1375  ;;  %v1196_v47 = vunpack.c.h.bf16 %v5111_v21  ;;  %v1202_v21 = vunpack.c.h.bf16 %v5236_v46  ;;  %v2052_v46 = vunpack.c.h.bf16 %v5257_v27  ;;  %v2057_v27 = vunpack.c.l.bf16 %v5272_v4 }
 0x2f2   : > { %2069 = vadd.xlane.f32.xlu0 %v2049_v40  ;;  %v5295_v22 = vpop.permute.xlu0 %1385  ;;  %v1194_v40 = vunpack.c.h.bf16 %v5106_v28  ;;  %v5808_v28 = vld [vmem:[#allocation35_spill] sm:$0xff] }
 0x2f6   : > { %2081 = vadd.xlane.f32.xlu0 %v2055_v14  ;;  %v5299_v14 = vpop.permute.xlu0 %1395 }
 0x2fa   : > { %2077 = vadd.xlane.f32.xlu0 %v2053_v0  ;;  %v5302_v0 = vpop.permute.xlu0 %2177 }
 0x301   : > { %1211 = vadd.xlane.f32.xlu1 %v1192_v24  ;;  %v1198_v24 = vunpack.c.h.bf16 %v5212_v57  ;;  %v2045_v57 = vunpack.c.l.bf16 %v5249_v15  ;;  %v2054_v15 = vunpack.c.h.bf16 %v5266_v54 }
 0x305   : > { %1205 = vadd.xlane.f32.xlu1 %v1189_v32  ;;  %v5306_v32 = vpop.permute.xlu0 %2192 }
 0x309   : > { %1207 = vadd.xlane.f32.xlu1 %v1190_v31  ;;  %v5311_v23 = vpop.permute.xlu0 %2212 }
 0x30d   : > { %1219 = vadd.xlane.f32.xlu1 %v1196_v47  ;;  %v2011_v47 = vsub.f32 %v5808_v28, %v1990_v51  ;;  %v5314_v17 = vpop.permute.xlu0 %2202  ;;  %v2056_v51 = vunpack.c.h.bf16 %v5268_v19 }
 0x311   : > { %1215 = vadd.xlane.f32.xlu1 %v1194_v40 }
 0x315   : > { %1227 = vadd.xlane.f32.xlu1 %v1200_v36 }
 0x319   : > { %1223 = vadd.xlane.f32.xlu1 %v1198_v24  ;;  %v5317_v24 = vpop.permute.xlu0 %2232 }
 0x31d   : > { %1235 = vadd.xlane.f32.xlu1 %v1204_v29  ;;  %v5321_v5 = vpop.permute.xlu0 %2222 }
 0x320   : > { %v1995_v31 = vpop.permute.xlu1 %1994 }
 0x321   : > { %v2012_v40 = vsub.f32 %v5809_v11, %v1995_v31  ;;  %1231 = vadd.xlane.f32.xlu1 %v1202_v21  ;;  %v2050_v11 = vunpack.c.h.bf16 %v5244_v62  ;;  %v5325_v21 = vpop.permute.xlu0 %2242  ;;  %v1239_v62 = vld [vmem:[#allocation3 + $0x10] sm:$0xff] }
 0x322   : > { %v1255_v28 = vmul.f32 %v5134_v7, %v1239_v62  ;;  %v1247_v62 = vld [vmem:[#allocation3 + $0x50] sm:$0xff] }
 0x323   : > { %v2020_v36 = vpack.c.bf16 %v2012_v40, %v2011_v47  ;;  %v5810_v47 = vld [vmem:[#allocation56_spill] sm:$0xff] }
 0x324   : > { %v5811_v40 = vsub.f32 %v5810_v47, %v4924_v49 }
 0x325   : > { %v2043_v44 = vmul.bf16 1069105081, %v2020_v36  ;;  %2067 = vadd.xlane.f32.xlu1 %v2048_v42 }
 0x326   : > { %v1913_v36 = vmul.f32 1.442695, %v5811_v40  ;;  %v1304_v40 = vld [vmem:[#allocation4 + $0x10] sm:$0xff] }
 0x327   : > { %3745 = vpow.bf16 %v2043_v44  ;;  %v1331_v44 = vpop.permute.xlu1 %1330 }
 0x328   : > { %3747 = vpow2.f32 %v1913_v36  ;;  %v1245_v36 = vld [vmem:[#allocation3 + $0x40] sm:$0xff] }
 0x329   : > { %2061 = vadd.xlane.f32.xlu1 %v2045_v57  ;;  %v2058_v57 = vunpack.c.h.bf16 %v5272_v4 }
 0x32b   : > { %v5327_v19 = vpop.permute.xlu1 %1340 }
 0x32d   : > { %2075 = vadd.xlane.f32.xlu1 %v2052_v46  ;;  %v1243_v46 = vld [vmem:[#allocation3 + $0x30] sm:$0xff] }
 0x32f   : > { %v1351_v49 = vpop.permute.xlu1 %1350 }
 0x331   : > { %2071 = vadd.xlane.f32.xlu1 %v2050_v11  ;;  %v5812_v11 = vsub.f32 %v5108_v59, %v5121_v6 }
 0x333   : > { %v5341_v6 = vpop.permute.xlu1 %1360 }
 0x335   : > { %v3746_v29 = vpop.eup %3745  ;;  %2083 = vadd.xlane.f32.xlu1 %v2056_v51  ;;  %v1915_v51 = vmul.f32 1.442695, %v5812_v11  ;;  %v1400_v11 = vmul.f32 %v1331_v44, %v1304_v40 }
 0x336   : > { %3500 = vmatmul.mubr.bf16.gmra.mxu1 %v3746_v29  ;;  %v2059_v42 = vunpack.c.l.bf16 %v3746_v29  ;;  %v2060_v31 = vunpack.c.h.bf16 %v3746_v29 }
 0x337   : > { %3749 = vpow2.f32 %v1915_v51  ;;  %v1305_v51 = vld [vmem:[#allocation4 + $0x18] sm:$0xff] }
 0x338   : > { %2089 = vadd.xlane.f32.xlu0 %v2059_v42  ;;  %v1259_v42 = vmul.f32 %v5156_v43, %v1243_v46  ;;  %v5348_v46 = vpop.permute.xlu1 %1370 }
 0x339   : > { %2079 = vadd.xlane.f32.xlu1 %v2054_v15  ;;  %v1241_v15 = vld [vmem:[#allocation3 + $0x20] sm:$0xff] }
 0x33a   : > { %v1257_v4 = vmul.f32 %v5144_v63, %v1241_v15 }
 0x33c   : > { %2085 = vadd.xlane.f32.xlu0 %v2057_v27 }
 0x33d   : > { %2091 = vadd.xlane.f32.xlu1 %v2060_v31 }
 0x33f   : > { %v1210_v54 = vpop.xlane.xlu0 %1209 }
 0x340   : > { %v1271_v29 = vadd.f32 %v1255_v28, %v1210_v54  ;;  %v1263_v28 = vmul.f32 %v5176_v38, %v1247_v62  ;;  %v5346_v54 = vpop.eup %3747  ;;  %v1261_v38 = vmul.f32 %v5165_v30, %v1245_v36  ;;  %v1249_v36 = vld [vmem:[#allocation3 + $0x60] sm:$0xff] }
 0x341   : > { %2087 = vadd.xlane.f32.xlu1 %v2058_v57  ;;  %v1302_v57 = vld [vmem:[#allocation4] sm:$0xff] }
 0x342   : > { %1288 = vst.msk [vmem:[#allocation3 + $0x10] sm:$0xff] %vm1285_vm3, %v1271_v29 }
 0x343   : > { %v1218_v7 = vpop.xlane.xlu0 %1217 }
 0x344   : > { %v1275_v27 = vadd.f32 %v1259_v42, %v1218_v7  ;;  %v5350_v63 = vpop.eup %3749  ;;  %v1398_v42 = vmul.f32 %v5150_v56, %v1302_v57 }
 0x346   : > { %1292 = vst.msk [vmem:[#allocation3 + $0x30] sm:$0xff] %vm1285_vm3, %v1275_v27  ;;  %v1251_v27 = vld [vmem:[#allocation3 + $0x70] sm:$0xff] }
 0x347   : > { %v1214_v31 = vpop.xlane.xlu0 %1213  ;;  %v1267_v30 = vmul.f32 %v5199_v18, %v1251_v27 }
 0x348   : > { %v1273_v59 = vadd.f32 %v1257_v4, %v1214_v31  ;;  %v1303_v4 = vld [vmem:[#allocation4 + $0x8] sm:$0xff] }
 0x349   : > { %v1399_v56 = vmul.f32 %v5274_v58, %v1303_v4 }
 0x34a   : > { %1290 = vst.msk [vmem:[#allocation3 + $0x20] sm:$0xff] %vm1285_vm3, %v1273_v59  ;;  %v1401_v59 = vmul.f32 %v5279_v34, %v1305_v51  ;;  %v1265_v51 = vmul.f32 %v5187_v55, %v1249_v36  ;;  %v2096_v36 = vld [vmem:[#allocation3 + $0x90] sm:$0xff] }
 0x34b   : > { %v1226_v43 = vpop.xlane.xlu0 %1225 }
 0x34c   : > { %v1279_v47 = vadd.f32 %v1263_v28, %v1226_v43  ;;  %v5358_v28 = vpop.permute.xlu1 %1380 }
 0x34e   : > { %1296 = vst.msk [vmem:[#allocation3 + $0x50] sm:$0xff] %vm1285_vm3, %v1279_v47 }
 0x350   : > { %v5368_v18 = vpop.permute.xlu1 %1390 }
 0x352   : > { %v3439_v29 = vpop.f32.mrf.mxu1  ;;  %2247 = vperm.xlu1 %3628, %v5346_v54   ;;  %2252 = vperm.xlu0 %3629, %v5350_v63  }
 0x353   : > { %v1561_v7 = vadd.f32 %v3439_v29, %v1400_v11  ;;  %v1222_v15 = vpop.xlane.xlu0 %1221 }
 0x354   : > { %v1277_v31 = vadd.f32 %v1261_v38, %v1222_v15  ;;  %v1496_v62 = vpop.f32.mrf.mxu1  ;;  %v1308_v38 = vld [vmem:[#allocation4 + $0x30] sm:$0xff]  ;;  %v1309_v15 = vld [vmem:[#allocation4 + $0x38] sm:$0xff]  ;;  %v5371_v27 = vpop.permute.xlu1 %2182 }
 0x355   : > { %1577 = vst.msk [vmem:[#allocation4 + $0x10] sm:$0xff] %vm827_vm2, %v1561_v7  ;;  %v1559_v44 = vadd.f32 %v1496_v62, %v1398_v42  ;;  %v1306_v42 = vld [vmem:[#allocation4 + $0x20] sm:$0xff]  ;;  %v1404_v7 = vmul.f32 %v1351_v49, %v1308_v38 }
 0x356   : > { %1294 = vst.msk [vmem:[#allocation3 + $0x40] sm:$0xff] %vm1285_vm3, %v1277_v31  ;;  %v3440_v43 = vpop.f32.mrf.mxu1  ;;  %v1402_v31 = vmul.f32 %v5327_v19, %v1306_v42 }
 0x357   : > { %1575 = vst.msk [vmem:[#allocation4] sm:$0xff] %vm827_vm2, %v1559_v44  ;;  %v1562_v47 = vadd.f32 %v3440_v43, %v1401_v59  ;;  %v1234_v40 = vpop.xlane.xlu0 %1233  ;;  %v1307_v59 = vld [vmem:[#allocation4 + $0x28] sm:$0xff]  ;;  %v1405_v44 = vmul.f32 %v5286_v12, %v1309_v15  ;;  %v2112_v12 = vmul.f32 %v5214_v16, %v2096_v36  ;;  %v1312_v36 = vld [vmem:[#allocation4 + $0x50] sm:$0xff] }
 0x358   : > { %v1283_v57 = vadd.f32 %v1267_v30, %v1234_v40  ;;  %v1499_v11 = vpop.f32.mrf.mxu1 }
 0x359   : > { %1578 = vst.msk [vmem:[#allocation4 + $0x18] sm:$0xff] %vm827_vm2, %v1562_v47  ;;  %v1560_v34 = vadd.f32 %v1499_v11, %v1399_v56  ;;  %v1403_v56 = vmul.f32 %v5282_v8, %v1307_v59  ;;  %v5378_v47 = vpop.permute.xlu1 %2187 }
 0x35a   : > { %1300 = vst.msk [vmem:[#allocation3 + $0x70] sm:$0xff] %vm1285_vm3, %v1283_v57 }
 0x35b   : > { %1576 = vst.msk [vmem:[#allocation4 + $0x8] sm:$0xff] %vm827_vm2, %v1560_v34  ;;  %v1230_v29 = vpop.xlane.xlu0 %1229  ;;  %v2095_v34 = vld [vmem:[#allocation3 + $0x88] sm:$0xff] }
 0x35c   : > { %v1281_v58 = vadd.f32 %v1265_v51, %v1230_v29  ;;  %v2111_v8 = vmul.f32 %v5206_v39, %v2095_v34  ;;  %v2104_v39 = vld [vmem:[#allocation3 + $0xd0] sm:$0xff]  ;;  %v1313_v34 = vld [vmem:[#allocation4 + $0x58] sm:$0xff] }
 0x35d   : > { %v5382_v57 = vpop.permute.xlu1 %2197 }
 0x35e   : > { %1298 = vst.msk [vmem:[#allocation3 + $0x60] sm:$0xff] %vm1285_vm3, %v1281_v58  ;;  %v2100_v58 = vld [vmem:[#allocation3 + $0xb0] sm:$0xff] }
 0x361   : > { %v5387_v38 = vpop.permute.xlu1 %2207 }
 0x362   : > { %v3443_v4 = vpop.f32.mrf.mxu1 }
 0x363   : > { %v1565_v62 = vadd.f32 %v3443_v4, %v1404_v7  ;;  %v2116_v7 = vmul.f32 %v5238_v9, %v2100_v58  ;;  %v2098_v4 = vld [vmem:[#allocation3 + $0xa0] sm:$0xff] }
 0x364   : > { %v1512_v55 = vpop.f32.mrf.mxu1 }
 0x365   : > { %1581 = vst.msk [vmem:[#allocation4 + $0x30] sm:$0xff] %vm827_vm2, %v1565_v62  ;;  %v1563_v43 = vadd.f32 %v1512_v55, %v1402_v31  ;;  %v5391_v16 = vpop.permute.xlu1 %2227  ;;  %v2114_v62 = vmul.f32 %v5227_v33, %v2098_v4 }
 0x366   : > { %v3444_v30 = vpop.f32.mrf.mxu1 }
 0x367   : > { %1579 = vst.msk [vmem:[#allocation4 + $0x20] sm:$0xff] %vm827_vm2, %v1563_v43  ;;  %v1566_v49 = vadd.f32 %v3444_v30, %v1405_v44  ;;  %v2120_v44 = vmul.f32 %v5253_v35, %v2104_v39  ;;  %v2102_v30 = vld [vmem:[#allocation3 + $0xc0] sm:$0xff]  ;;  %v1408_v35 = vmul.f32 %v5348_v46, %v1312_v36 }
 0x368   : > { %v1515_v40 = vpop.f32.mrf.mxu1  ;;  %v5813_v39 = vld [vmem:[#allocation58_spill] sm:$0xff] }
 0x369   : > { %1582 = vst.msk [vmem:[#allocation4 + $0x38] sm:$0xff] %vm827_vm2, %v1566_v49  ;;  %v1564_v19 = vadd.f32 %v1515_v40, %v1403_v56  ;;  %v5397_v56 = vpop.permute.xlu1 %2217  ;;  %v2118_v49 = vmul.f32 %v5259_v26, %v2102_v30  ;;  %v1237_v26 = vld [vmem:[#allocation3] sm:$0xff] }
 0x36a   : > { %v1314_v30 = vld [vmem:[#allocation4 + $0x60] sm:$0xff] }
 0x36b   : > { %1580 = vst.msk [vmem:[#allocation4 + $0x28] sm:$0xff] %vm827_vm2, %v1564_v19 }
 0x36d   : > { %v5401_v33 = vpop.permute.xlu1 %2237 }
 0x36f   : > { %v2066_v11 = vpop.xlane.xlu0 %2065 }
 0x370   : > { %v2128_v51 = vadd.f32 %v2112_v12, %v2066_v11  ;;  %v1240_v12 = vld [vmem:[#allocation3 + $0x18] sm:$0xff]  ;;  %v1310_v11 = vld [vmem:[#allocation4 + $0x40] sm:$0xff] }
 0x372   : > { %2144 = vst.msk [vmem:[#allocation3 + $0x90] sm:$0xff] %vm1285_vm3, %v2128_v51 }
 0x373   : > { %v2064_v29 = vpop.xlane.xlu0 %2063 }
 0x374   : > { %v2127_v42 = vadd.f32 %v2111_v8, %v2064_v29  ;;  %v1256_v8 = vmul.f32 %v5001_v61, %v1240_v12  ;;  %v1406_v29 = vmul.f32 %v5341_v6, %v1310_v11 }
 0x376   : > { %2143 = vst.msk [vmem:[#allocation3 + $0x88] sm:$0xff] %vm1285_vm3, %v2127_v42 }
 0x377   : > { %v2074_v15 = vpop.xlane.xlu0 %2073 }
 0x378   : > { %v2132_v31 = vadd.f32 %v2116_v7, %v2074_v15  ;;  %v1311_v7 = vld [vmem:[#allocation4 + $0x48] sm:$0xff] }
 0x379   : > { %v1407_v61 = vmul.f32 %v5288_v50, %v1311_v7  ;;  %v1410_v50 = vmul.f32 %v5358_v28, %v1314_v30 }
 0x37a   : > { %2148 = vst.msk [vmem:[#allocation3 + $0xb0] sm:$0xff] %vm1285_vm3, %v2132_v31  ;;  %v1409_v31 = vmul.f32 %v5292_v60, %v1313_v34  ;;  %v1244_v34 = vld [vmem:[#allocation3 + $0x38] sm:$0xff] }
 0x37b   : > { %v2070_v59 = vpop.xlane.xlu0 %2069 }
 0x37c   : > { %v2130_v55 = vadd.f32 %v2114_v62, %v2070_v59  ;;  %v1316_v59 = vld [vmem:[#allocation4 + $0x70] sm:$0xff] }
 0x37d   : > { %v1412_v60 = vmul.f32 %v5368_v18, %v1316_v59 }
 0x37e   : > { %2146 = vst.msk [vmem:[#allocation3 + $0xa0] sm:$0xff] %vm1285_vm3, %v2130_v55  ;;  %v1253_v55 = vmul.f32 %v5813_v39, %v1237_v26  ;;  %v2166_v39 = vld [vmem:[#allocation4 + $0xb8] sm:$0xff] }
 0x37f   : > { %v2082_v43 = vpop.xlane.xlu0 %2081 }
 0x380   : > { %v2136_v9 = vadd.f32 %v2120_v44, %v2082_v43  ;;  %v1238_v43 = vld [vmem:[#allocation3 + $0x8] sm:$0xff] }
 0x381   : > { %v1254_v12 = vmul.f32 %v4995_v48, %v1238_v43  ;;  %v1260_v48 = vmul.f32 %v5013_v10, %v1244_v34  ;;  %v2164_v43 = vld [vmem:[#allocation4 + $0xa8] sm:$0xff] }
 0x382   : > { %2152 = vst.msk [vmem:[#allocation3 + $0xd0] sm:$0xff] %vm1285_vm3, %v2136_v9 }
 0x383   : > { %v2078_v40 = vpop.xlane.xlu0 %2077 }
 0x384   : > { %v2134_v19 = vadd.f32 %v2118_v49, %v2078_v40 }
 0x386   : > { %2150 = vst.msk [vmem:[#allocation3 + $0xc0] sm:$0xff] %vm1285_vm3, %v2134_v19  ;;  %v1317_v19 = vld [vmem:[#allocation4 + $0x78] sm:$0xff] }
 0x387   : > { %v1413_v18 = vmul.f32 %v5299_v14, %v1317_v19 }
 0x389   : > { %v3447_v51 = vpop.f32.mrf.mxu1 }
 0x38a   : > { %v1569_v58 = vadd.f32 %v3447_v51, %v1408_v35  ;;  %v1212_v42 = vpop.xlane.xlu1 %1211  ;;  %v1315_v51 = vld [vmem:[#allocation4 + $0x68] sm:$0xff] }
 0x38b   : > { %v1272_v15 = vadd.f32 %v1256_v8, %v1212_v42  ;;  %v1528_v4 = vpop.f32.mrf.mxu1  ;;  %v2165_v42 = vld [vmem:[#allocation4 + $0xb0] sm:$0xff]  ;;  %v1411_v28 = vmul.f32 %v5295_v22, %v1315_v51 }
 0x38c   : > { %1585 = vst.msk [vmem:[#allocation4 + $0x50] sm:$0xff] %vm827_vm2, %v1569_v58  ;;  %v1567_v62 = vadd.f32 %v1528_v4, %v1406_v29  ;;  %v1242_v4 = vld [vmem:[#allocation3 + $0x28] sm:$0xff]  ;;  %v2261_v14 = vmul.f32 %v5387_v38, %v2165_v42  ;;  %v2262_v38 = vmul.f32 %v5311_v23, %v2166_v39  ;;  %v2161_v23 = vld [vmem:[#allocation4 + $0x90] sm:$0xff] }
 0x38d   : > { %1289 = vst.msk [vmem:[#allocation3 + $0x18] sm:$0xff] %vm1285_vm3, %v1272_v15  ;;  %v3448_v46 = vpop.f32.mrf.mxu1  ;;  %v1258_v10 = vmul.f32 %v5007_v1, %v1242_v4 }
 0x38e   : > { %1583 = vst.msk [vmem:[#allocation4 + $0x40] sm:$0xff] %vm827_vm2, %v1567_v62  ;;  %v1570_v6 = vadd.f32 %v3448_v46, %v1409_v31  ;;  %v1206_v44 = vpop.xlane.xlu1 %1205  ;;  %v2163_v31 = vld [vmem:[#allocation4 + $0xa0] sm:$0xff] }
 0x38f   : > { %v1269_v9 = vadd.f32 %v1253_v55, %v1206_v44  ;;  %v1531_v49 = vpop.f32.mrf.mxu1  ;;  %v2259_v22 = vmul.f32 %v5382_v57, %v2163_v31  ;;  %v1248_v44 = vld [vmem:[#allocation3 + $0x58] sm:$0xff]  ;;  %v2260_v57 = vmul.f32 %v5314_v17, %v2164_v43 }
 0x390   : > { %1586 = vst.msk [vmem:[#allocation4 + $0x58] sm:$0xff] %vm827_vm2, %v1570_v6  ;;  %v1568_v40 = vadd.f32 %v1531_v49, %v1407_v61  ;;  %v1264_v1 = vmul.f32 %v5025_v2, %v1248_v44 }
 0x391   : > { %1286 = vst.msk [vmem:[#allocation3] sm:$0xff] %vm1285_vm3, %v1269_v9  ;;  %v3451_v36 = vpop.f32.mrf.mxu1 }
 0x392   : > { %1584 = vst.msk [vmem:[#allocation4 + $0x48] sm:$0xff] %vm827_vm2, %v1568_v40  ;;  %v1573_v11 = vadd.f32 %v3451_v36, %v1412_v60  ;;  %v1208_v35 = vpop.xlane.xlu1 %1207  ;;  %v2169_v60 = vld [vmem:[#allocation4 + $0xd0] sm:$0xff] }
 0x393   : > { %v1270_v8 = vadd.f32 %v1254_v12, %v1208_v35  ;;  %v1544_v29 = vpop.f32.mrf.mxu1  ;;  %v1246_v12 = vld [vmem:[#allocation3 + $0x48] sm:$0xff]  ;;  %v2265_v34 = vmul.f32 %v5391_v16, %v2169_v60  ;;  %v2257_v16 = vmul.f32 %v5378_v47, %v2161_v23 }
 0x394   : > { %1589 = vst.msk [vmem:[#allocation4 + $0x70] sm:$0xff] %vm827_vm2, %v1573_v11  ;;  %v1571_v58 = vadd.f32 %v1544_v29, %v1410_v50  ;;  %v2167_v50 = vld [vmem:[#allocation4 + $0xc0] sm:$0xff]  ;;  %v1262_v17 = vmul.f32 %v5019_v20, %v1246_v12  ;;  %v2160_v47 = vld [vmem:[#allocation4 + $0x88] sm:$0xff] }
 0x395   : > { %1287 = vst.msk [vmem:[#allocation3 + $0x8] sm:$0xff] %vm1285_vm3, %v1270_v8  ;;  %v3452_v26 = vpop.f32.mrf.mxu1  ;;  %v2170_v8 = vld [vmem:[#allocation4 + $0xd8] sm:$0xff]  ;;  %v2159_v29 = vld [vmem:[#allocation4 + $0x80] sm:$0xff] }
 0x396   : > { %1587 = vst.msk [vmem:[#allocation4 + $0x60] sm:$0xff] %vm827_vm2, %v1571_v58  ;;  %v1574_v7 = vadd.f32 %v3452_v26, %v1413_v18  ;;  %v1220_v15 = vpop.xlane.xlu1 %1219  ;;  %v2263_v18 = vmul.f32 %v5397_v56, %v2167_v50  ;;  %v1252_v26 = vld [vmem:[#allocation3 + $0x78] sm:$0xff]  ;;  %v2266_v4 = vmul.f32 %v5317_v24, %v2170_v8 }
 0x397   : > { %v1276_v62 = vadd.f32 %v1260_v48, %v1220_v15  ;;  %v1547_v59 = vpop.f32.mrf.mxu1  ;;  %v2168_v48 = vld [vmem:[#allocation4 + $0xc8] sm:$0xff]  ;;  %v2162_v15 = vld [vmem:[#allocation4 + $0x98] sm:$0xff] }
 0x398   : > { %1590 = vst.msk [vmem:[#allocation4 + $0x78] sm:$0xff] %vm827_vm2, %v1574_v7  ;;  %v1572_v46 = vadd.f32 %v1547_v59, %v1411_v28 }
 0x399   : > { %1293 = vst.msk [vmem:[#allocation3 + $0x38] sm:$0xff] %vm1285_vm3, %v1276_v62  ;;  %v3493_v55 = vpop.f32.mrf.mxu1  ;;  %v2255_v62 = vmul.f32 %v5302_v0, %v2159_v29  ;;  %v2103_v29 = vld [vmem:[#allocation3 + $0xc8] sm:$0xff] }
 0x39a   : > { %1588 = vst.msk [vmem:[#allocation4 + $0x68] sm:$0xff] %vm827_vm2, %v1572_v46  ;;  %v2374_v61 = vadd.f32 %v3493_v55, %v2261_v14  ;;  %v1216_v6 = vpop.xlane.xlu1 %1215  ;;  %v1268_v14 = vmul.f32 %v5039_v13, %v1252_v26  ;;  %v2264_v46 = vmul.f32 %v5321_v5, %v2168_v48  ;;  %v2256_v5 = vmul.f32 %v5371_v27, %v2160_v47  ;;  %v2106_v26 = vld [vmem:[#allocation3 + $0xe0] sm:$0xff] }
 0x39b   : > { %v1274_v30 = vadd.f32 %v1258_v10, %v1216_v6  ;;  %v2321_v9 = vpop.f32.mrf.mxu1  ;;  %v1250_v10 = vld [vmem:[#allocation3 + $0x68] sm:$0xff] }
 0x39c   : > { %2390 = vst.msk [vmem:[#allocation4 + $0xb0] sm:$0xff] %vm827_vm2, %v2374_v61  ;;  %v2372_v49 = vadd.f32 %v2321_v9, %v2259_v22  ;;  %v2258_v22 = vmul.f32 %v5306_v32, %v2162_v15 }
 0x39d   : > { %1291 = vst.msk [vmem:[#allocation3 + $0x28] sm:$0xff] %vm1285_vm3, %v1274_v30  ;;  %v3494_v40 = vpop.f32.mrf.mxu1  ;;  %v1266_v30 = vmul.f32 %v5031_v45, %v1250_v10 }
 0x39e   : > { %2388 = vst.msk [vmem:[#allocation4 + $0xa0] sm:$0xff] %vm827_vm2, %v2372_v49  ;;  %v2375_v19 = vadd.f32 %v3494_v40, %v2262_v38  ;;  %v1228_v36 = vpop.xlane.xlu1 %1227  ;;  %v2097_v38 = vld [vmem:[#allocation3 + $0x98] sm:$0xff] }
 0x39f   : > { %v1280_v11 = vadd.f32 %v1264_v1, %v1228_v36  ;;  %v2324_v35 = vpop.f32.mrf.mxu1  ;;  %v2113_v27 = vmul.f32 %v5053_v37, %v2097_v38  ;;  %v2094_v1 = vld [vmem:[#allocation3 + $0x80] sm:$0xff]  ;;  %v2101_v36 = vld [vmem:[#allocation3 + $0xb8] sm:$0xff] }
 0x3a0   : > { %2391 = vst.msk [vmem:[#allocation4 + $0xb8] sm:$0xff] %vm827_vm2, %v2375_v19  ;;  %v2373_v51 = vadd.f32 %v2324_v35, %v2260_v57  ;;  %v2110_v45 = vmul.f32 %v5047_v3, %v2094_v1  ;;  %v2117_v50 = vmul.f32 %v5059_v25, %v2101_v36  ;;  %v2099_v35 = vld [vmem:[#allocation3 + $0xa8] sm:$0xff] }
 0x3a1   : > { %1297 = vst.msk [vmem:[#allocation3 + $0x58] sm:$0xff] %vm1285_vm3, %v1280_v11  ;;  %v3497_v2 = vpop.f32.mrf.mxu1  ;;  %v2115_v37 = vmul.f32 %v5064_v53, %v2099_v35 }
 0x3a2   : > { %2389 = vst.msk [vmem:[#allocation4 + $0xa8] sm:$0xff] %vm827_vm2, %v2373_v51  ;;  %v2378_v58 = vadd.f32 %v3497_v2, %v2265_v34  ;;  %v1224_v42 = vpop.xlane.xlu1 %1223  ;;  %v2105_v51 = vld [vmem:[#allocation3 + $0xd8] sm:$0xff]  ;;  %v2108_v2 = vld [vmem:[#allocation3 + $0xf0] sm:$0xff] }
 0x3a3   : > { %v1278_v28 = vadd.f32 %v1262_v17, %v1224_v42  ;;  %v2337_v7 = vpop.f32.mrf.mxu1  ;;  %v2121_v3 = vmul.f32 %v5069_v41, %v2105_v51  ;;  %v2124_v25 = vmul.f32 %v5346_v54, %v2108_v2  ;;  %v2119_v42 = vmul.f32 %v5077_v52, %v2103_v29  ;;  %v5815_v52 = vld [vmem:[#allocation59_spill] sm:$0xff] }
 0x3a4   : > { %2394 = vst.msk [vmem:[#allocation4 + $0xd0] sm:$0xff] %vm827_vm2, %v2378_v58  ;;  %v2376_v31 = vadd.f32 %v2337_v7, %v2263_v18  ;;  %v3489_v20 = vpop.f32.mrf.mxu0  ;;  %v5814_v7 = vld [vmem:[#allocation40_spill] sm:$0xff] }
 0x3a5   : > { %1295 = vst.msk [vmem:[#allocation3 + $0x48] sm:$0xff] %vm1285_vm3, %v1278_v28  ;;  %v2370_v56 = vadd.f32 %v3489_v20, %v2257_v16  ;;  %v3498_v59 = vpop.f32.mrf.mxu1  ;;  %v2109_v16 = vld [vmem:[#allocation3 + $0xf8] sm:$0xff]  ;;  %v2122_v41 = vmul.f32 %v5814_v7, %v2106_v26  ;;  %v2107_v20 = vld [vmem:[#allocation3 + $0xe8] sm:$0xff] }
 0x3a6   : > { %2392 = vst.msk [vmem:[#allocation4 + $0xc0] sm:$0xff] %vm827_vm2, %v2376_v31  ;;  %v2379_v39 = vadd.f32 %v3498_v59, %v2266_v4  ;;  %v1236_v55 = vpop.xlane.xlu1 %1235  ;;  %v2305_v24 = vpop.f32.mrf.mxu0  ;;  %v2125_v4 = vmul.f32 %v5350_v63, %v2109_v16 }
 0x3a7   : > { %2386 = vst.msk [vmem:[#allocation4 + $0x90] sm:$0xff] %vm827_vm2, %v2370_v56  ;;  %v1284_v0 = vadd.f32 %v1268_v14, %v1236_v55  ;;  %v2368_v61 = vadd.f32 %v2305_v24, %v2255_v62  ;;  %v2340_v6 = vpop.f32.mrf.mxu1  ;;  %v2123_v56 = vmul.f32 %v5815_v52, %v2107_v20  ;;  %v2174_v24 = vld [vmem:[#allocation4 + $0xf8] sm:$0xff] }
 0x3a8   : > { %2395 = vst.msk [vmem:[#allocation4 + $0xd8] sm:$0xff] %vm827_vm2, %v2379_v39  ;;  %v2377_v44 = vadd.f32 %v2340_v6, %v2264_v46  ;;  %v3490_v13 = vpop.f32.mrf.mxu0  ;;  %v2173_v46 = vld [vmem:[#allocation4 + $0xf0] sm:$0xff]  ;;  %v2171_v39 = vld [vmem:[#allocation4 + $0xe0] sm:$0xff] }
 0x3a9   : > { %1301 = vst.msk [vmem:[#allocation3 + $0x78] sm:$0xff] %vm1285_vm3, %v1284_v0  ;;  %v2371_v43 = vadd.f32 %v3490_v13, %v2258_v22  ;;  %v2267_v22 = vmul.f32 %v5401_v33, %v2171_v39 }
 0x3aa   : > { %2384 = vst.msk [vmem:[#allocation4 + $0x80] sm:$0xff] %vm827_vm2, %v2368_v61  ;;  %2393 = vst.msk [vmem:[#allocation4 + $0xc8] sm:$0xff] %vm827_vm2, %v2377_v44  ;;  %v1232_v32 = vpop.xlane.xlu1 %1231  ;;  %v2308_v9 = vpop.f32.mrf.mxu0  ;;  %v2172_v61 = vld [vmem:[#allocation4 + $0xe8] sm:$0xff] }
 0x3ab   : > { %2387 = vst.msk [vmem:[#allocation4 + $0x98] sm:$0xff] %vm827_vm2, %v2371_v43  ;;  %v1282_v49 = vadd.f32 %v1266_v30, %v1232_v32  ;;  %v2369_v60 = vadd.f32 %v2308_v9, %v2256_v5  ;;  %v2268_v43 = vmul.f32 %v5325_v21, %v2172_v61 }
 0x3ad   : > { %1299 = vst.msk [vmem:[#allocation3 + $0x68] sm:$0xff] %vm1285_vm3, %v1282_v49 }
 0x3ae   : > { %2385 = vst.msk [vmem:[#allocation4 + $0x88] sm:$0xff] %vm827_vm2, %v2369_v60  ;;  %v2068_v40 = vpop.xlane.xlu1 %2067 }
 0x3af   : > { %v2129_v57 = vadd.f32 %v2113_v27, %v2068_v40 }
 0x3b1   : > { %2145 = vst.msk [vmem:[#allocation3 + $0x98] sm:$0xff] %vm1285_vm3, %v2129_v57 }
 0x3b2   : > { %v2062_v19 = vpop.xlane.xlu1 %2061 }
 0x3b3   : > { %v2126_v12 = vadd.f32 %v2110_v45, %v2062_v19 }
 0x3b5   : > { %2142 = vst.msk [vmem:[#allocation3 + $0x80] sm:$0xff] %vm1285_vm3, %v2126_v12 }
 0x3b6   : > { %v2076_v11 = vpop.xlane.xlu1 %2075 }
 0x3b7   : > { %v2133_v23 = vadd.f32 %v2117_v50, %v2076_v11 }
 0x3b9   : > { %2149 = vst.msk [vmem:[#allocation3 + $0xb8] sm:$0xff] %vm1285_vm3, %v2133_v23 }
 0x3ba   : > { %v2072_v34 = vpop.xlane.xlu1 %2071 }
 0x3bb   : > { %v2131_v8 = vadd.f32 %v2115_v37, %v2072_v34 }
 0x3bd   : > { %2147 = vst.msk [vmem:[#allocation3 + $0xa8] sm:$0xff] %vm1285_vm3, %v2131_v8 }
 0x3be   : > { %v2084_v17 = vpop.xlane.xlu1 %2083 }
 0x3bf   : > { %v2137_v18 = vadd.f32 %v2121_v3, %v2084_v17 }
 0x3c1   : > { %2153 = vst.msk [vmem:[#allocation3 + $0xd8] sm:$0xff] %vm1285_vm3, %v2137_v18  ;;  %v2090_v58 = vpop.xlane.xlu0 %2089 }
 0x3c2   : > { %v2140_v53 = vadd.f32 %v2124_v25, %v2090_v58  ;;  %v2080_v48 = vpop.xlane.xlu1 %2079 }
 0x3c3   : > { %v2135_v28 = vadd.f32 %v2119_v42, %v2080_v48 }
 0x3c4   : > { %2156 = vst.msk [vmem:[#allocation3 + $0xf0] sm:$0xff] %vm1285_vm3, %v2140_v53 }
 0x3c5   : > { %2151 = vst.msk [vmem:[#allocation3 + $0xc8] sm:$0xff] %vm1285_vm3, %v2135_v28  ;;  %v2086_v15 = vpop.xlane.xlu0 %2085 }
 0x3c6   : > { %v2138_v54 = vadd.f32 %v2122_v41, %v2086_v15  ;;  %v2092_v31 = vpop.xlane.xlu1 %2091 }
 0x3c7   : > { %v2141_v62 = vadd.f32 %v2125_v4, %v2092_v31 }
 0x3c8   : > { %2154 = vst.msk [vmem:[#allocation3 + $0xe0] sm:$0xff] %vm1285_vm3, %v2138_v54 }
 0x3c9   : > { %2157 = vst.msk [vmem:[#allocation3 + $0xf8] sm:$0xff] %vm1285_vm3, %v2141_v62 }
 0x3ca   : > { %v2088_v59 = vpop.xlane.xlu1 %2087 }
 0x3cb   : > { %v2139_v14 = vadd.f32 %v2123_v56, %v2088_v59 }
 0x3cd   : > { %2155 = vst.msk [vmem:[#allocation3 + $0xe8] sm:$0xff] %vm1285_vm3, %v2139_v14  ;;  %v2253_v63 = vpop.permute.xlu0 %2252 }
 0x3ce   : > { %v2248_v47 = vpop.permute.xlu1 %2247  ;;  %v2270_v44 = vmul.f32 %v2253_v63, %v2174_v24 }
 0x3cf   : > { %v2269_v55 = vmul.f32 %v2248_v47, %v2173_v46 }
 0x3f6   : > { %v3501_v10 = vpop.f32.mrf.mxu1 }
 0x3f7   : > { %v2382_v0 = vadd.f32 %v3501_v10, %v2269_v55 }
 0x3f8   : > { %v2353_v6 = vpop.f32.mrf.mxu1 }
 0x3f9   : > { %2398 = vst.msk [vmem:[#allocation4 + $0xf0] sm:$0xff] %vm827_vm2, %v2382_v0  ;;  %v2380_v13 = vadd.f32 %v2353_v6, %v2267_v22 }
 0x3fa   : > { %v3502_v5 = vpop.f32.mrf.mxu1 }
 0x3fb   : > { %2396 = vst.msk [vmem:[#allocation4 + $0xe0] sm:$0xff] %vm827_vm2, %v2380_v13  ;;  %v2383_v30 = vadd.f32 %v3502_v5, %v2270_v44  ;;  %2418 = sbr.rel (%p3265_p12) target bundleno = 1229 (0x4cd), region = 122 }
 0x3fc   : > { %v2356_v32 = vpop.f32.mrf.mxu1 }
 0x3fd   : > { %2399 = vst.msk [vmem:[#allocation4 + $0xf8] sm:$0xff] %vm827_vm2, %v2383_v30  ;;  %v2381_v9 = vadd.f32 %v2356_v32, %v2268_v43 }
 0x3ff   : > { %2397 = vst.msk [vmem:[#allocation4 + $0xe8] sm:$0xff] %vm827_vm2, %v2381_v9 }
 0x400   : > { %v2421_v33 = vld [vmem:[#allocation3 + $0x10] sm:$0xff]  ;;  %v2419_v38 = vld [vmem:[#allocation3] sm:$0xff]  ;;  %v2422_v49 = vld [vmem:[#allocation3 + $0x18] sm:$0xff]  ;;  %v3939_v60 = vmov 0   ;;  %vm2627_vm4 = vcmask 125952  }
 0x401   : > { %3752 = vset.pattern.permute.xlu1 %v3939_v60  ;;  %3751 = vset.pattern.permute.xlu0 %v3939_v60  ;;  %3753 = vrcp.f32 %v2421_v33  ;;  %v2420_v21 = vld [vmem:[#allocation3 + $0x8] sm:$0xff]  ;;  %v2423_v40 = vld [vmem:[#allocation3 + $0x20] sm:$0xff]  ;;  %v2426_v1 = vld [vmem:[#allocation3 + $0x38] sm:$0xff] }
 0x402   : > { %3755 = vrcp.f32 %v2419_v38  ;;  %v2424_v27 = vld [vmem:[#allocation3 + $0x28] sm:$0xff]  ;;  %v2425_v57 = vld [vmem:[#allocation3 + $0x30] sm:$0xff]  ;;  %v2427_v19 = vld [vmem:[#allocation3 + $0x40] sm:$0xff] }
 0x403   : > { %3757 = vrcp.f32 %v2422_v49  ;;  %v2428_v45 = vld [vmem:[#allocation3 + $0x48] sm:$0xff]  ;;  %v2430_v11 = vld [vmem:[#allocation3 + $0x58] sm:$0xff]  ;;  %v2429_v23 = vld [vmem:[#allocation3 + $0x50] sm:$0xff] }
 0x404   : > { %3759 = vrcp.f32 %v2420_v21  ;;  %v2432_v34 = vld [vmem:[#allocation3 + $0x68] sm:$0xff]  ;;  %v2431_v8 = vld [vmem:[#allocation3 + $0x60] sm:$0xff]  ;;  %v2434_v2 = vld [vmem:[#allocation3 + $0x78] sm:$0xff] }
 0x405   : > { %3761 = vrcp.f32 %v2424_v27  ;;  %v2433_v29 = vld [vmem:[#allocation3 + $0x70] sm:$0xff]  ;;  %v2645_v25 = vld [vmem:[#allocation3 + $0x88] sm:$0xff]  ;;  %v2644_v42 = vld [vmem:[#allocation3 + $0x80] sm:$0xff] }
 0x406   : > { %3763 = vrcp.f32 %v2423_v40  ;;  %v2647_v53 = vld [vmem:[#allocation3 + $0x98] sm:$0xff]  ;;  %v2646_v16 = vld [vmem:[#allocation3 + $0x90] sm:$0xff]  ;;  %v2649_v7 = vld [vmem:[#allocation3 + $0xa8] sm:$0xff] }
 0x407   : > { %3765 = vrcp.f32 %v2426_v1  ;;  %v2648_v15 = vld [vmem:[#allocation3 + $0xa0] sm:$0xff]  ;;  %v2651_v54 = vld [vmem:[#allocation3 + $0xb8] sm:$0xff]  ;;  %v2650_v20 = vld [vmem:[#allocation3 + $0xb0] sm:$0xff] }
 0x408   : > { %3767 = vrcp.f32 %v2425_v57  ;;  %v2653_v52 = vld [vmem:[#allocation3 + $0xc8] sm:$0xff]  ;;  %v2652_v59 = vld [vmem:[#allocation3 + $0xc0] sm:$0xff]  ;;  %v2655_v46 = vld [vmem:[#allocation3 + $0xd8] sm:$0xff] }
 0x409   : > { %3769 = vrcp.f32 %v2428_v45  ;;  %v2654_v39 = vld [vmem:[#allocation3 + $0xd0] sm:$0xff]  ;;  %v2657_v24 = vld [vmem:[#allocation3 + $0xe8] sm:$0xff]  ;;  %v2656_v10 = vld [vmem:[#allocation3 + $0xe0] sm:$0xff] }
 0x40a   : > { %3771 = vrcp.f32 %v2427_v19  ;;  %v2659_v0 = vld [vmem:[#allocation3 + $0xf8] sm:$0xff]  ;;  %v2658_v6 = vld [vmem:[#allocation3 + $0xf0] sm:$0xff]  ;;  %v2451_v49 = vld [vmem:[#allocation4] sm:$0xff] }
 0x40b   : > { %3773 = vrcp.f32 %v2430_v11  ;;  %v2453_v38 = vld [vmem:[#allocation4 + $0x10] sm:$0xff]  ;;  %v2454_v1 = vld [vmem:[#allocation4 + $0x18] sm:$0xff]  ;;  %v2452_v45 = vld [vmem:[#allocation4 + $0x8] sm:$0xff] }
 0x40c   : > { %3775 = vrcp.f32 %v2429_v23 }
 0x40d   : > { %3777 = vrcp.f32 %v2432_v34 }
 0x40e   : > { %v3754_v36 = vpop.eup %3753  ;;  %3779 = vrcp.f32 %v2431_v8 }
 0x40f   : > { %v3756_v12 = vpop.eup %3755  ;;  %2479 = vperm.xlu1 %3752, %v3754_v36   ;;  %3781 = vrcp.f32 %v2434_v2 }
 0x410   : > { %v3758_v50 = vpop.eup %3757  ;;  %2469 = vperm.xlu0 %3751, %v3756_v12   ;;  %3783 = vrcp.f32 %v2433_v29 }
 0x411   : > { %v3760_v35 = vpop.eup %3759  ;;  %3785 = vrcp.f32 %v2645_v25 }
 0x412   : > { %v3762_v37 = vpop.eup %3761  ;;  %3787 = vrcp.f32 %v2644_v42 }
 0x413   : > { %2484 = vperm.xlu1 %3752, %v3758_v50   ;;  %v3764_v51 = vpop.eup %3763  ;;  %3789 = vrcp.f32 %v2647_v53 }
 0x414   : > { %2474 = vperm.xlu0 %3751, %v3760_v35   ;;  %v3766_v3 = vpop.eup %3765  ;;  %3791 = vrcp.f32 %v2646_v16  ;;  %v2456_v35 = vld [vmem:[#allocation4 + $0x28] sm:$0xff] }
 0x415   : > { %v3768_v17 = vpop.eup %3767  ;;  %3793 = vrcp.f32 %v2649_v7 }
 0x416   : > { %v3770_v18 = vpop.eup %3769  ;;  %3795 = vrcp.f32 %v2648_v15 }
 0x417   : > { %2494 = vperm.xlu1 %3752, %v3762_v37   ;;  %v3772_v58 = vpop.eup %3771  ;;  %3797 = vrcp.f32 %v2651_v54  ;;  %v2455_v37 = vld [vmem:[#allocation4 + $0x20] sm:$0xff] }
 0x418   : > { %2489 = vperm.xlu0 %3751, %v3764_v51   ;;  %v3774_v26 = vpop.eup %3773  ;;  %3799 = vrcp.f32 %v2650_v20 }
 0x419   : > { %v3776_v48 = vpop.eup %3775  ;;  %3801 = vrcp.f32 %v2653_v52 }
 0x41a   : > { %v3778_v28 = vpop.eup %3777  ;;  %3803 = vrcp.f32 %v2652_v59 }
 0x41b   : > { %2504 = vperm.xlu1 %3752, %v3766_v3   ;;  %v3780_v41 = vpop.eup %3779  ;;  %3805 = vrcp.f32 %v2655_v46 }
 0x41c   : > { %2499 = vperm.xlu0 %3751, %v3768_v17   ;;  %v3782_v4 = vpop.eup %3781  ;;  %3807 = vrcp.f32 %v2654_v39  ;;  %v2458_v17 = vld [vmem:[#allocation4 + $0x38] sm:$0xff] }
 0x41d   : > { %v3784_v31 = vpop.eup %3783  ;;  %3809 = vrcp.f32 %v2657_v24 }
 0x41e   : > { %v3786_v62 = vpop.eup %3785  ;;  %3811 = vrcp.f32 %v2656_v10 }
 0x41f   : > { %2514 = vperm.xlu1 %3752, %v3770_v18   ;;  %v3788_v56 = vpop.eup %3787  ;;  %3813 = vrcp.f32 %v2659_v0  ;;  %v2457_v18 = vld [vmem:[#allocation4 + $0x30] sm:$0xff] }
 0x420   : > { %2509 = vperm.xlu0 %3751, %v3772_v58   ;;  %v3790_v14 = vpop.eup %3789  ;;  %3815 = vrcp.f32 %v2658_v6 }
 0x421   : > { %v3792_v47 = vpop.eup %3791 }
 0x422   : > { %v3794_v55 = vpop.eup %3793 }
 0x423   : > { %2524 = vperm.xlu1 %3752, %v3774_v26   ;;  %v3796_v63 = vpop.eup %3795 }
 0x424   : > { %2519 = vperm.xlu0 %3751, %v3776_v48   ;;  %v3798_v22 = vpop.eup %3797  ;;  %v2460_v48 = vld [vmem:[#allocation4 + $0x48] sm:$0xff] }
 0x425   : > { %v3800_v61 = vpop.eup %3799 }
 0x426   : > { %v3802_v44 = vpop.eup %3801 }
 0x427   : > { %2534 = vperm.xlu1 %3752, %v3778_v28   ;;  %v3804_v13 = vpop.eup %3803  ;;  %v2459_v28 = vld [vmem:[#allocation4 + $0x40] sm:$0xff] }
 0x428   : > { %2529 = vperm.xlu0 %3751, %v3780_v41   ;;  %v3806_v5 = vpop.eup %3805 }
 0x429   : > { %v3808_v43 = vpop.eup %3807 }
 0x42a   : > { %v3810_v30 = vpop.eup %3809 }
 0x42b   : > { %2544 = vperm.xlu1 %3752, %v3782_v4   ;;  %v3812_v32 = vpop.eup %3811 }
 0x42c   : > { %2539 = vperm.xlu0 %3751, %v3784_v31   ;;  %v3814_v9 = vpop.eup %3813  ;;  %v2462_v31 = vld [vmem:[#allocation4 + $0x58] sm:$0xff] }
 0x42d   : > { %v3816_v33 = vpop.eup %3815 }
 0x42f   : > { %2699 = vperm.xlu1 %3752, %v3786_v62   ;;  %v2461_v62 = vld [vmem:[#allocation4 + $0x50] sm:$0xff] }
 0x430   : > { %2694 = vperm.xlu0 %3751, %v3788_v56  }
 0x433   : > { %2709 = vperm.xlu1 %3752, %v3790_v14  }
 0x434   : > { %2704 = vperm.xlu0 %3751, %v3792_v47   ;;  %v2464_v47 = vld [vmem:[#allocation4 + $0x68] sm:$0xff] }
 0x437   : > { %2719 = vperm.xlu1 %3752, %v3794_v55   ;;  %v2463_v55 = vld [vmem:[#allocation4 + $0x60] sm:$0xff] }
 0x438   : > { %2714 = vperm.xlu0 %3751, %v3796_v63  }
 0x43b   : > { %2729 = vperm.xlu1 %3752, %v3798_v22  }
 0x43c   : > { %2724 = vperm.xlu0 %3751, %v3800_v61   ;;  %v2466_v61 = vld [vmem:[#allocation4 + $0x78] sm:$0xff] }
 0x43f   : > { %2739 = vperm.xlu1 %3752, %v3802_v44   ;;  %v2465_v44 = vld [vmem:[#allocation4 + $0x70] sm:$0xff] }
 0x440   : > { %2734 = vperm.xlu0 %3751, %v3804_v13  }
 0x443   : > { %2749 = vperm.xlu1 %3752, %v3806_v5  }
 0x444   : > { %2744 = vperm.xlu0 %3751, %v3808_v43  }
 0x447   : > { %2759 = vperm.xlu1 %3752, %v3810_v30  }
 0x448   : > { %2754 = vperm.xlu0 %3751, %v3812_v32  }
 0x44b   : > { %2769 = vperm.xlu1 %3752, %v3814_v9   ;;  %v2677_v9 = vld [vmem:[#allocation4 + $0x88] sm:$0xff] }
 0x44c   : > { %2764 = vperm.xlu0 %3751, %v3816_v33  }
 0x48a   : > { %v2480_v60 = vpop.permute.xlu1 %2479 }
 0x48b   : > { %v2549_v21 = vmul.f32 %v2480_v60, %v2453_v38  ;;  %v2470_v27 = vpop.permute.xlu0 %2469  ;;  %v2676_v38 = vld [vmem:[#allocation4 + $0x80] sm:$0xff] }
 0x48c   : > { %v2547_v40 = vmul.f32 %v2470_v27, %v2451_v49 }
 0x48d   : > { %v3323_v57 = vpack.c.bf16 %v2549_v21, %v2549_v21 }
 0x48e   : > { %v3321_v19 = vpack.c.bf16 %v2547_v40, %v2547_v40  ;;  %v2485_v36 = vpop.permute.xlu1 %2484 }
 0x48f   : > { %2630 = vst.msk [vmem:[%s4144_s2 + $0x8] sm:$0xf] %vm2627_vm4, %v3323_v57  ;;  %v2550_v12 = vmul.f32 %v2485_v36, %v2454_v1  ;;  %v2475_v50 = vpop.permute.xlu0 %2474  ;;  %v2679_v1 = vld [vmem:[#allocation4 + $0x98] sm:$0xff] }
 0x490   : > { %2628 = vst.msk [vmem:[%s4144_s2] sm:$0xf] %vm2627_vm4, %v3321_v19  ;;  %v2548_v11 = vmul.f32 %v2475_v50, %v2452_v45  ;;  %v2678_v45 = vld [vmem:[#allocation4 + $0x90] sm:$0xff] }
 0x491   : > { %v3324_v23 = vpack.c.bf16 %v2550_v12, %v2550_v12 }
 0x492   : > { %v3322_v34 = vpack.c.bf16 %v2548_v11, %v2548_v11  ;;  %v2495_v51 = vpop.permute.xlu1 %2494 }
 0x493   : > { %2631 = vst.msk [vmem:[%s4144_s2 + $0xc] sm:$0xf] %vm2627_vm4, %v3324_v23  ;;  %v2552_v8 = vmul.f32 %v2495_v51, %v2456_v35  ;;  %v2490_v3 = vpop.permute.xlu0 %2489  ;;  %v2681_v35 = vld [vmem:[#allocation4 + $0xa8] sm:$0xff] }
 0x494   : > { %2629 = vst.msk [vmem:[%s4144_s2 + $0x4] sm:$0xf] %vm2627_vm4, %v3322_v34  ;;  %v2551_v2 = vmul.f32 %v2490_v3, %v2455_v37  ;;  %v2680_v37 = vld [vmem:[#allocation4 + $0xa0] sm:$0xff] }
 0x495   : > { %v3326_v29 = vpack.c.bf16 %v2552_v8, %v2552_v8 }
 0x496   : > { %v3325_v25 = vpack.c.bf16 %v2551_v2, %v2551_v2  ;;  %v2505_v58 = vpop.permute.xlu1 %2504 }
 0x497   : > { %2633 = vst.msk [vmem:[%s4144_s2 + $0x14] sm:$0xf] %vm2627_vm4, %v3326_v29  ;;  %v2554_v42 = vmul.f32 %v2505_v58, %v2458_v17  ;;  %v2500_v26 = vpop.permute.xlu0 %2499  ;;  %v2683_v17 = vld [vmem:[#allocation4 + $0xb8] sm:$0xff] }
 0x498   : > { %2632 = vst.msk [vmem:[%s4144_s2 + $0x10] sm:$0xf] %vm2627_vm4, %v3325_v25  ;;  %v2553_v53 = vmul.f32 %v2500_v26, %v2457_v18  ;;  %v2682_v18 = vld [vmem:[#allocation4 + $0xb0] sm:$0xff] }
 0x499   : > { %v3328_v16 = vpack.c.bf16 %v2554_v42, %v2554_v42 }
 0x49a   : > { %v3327_v7 = vpack.c.bf16 %v2553_v53, %v2553_v53  ;;  %v2515_v41 = vpop.permute.xlu1 %2514 }
 0x49b   : > { %2635 = vst.msk [vmem:[%s4144_s2 + $0x1c] sm:$0xf] %vm2627_vm4, %v3328_v16  ;;  %v2556_v15 = vmul.f32 %v2515_v41, %v2460_v48  ;;  %v2510_v4 = vpop.permute.xlu0 %2509  ;;  %v2685_v48 = vld [vmem:[#allocation4 + $0xc8] sm:$0xff] }
 0x49c   : > { %2634 = vst.msk [vmem:[%s4144_s2 + $0x18] sm:$0xf] %vm2627_vm4, %v3327_v7  ;;  %v2555_v54 = vmul.f32 %v2510_v4, %v2459_v28  ;;  %v2684_v28 = vld [vmem:[#allocation4 + $0xc0] sm:$0xff] }
 0x49d   : > { %v3330_v20 = vpack.c.bf16 %v2556_v15, %v2556_v15 }
 0x49e   : > { %v3329_v52 = vpack.c.bf16 %v2555_v54, %v2555_v54  ;;  %v2525_v56 = vpop.permute.xlu1 %2524 }
 0x49f   : > { %2637 = vst.msk [vmem:[%s4144_s2 + $0x24] sm:$0xf] %vm2627_vm4, %v3330_v20  ;;  %v2558_v59 = vmul.f32 %v2525_v56, %v2462_v31  ;;  %v2520_v14 = vpop.permute.xlu0 %2519  ;;  %v2687_v31 = vld [vmem:[#allocation4 + $0xd8] sm:$0xff] }
 0x4a0   : > { %2636 = vst.msk [vmem:[%s4144_s2 + $0x20] sm:$0xf] %vm2627_vm4, %v3329_v52  ;;  %v2557_v46 = vmul.f32 %v2520_v14, %v2461_v62  ;;  %v2686_v62 = vld [vmem:[#allocation4 + $0xd0] sm:$0xff] }
 0x4a1   : > { %v3332_v39 = vpack.c.bf16 %v2558_v59, %v2558_v59 }
 0x4a2   : > { %v3331_v24 = vpack.c.bf16 %v2557_v46, %v2557_v46  ;;  %v2535_v63 = vpop.permute.xlu1 %2534 }
 0x4a3   : > { %2639 = vst.msk [vmem:[%s4144_s2 + $0x2c] sm:$0xf] %vm2627_vm4, %v3332_v39  ;;  %v2560_v10 = vmul.f32 %v2535_v63, %v2464_v47  ;;  %v2530_v22 = vpop.permute.xlu0 %2529  ;;  %v2689_v47 = vld [vmem:[#allocation4 + $0xe8] sm:$0xff] }
 0x4a4   : > { %2638 = vst.msk [vmem:[%s4144_s2 + $0x28] sm:$0xf] %vm2627_vm4, %v3331_v24  ;;  %v2559_v0 = vmul.f32 %v2530_v22, %v2463_v55  ;;  %v2688_v55 = vld [vmem:[#allocation4 + $0xe0] sm:$0xff] }
 0x4a5   : > { %v3334_v6 = vpack.c.bf16 %v2560_v10, %v2560_v10 }
 0x4a6   : > { %v3333_v13 = vpack.c.bf16 %v2559_v0, %v2559_v0  ;;  %v2545_v5 = vpop.permute.xlu1 %2544 }
 0x4a7   : > { %2641 = vst.msk [vmem:[%s4144_s2 + $0x34] sm:$0xf] %vm2627_vm4, %v3334_v6  ;;  %v2562_v43 = vmul.f32 %v2545_v5, %v2466_v61  ;;  %v2540_v30 = vpop.permute.xlu0 %2539  ;;  %v2691_v61 = vld [vmem:[#allocation4 + $0xf8] sm:$0xff] }
 0x4a8   : > { %2640 = vst.msk [vmem:[%s4144_s2 + $0x30] sm:$0xf] %vm2627_vm4, %v3333_v13  ;;  %v2561_v32 = vmul.f32 %v2540_v30, %v2465_v44  ;;  %v2690_v44 = vld [vmem:[#allocation4 + $0xf0] sm:$0xff] }
 0x4a9   : > { %v3336_v33 = vpack.c.bf16 %v2562_v43, %v2562_v43 }
 0x4aa   : > { %v3335_v49 = vpack.c.bf16 %v2561_v32, %v2561_v32  ;;  %v2700_v60 = vpop.permute.xlu1 %2699 }
 0x4ab   : > { %2643 = vst.msk [vmem:[%s4144_s2 + $0x3c] sm:$0xf] %vm2627_vm4, %v3336_v33  ;;  %v2773_v21 = vmul.f32 %v2700_v60, %v2677_v9  ;;  %v2695_v27 = vpop.permute.xlu0 %2694 }
 0x4ac   : > { %2642 = vst.msk [vmem:[%s4144_s2 + $0x38] sm:$0xf] %vm2627_vm4, %v3335_v49  ;;  %v2772_v40 = vmul.f32 %v2695_v27, %v2676_v38 }
 0x4ad   : > { %v3338_v57 = vpack.c.bf16 %v2773_v21, %v2773_v21 }
 0x4ae   : > { %v3337_v19 = vpack.c.bf16 %v2772_v40, %v2772_v40  ;;  %v2710_v36 = vpop.permute.xlu1 %2709 }
 0x4af   : > { %3299 = vst.msk [vmem:[%s4144_s2 + $0x44] sm:$0xf] %vm2627_vm4, %v3338_v57  ;;  %v2775_v12 = vmul.f32 %v2710_v36, %v2679_v1  ;;  %v2705_v50 = vpop.permute.xlu0 %2704 }
 0x4b0   : > { %3298 = vst.msk [vmem:[%s4144_s2 + $0x40] sm:$0xf] %vm2627_vm4, %v3337_v19  ;;  %v2774_v11 = vmul.f32 %v2705_v50, %v2678_v45 }
 0x4b1   : > { %v3340_v23 = vpack.c.bf16 %v2775_v12, %v2775_v12 }
 0x4b2   : > { %v3339_v34 = vpack.c.bf16 %v2774_v11, %v2774_v11  ;;  %v2720_v51 = vpop.permute.xlu1 %2719 }
 0x4b3   : > { %3301 = vst.msk [vmem:[%s4144_s2 + $0x4c] sm:$0xf] %vm2627_vm4, %v3340_v23  ;;  %v2777_v8 = vmul.f32 %v2720_v51, %v2681_v35  ;;  %v2715_v3 = vpop.permute.xlu0 %2714 }
 0x4b4   : > { %3300 = vst.msk [vmem:[%s4144_s2 + $0x48] sm:$0xf] %vm2627_vm4, %v3339_v34  ;;  %v2776_v2 = vmul.f32 %v2715_v3, %v2680_v37 }
 0x4b5   : > { %v3342_v29 = vpack.c.bf16 %v2777_v8, %v2777_v8 }
 0x4b6   : > { %v3341_v25 = vpack.c.bf16 %v2776_v2, %v2776_v2  ;;  %v2730_v58 = vpop.permute.xlu1 %2729 }
 0x4b7   : > { %3303 = vst.msk [vmem:[%s4144_s2 + $0x54] sm:$0xf] %vm2627_vm4, %v3342_v29  ;;  %v2779_v42 = vmul.f32 %v2730_v58, %v2683_v17  ;;  %v2725_v26 = vpop.permute.xlu0 %2724 }
 0x4b8   : > { %3302 = vst.msk [vmem:[%s4144_s2 + $0x50] sm:$0xf] %vm2627_vm4, %v3341_v25  ;;  %v2778_v53 = vmul.f32 %v2725_v26, %v2682_v18 }
 0x4b9   : > { %v3344_v16 = vpack.c.bf16 %v2779_v42, %v2779_v42 }
 0x4ba   : > { %v3343_v7 = vpack.c.bf16 %v2778_v53, %v2778_v53  ;;  %v2740_v41 = vpop.permute.xlu1 %2739 }
 0x4bb   : > { %3305 = vst.msk [vmem:[%s4144_s2 + $0x5c] sm:$0xf] %vm2627_vm4, %v3344_v16  ;;  %v2781_v15 = vmul.f32 %v2740_v41, %v2685_v48  ;;  %v2735_v4 = vpop.permute.xlu0 %2734 }
 0x4bc   : > { %3304 = vst.msk [vmem:[%s4144_s2 + $0x58] sm:$0xf] %vm2627_vm4, %v3343_v7  ;;  %v2780_v54 = vmul.f32 %v2735_v4, %v2684_v28 }
 0x4bd   : > { %v3346_v20 = vpack.c.bf16 %v2781_v15, %v2781_v15 }
 0x4be   : > { %v3345_v52 = vpack.c.bf16 %v2780_v54, %v2780_v54  ;;  %v2750_v56 = vpop.permute.xlu1 %2749 }
 0x4bf   : > { %3307 = vst.msk [vmem:[%s4144_s2 + $0x64] sm:$0xf] %vm2627_vm4, %v3346_v20  ;;  %v2783_v59 = vmul.f32 %v2750_v56, %v2687_v31  ;;  %v2745_v14 = vpop.permute.xlu0 %2744 }
 0x4c0   : > { %3306 = vst.msk [vmem:[%s4144_s2 + $0x60] sm:$0xf] %vm2627_vm4, %v3345_v52  ;;  %v2782_v46 = vmul.f32 %v2745_v14, %v2686_v62 }
 0x4c1   : > { %v3348_v39 = vpack.c.bf16 %v2783_v59, %v2783_v59 }
 0x4c2   : > { %v3347_v24 = vpack.c.bf16 %v2782_v46, %v2782_v46  ;;  %v2760_v63 = vpop.permute.xlu1 %2759 }
 0x4c3   : > { %3309 = vst.msk [vmem:[%s4144_s2 + $0x6c] sm:$0xf] %vm2627_vm4, %v3348_v39  ;;  %v2785_v10 = vmul.f32 %v2760_v63, %v2689_v47  ;;  %v2755_v22 = vpop.permute.xlu0 %2754 }
 0x4c4   : > { %3308 = vst.msk [vmem:[%s4144_s2 + $0x68] sm:$0xf] %vm2627_vm4, %v3347_v24  ;;  %v2784_v0 = vmul.f32 %v2755_v22, %v2688_v55 }
 0x4c5   : > { %v3350_v6 = vpack.c.bf16 %v2785_v10, %v2785_v10 }
 0x4c6   : > { %v3349_v13 = vpack.c.bf16 %v2784_v0, %v2784_v0  ;;  %v2770_v5 = vpop.permute.xlu1 %2769 }
 0x4c7   : > { %3311 = vst.msk [vmem:[%s4144_s2 + $0x74] sm:$0xf] %vm2627_vm4, %v3350_v6  ;;  %v2787_v43 = vmul.f32 %v2770_v5, %v2691_v61  ;;  %v2765_v30 = vpop.permute.xlu0 %2764 }
 0x4c8   : > { %3310 = vst.msk [vmem:[%s4144_s2 + $0x70] sm:$0xf] %vm2627_vm4, %v3349_v13  ;;  %v2786_v32 = vmul.f32 %v2765_v30, %v2690_v44 }
 0x4c9   : > { %v3352_v9 = vpack.c.bf16 %v2787_v43, %v2787_v43 }
 0x4ca   : > { %v3351_v33 = vpack.c.bf16 %v2786_v32, %v2786_v32 }
 0x4cb   : > { %3313 = vst.msk [vmem:[%s4144_s2 + $0x7c] sm:$0xf] %vm2627_vm4, %v3352_v9 }
 0x4cc   : > { %3312 = vst.msk [vmem:[%s4144_s2 + $0x78] sm:$0xf] %vm2627_vm4, %v3351_v33 }
 0x4cd PF: > { %2875 = sbr.rel (!%p4066_p1) target bundleno = 1249 (0x4e1), region = 126  ;;  %s5816_s23 = sld [smem:[#allocation12_spill]] (%p4066_p1)  ;;  %v2899_v38 = vld [vmem:[%s4144_s2] sm:$0xff] (%p4066_p1)   ;;  %v2903_v49 = vld [vmem:[%s4144_s2 + $0x8] sm:$0xff] (%p4066_p1)   ;;  %v2907_v60 = vld [vmem:[%s4144_s2 + $0x10] sm:$0xff] (%p4066_p1)  }
 0x4ce   : > { %s5817_s19 = sld [smem:[#allocation13_spill]] (%p4066_p1)  ;;  %s3317_s22 = sshll.u32 (%p4066_p1), %s3913_s26, 8  ;;  %v2911_v21 = vld [vmem:[%s4144_s2 + $0x18] sm:$0xff] (%p4066_p1)   ;;  %v2915_v27 = vld [vmem:[%s4144_s2 + $0x20] sm:$0xff] (%p4066_p1)   ;;  %v2919_v40 = vld [vmem:[%s4144_s2 + $0x28] sm:$0xff] (%p4066_p1)  }
 0x4cf   : > { %v2923_v1 = vld [vmem:[%s4144_s2 + $0x30] sm:$0xff] (%p4066_p1)   ;;  %v2927_v57 = vld [vmem:[%s4144_s2 + $0x38] sm:$0xff] (%p4066_p1)   ;;  %v2931_v45 = vld [vmem:[%s4144_s2 + $0x40] sm:$0xff] (%p4066_p1)   ;;  %s5818_s12 = sld [smem:[#allocation63_spill]] (%p4066_p1) }
 0x4d0   : > { %v2935_v19 = vld [vmem:[%s4144_s2 + $0x48] sm:$0xff] (%p4066_p1)   ;;  %v2939_v36 = vld [vmem:[%s4144_s2 + $0x50] sm:$0xff] (%p4066_p1)   ;;  %v2943_v12 = vld [vmem:[%s4144_s2 + $0x58] sm:$0xff] (%p4066_p1)  }
 0x4d1   : > { %v2947_v50 = vld [vmem:[%s4144_s2 + $0x60] sm:$0xff] (%p4066_p1)   ;;  %v2951_v11 = vld [vmem:[%s4144_s2 + $0x68] sm:$0xff] (%p4066_p1)   ;;  %v2955_v35 = vld [vmem:[%s4144_s2 + $0x70] sm:$0xff] (%p4066_p1)  }
 0x4d3   : > { %s3315_s9 = sshll.u32 %s5816_s23, 4  ;;  %v2959_v23 = vld [vmem:[%s4144_s2 + $0x78] sm:$0xff]  }
 0x4d4   : > { %s3316_s8 = sshll.u32 %s5817_s19, 6 }
 0x4d5   : > { %s2878_s13 = sadd.s32 %s3316_s8, %s3315_s9 }
 0x4d6   : > { %s2880_s20 = sadd.s32 %s3317_s22, %s2878_s13 }
 0x4d7   : > { %s3318_s11 = sshll.u32 %s2880_s20, 2 }
 0x4d8   : > { %s2882_s14 = scalar_lea.vmem %s5818_s12, %s3318_s11 }
 0x4d9   : > { %2900 = vst [vmem:[%s2882_s14] sm:$0xff] %v2899_v38   ;;  %2904 = vst [vmem:[%s2882_s14 + $0x8] sm:$0xff] %v2903_v49  }
 0x4da   : > { %2908 = vst [vmem:[%s2882_s14 + $0x10] sm:$0xff] %v2907_v60   ;;  %2912 = vst [vmem:[%s2882_s14 + $0x18] sm:$0xff] %v2911_v21  }
 0x4db   : > { %2916 = vst [vmem:[%s2882_s14 + $0x20] sm:$0xff] %v2915_v27   ;;  %2920 = vst [vmem:[%s2882_s14 + $0x28] sm:$0xff] %v2919_v40  }
 0x4dc   : > { %2924 = vst [vmem:[%s2882_s14 + $0x30] sm:$0xff] %v2923_v1   ;;  %2928 = vst [vmem:[%s2882_s14 + $0x38] sm:$0xff] %v2927_v57  }
 0x4dd   : > { %2932 = vst [vmem:[%s2882_s14 + $0x80] sm:$0xff] %v2931_v45   ;;  %2936 = vst [vmem:[%s2882_s14 + $0x88] sm:$0xff] %v2935_v19  }
 0x4de   : > { %2940 = vst [vmem:[%s2882_s14 + $0x90] sm:$0xff] %v2939_v36   ;;  %2944 = vst [vmem:[%s2882_s14 + $0x98] sm:$0xff] %v2943_v12  }
 0x4df   : > { %2948 = vst [vmem:[%s2882_s14 + $0xa0] sm:$0xff] %v2947_v50   ;;  %2952 = vst [vmem:[%s2882_s14 + $0xa8] sm:$0xff] %v2951_v11  }
 0x4e0   : > { %2956 = vst [vmem:[%s2882_s14 + $0xb0] sm:$0xff] %v2955_v35   ;;  %2960 = vst [vmem:[%s2882_s14 + $0xb8] sm:$0xff] %v2959_v23  }
 0x4e1 PF: > { %s20_s5 = sadd.s32 1, %s3933_s5   ;;  %s5820_s2 = sld [smem:[#allocation14_spill]] }
 0x4e2   : > { %p5578_p13 = scmp.ge.s32.totalorder %s20_s5, 34   ;;  %s5821_s17 = sld [smem:[#allocation15_spill]] }
 0x4e3   : > { %s5823_s20 = smov %s3889_s21  ;;  %s5824_s21 = smov %s4086_s25 }
 0x4e4   : > { %s5825_s22 = smov %s3897_s0  ;;  %s5826_s0 = smov %s4083_s3 }
 0x4e5   : > { %s5827_s23 = smov %s3917_s27  ;;  %s5828_s24 = smov %s3921_s28 }
 0x4e6   : > { %s5829_s25 = smov %s3925_s29  ;;  %s5830_s26 = smov %s3929_s30 }
 0x4e7   : > { %s5831_s27 = smov %s5838_s6  ;;  %s5832_s28 = smov %s5840_s7 }
 0x4e8   : > { %s5833_s29 = smov %s5820_s2  ;;  %s5834_s30 = smov %s5821_s17 }
 0x4e9   :  { %19 = sbr.rel (!%p5578_p13) target bundleno = 24 (0x18), region = 214 }

</bundles_post_ra>
